<compile_context>
chip_gen: v5e
topology: v5e:2x2
jax: 0.10.0
libtpu: 0.0.40
codegen_flags: <defaults>
</compile_context>

<pallas_src>
import math
import functools

import jax
import jax.numpy as jnp
from jax.experimental import pallas as pl
from jax.experimental.pallas import tpu as pltpu


_NEG_INF = -1e30
_VMEM_LIMIT = 32 * 1024 * 1024


def _pick_tile(n, candidates):
    for c in candidates:
        if n % c == 0:
            return c
    return n


# ---------------------------------------------------------------------------
# Fused QKV projection GEMM with RoPE epilogue
# ---------------------------------------------------------------------------

def _qkv_rope_kernel(x_ref, w_ref, cos_ref, sin_ref, o_ref, acc_ref, *,
                     head_dim, tn, rope_col_blocks):
    @pl.when(pl.program_id(2) == 0)
    def _():
        acc_ref[...] = jnp.zeros_like(acc_ref)

    x = x_ref[...]
    w = w_ref[...]
    if x.dtype != w.dtype:
        x = x.astype(w.dtype)
    acc_ref[...] += jnp.dot(x, w, preferred_element_type=jnp.float32)

    is_last = pl.program_id(2) == pl.num_programs(2) - 1
    needs_rope = pl.program_id(1) < rope_col_blocks

    @pl.when(jnp.logical_and(is_last, needs_rope))
    def _():
        acc = acc_ref[...]
        cos = cos_ref[...]
        sin = sin_ref[...]          # sign-folded sin: rotate_half == roll * sign
        for s in range(tn // head_dim):
            lo, hi = s * head_dim, (s + 1) * head_dim
            seg = acc[:, lo:hi]
            rot = pltpu.roll(seg, head_dim // 2, 1)
            o_ref[:, lo:hi] = (seg * cos + rot * sin).astype(o_ref.dtype)

    @pl.when(jnp.logical_and(is_last, jnp.logical_not(needs_rope)))
    def _():
        o_ref[...] = acc_ref[...].astype(o_ref.dtype)


def _qkv_proj_rope(x2d, wqkv, cos_bs, sin_bs, *, n_rope_cols, head_dim,
                   out_dtype, tm, tn, tk):
    M, K = x2d.shape
    K2, N = wqkv.shape
    assert K == K2
    assert M % tm == 0 and N % tn == 0 and K % tk == 0
    assert n_rope_cols % tn == 0 and tn % head_dim == 0
    rope_col_blocks = n_rope_cols // tn

    kernel = functools.partial(_qkv_rope_kernel, head_dim=head_dim, tn=tn,
                               rope_col_blocks=rope_col_blocks)
    itemsize_x = jnp.dtype(x2d.dtype).itemsize
    itemsize_o = jnp.dtype(out_dtype).itemsize
    cost = pl.CostEstimate(
        flops=2 * M * N * K,
        transcendentals=0,
        bytes_accessed=int(M * K * itemsize_x * (N // tn) + K * N * 4 + M * N * itemsize_o),
    )

    return pl.pallas_call(
        kernel,
        out_shape=jax.ShapeDtypeStruct((M, N), out_dtype),
        grid_spec=pltpu.PrefetchScalarGridSpec(
            num_scalar_prefetch=0,
            grid=(M // tm, N // tn, K // tk),
            in_specs=[
                pl.BlockSpec((tm, tk), lambda i, j, k: (i, k)),
                pl.BlockSpec((tk, tn), lambda i, j, k: (k, j)),
                pl.BlockSpec((tm, head_dim), lambda i, j, k: (i, 0)),
                pl.BlockSpec((tm, head_dim), lambda i, j, k: (i, 0)),
            ],
            out_specs=pl.BlockSpec((tm, tn), lambda i, j, k: (i, j)),
            scratch_shapes=[pltpu.VMEM((tm, tn), jnp.float32)],
        ),
        compiler_params=pltpu.CompilerParams(
            dimension_semantics=("parallel", "parallel", "arbitrary"),
            vmem_limit_bytes=_VMEM_LIMIT,
        ),
        cost_estimate=cost,
    )(x2d, wqkv, cos_bs, sin_bs)


# ---------------------------------------------------------------------------
# Plain tiled GEMM (output projection)
# ---------------------------------------------------------------------------

def _matmul_kernel(x_ref, w_ref, o_ref, acc_ref):
    @pl.when(pl.program_id(2) == 0)
    def _():
        acc_ref[...] = jnp.zeros_like(acc_ref)

    x = x_ref[...]
    w = w_ref[...]
    if x.dtype != w.dtype:
        x = x.astype(w.dtype)
    acc_ref[...] += jnp.dot(x, w, preferred_element_type=jnp.float32)

    @pl.when(pl.program_id(2) == pl.num_programs(2) - 1)
    def _():
        o_ref[...] = acc_ref[...].astype(o_ref.dtype)


def _tiled_matmul(x, w, out_dtype=None, tm=None, tn=None, tk=None):
    M, K = x.shape
    K2, N = w.shape
    assert K == K2
    out_dtype = w.dtype if out_dtype is None else out_dtype
    tm = _pick_tile(M, (256, 128, 64, 32, 16, 8)) if tm is None else tm
    tn = _pick_tile(N, (512, 256, 128)) if tn is None else tn
    tk = _pick_tile(K, (512, 256, 128)) if tk is None else tk

    cost = pl.CostEstimate(
        flops=2 * M * N * K, transcendentals=0,
        bytes_accessed=int(M * K * jnp.dtype(x.dtype).itemsize * (N // tn)
                           + K * N * jnp.dtype(w.dtype).itemsize
                           + M * N * jnp.dtype(out_dtype).itemsize),
    )
    return pl.pallas_call(
        _matmul_kernel,
        out_shape=jax.ShapeDtypeStruct((M, N), out_dtype),
        grid_spec=pltpu.PrefetchScalarGridSpec(
            num_scalar_prefetch=0,
            grid=(M // tm, N // tn, K // tk),
            in_specs=[
                pl.BlockSpec((tm, tk), lambda i, j, k: (i, k)),
                pl.BlockSpec((tk, tn), lambda i, j, k: (k, j)),
            ],
            out_specs=pl.BlockSpec((tm, tn), lambda i, j, k: (i, j)),
            scratch_shapes=[pltpu.VMEM((tm, tn), jnp.float32)],
        ),
        compiler_params=pltpu.CompilerParams(
            dimension_semantics=("parallel", "parallel", "arbitrary"),
            vmem_limit_bytes=_VMEM_LIMIT,
        ),
        cost_estimate=cost,
    )(x, w)


# ---------------------------------------------------------------------------
# Flash attention (online softmax, causal + optional sliding window)
# ---------------------------------------------------------------------------

def _flash_attention_kernel(q_ref, k_ref, v_ref, o_ref, m_ref, l_ref, acc_ref,
                            *, scale, tq, tk, sliding_window):
    qi = pl.program_id(2)
    ki = pl.program_id(3)
    nk = pl.num_programs(3)

    @pl.when(ki == 0)
    def _():
        m_ref[...] = jnp.full_like(m_ref, _NEG_INF)
        l_ref[...] = jnp.zeros_like(l_ref)
        acc_ref[...] = jnp.zeros_like(acc_ref)

    q_start = qi * tq
    k_start = ki * tk

    # Causal block skip (and out-of-window block skip).
    run = k_start <= q_start + (tq - 1)
    if sliding_window is not None:
        run = jnp.logical_and(run, k_start + (tk - 1) >= q_start - sliding_window)

    @pl.when(run)
    def _():
        q = q_ref[...]
        k = k_ref[...]
        s = jax.lax.dot_general(q, k, (((1,), (1,)), ((), ())),
                                preferred_element_type=jnp.float32)
        s = s * scale

        q_pos = q_start + jax.lax.broadcasted_iota(jnp.int32, (tq, tk), 0)
        k_pos = k_start + jax.lax.broadcasted_iota(jnp.int32, (tq, tk), 1)
        mask = q_pos >= k_pos
        if sliding_window is not None:
            mask = jnp.logical_and(mask, q_pos - k_pos <= sliding_window)
        s = jnp.where(mask, s, _NEG_INF)

        m_prev = m_ref[...]
        m_new = jnp.maximum(m_prev, jnp.max(s, axis=-1, keepdims=True))
        alpha = jnp.exp(m_prev - m_new)
        p = jnp.where(mask, jnp.exp(s - m_new), 0.0)

        l_ref[...] = alpha * l_ref[...] + jnp.sum(p, axis=-1, keepdims=True)
        acc_ref[...] = alpha * acc_ref[...] + jnp.dot(
            p.astype(v_ref.dtype), v_ref[...], preferred_element_type=jnp.float32)
        m_ref[...] = m_new

    @pl.when(ki == nk - 1)
    def _():
        o_ref[...] = (acc_ref[...] *
                      pl.reciprocal(l_ref[...], approx=True)).astype(o_ref.dtype)


def _flash_attention(qkv, *, B, S, n_heads, n_kv_heads, head_dim, tq, tk,
                     sliding_window):
    n_rep = n_heads // n_kv_heads
    scale = 1.0 / math.sqrt(head_dim)
    nq = S // tq
    nk = S // tk
    k_col0 = n_heads                       # column block offsets (units of head_dim)
    v_col0 = n_heads + n_kv_heads

    def q_map(b, h, qi, ki):
        return (b * nq + qi, h)

    def k_map(b, h, qi, ki):
        return (b * nk + ki, k_col0 + h // n_rep)

    def v_map(b, h, qi, ki):
        return (b * nk + ki, v_col0 + h // n_rep)

    kernel = functools.partial(_flash_attention_kernel, scale=scale, tq=tq,
                               tk=tk, sliding_window=sliding_window)
    cost = pl.CostEstimate(
        flops=4 * B * n_heads * S * S * head_dim,
        transcendentals=B * n_heads * S * S,
        bytes_accessed=int(2 * B * n_heads * S * head_dim * 2
                           + 2 * B * n_heads * nq * S * head_dim * 2),
    )

    return pl.pallas_call(
        kernel,
        out_shape=jax.ShapeDtypeStruct((B * S, n_heads * head_dim), qkv.dtype),
        grid_spec=pltpu.PrefetchScalarGridSpec(
            num_scalar_prefetch=0,
            grid=(B, n_heads, nq, nk),
            in_specs=[
                pl.BlockSpec((tq, head_dim), q_map),
                pl.BlockSpec((tk, head_dim), k_map),
                pl.BlockSpec((tk, head_dim), v_map),
            ],
            out_specs=pl.BlockSpec((tq, head_dim), q_map),
            scratch_shapes=[
                pltpu.VMEM((tq, 1), jnp.float32),        # running max
                pltpu.VMEM((tq, 1), jnp.float32),        # running sum
                pltpu.VMEM((tq, head_dim), jnp.float32), # running output
            ],
        ),
        compiler_params=pltpu.CompilerParams(
            dimension_semantics=("parallel", "parallel", "parallel", "arbitrary"),
            vmem_limit_bytes=_VMEM_LIMIT,
        ),
        cost_estimate=cost,
    )(qkv, qkv, qkv)


# ---------------------------------------------------------------------------
# RoPE table (same math as precompute_rope_angle)
# ---------------------------------------------------------------------------

def precompute_rope_angle(dim, seq_len, theta=10000.0):
    inv_freq = 1.0 / (theta ** (jnp.arange(0, dim, 2, dtype=jnp.float32) / dim))
    t = jnp.arange(seq_len, dtype=jnp.float32)
    freqs = jnp.outer(t, inv_freq)
    emb = jnp.concatenate([freqs, freqs], axis=-1)
    return jnp.cos(emb), jnp.sin(emb)


# ---------------------------------------------------------------------------
# Module-equivalent forward
# ---------------------------------------------------------------------------

def mistral_flash_attention_forward(hidden_states, params, *, n_heads,
                                    n_kv_heads, cos_table, sin_table,
                                    sliding_window=None, tq=None, tk=None):
    B, S, D = hidden_states.shape
    head_dim = D // n_heads
    assert n_heads % n_kv_heads == 0
    # Layout constraints of this implementation (true for real Mistral shapes).
    assert head_dim % 128 == 0, "head_dim must be a multiple of 128 lanes"
    assert S % 8 == 0

    x2d = hidden_states.reshape(B * S, D)
    wqkv = jnp.concatenate([params["wq"], params["wk"], params["wv"]], axis=1)

    # RoPE tables, flattened over (batch, position) rows; sin has the
    # rotate_half sign folded in so rotate_half(x) == pltpu.roll(x, Dh/2) * sign.
    cos = cos_table[:S].astype(jnp.float32)
    sin = sin_table[:S].astype(jnp.float32)
    sign = jnp.concatenate([-jnp.ones((head_dim // 2,), jnp.float32),
                            jnp.ones((head_dim // 2,), jnp.float32)])
    cos_bs = jnp.tile(cos, (B, 1))
    sin_bs = jnp.tile(sin * sign[None, :], (B, 1))

    M = B * S
    n_total_cols = (n_heads + 2 * n_kv_heads) * head_dim
    n_rope_cols = (n_heads + n_kv_heads) * head_dim

    tm = _pick_tile(M, (256, 128, 64, 32, 16, 8))
    tkk = _pick_tile(D, (512, 256, 128))
    tn = head_dim
    if (n_rope_cols % (2 * head_dim) == 0 and n_total_cols % (2 * head_dim) == 0
            and 2 * head_dim <= 512):
        tn = 2 * head_dim   # 256-wide result tiles for the 256x256 MXUs

    # Fused QKV projection + RoPE, stored bf16 (module casts fp32 -> bf16
    # before flash attention).
    qkv = _qkv_proj_rope(x2d, wqkv, cos_bs, sin_bs, n_rope_cols=n_rope_cols,
                         head_dim=head_dim, out_dtype=jnp.bfloat16,
                         tm=tm, tn=tn, tk=tkk)

    if tq is None:
        tq = _pick_tile(S, (256, 128, 64, 32, 16, 8))
    if tk is None:
        tk = _pick_tile(S, (512, 256, 128, 64, 32, 16, 8))
    assert S % tq == 0 and S % tk == 0

    attn = _flash_attention(qkv, B=B, S=S, n_heads=n_heads,
                            n_kv_heads=n_kv_heads, head_dim=head_dim,
                            tq=tq, tk=tk, sliding_window=sliding_window)

    # Output projection (bf16 attention output upcast to the fp32 weight dtype
    # inside the kernel, matching the module's .to(input_dtype) before wo).
    out = _tiled_matmul(attn, params["wo"], out_dtype=hidden_states.dtype)
    return out.reshape(B, S, D)


# ---------------------------------------------------------------------------
# Pure-JAX reference (mirrors the PyTorch forward) for correctness checking
# ---------------------------------------------------------------------------

def _reference_forward(hidden_states, params, *, n_heads, n_kv_heads,
                       cos_table, sin_table, sliding_window=None):
    B, S, D = hidden_states.shape
    head_dim = D // n_heads
    n_rep = n_heads // n_kv_heads

    xq = hidden_states @ params["wq"]
    xk = hidden_states @ params["wk"]
    xv = hidden_states @ params["wv"]

    xq = xq.reshape(B, S, n_heads, head_dim).transpose(0, 2, 1, 3)
    xk = xk.reshape(B, S, n_kv_heads, head_dim).transpose(0, 2, 1, 3)
    xv = xv.reshape(B, S, n_kv_heads, head_dim).transpose(0, 2, 1, 3)

    cos = cos_table[:S]
    sin = sin_table[:S]

    def rotate_half(x):
        x1 = x[..., : head_dim // 2]
        x2 = x[..., head_dim // 2:]
        return jnp.concatenate([-x2, x1], axis=-1)

    xq = xq * cos + rotate_half(xq) * sin
    xk = xk * cos + rotate_half(xk) * sin

    xk = jnp.repeat(xk, n_rep, axis=1)
    xv = jnp.repeat(xv, n_rep, axis=1)

    # flash path: fp32 activations are cast to bf16
    xq = xq.astype(jnp.bfloat16)
    xk = xk.astype(jnp.bfloat16)
    xv = xv.astype(jnp.bfloat16)

    s = jnp.einsum("bhqd,bhkd->bhqk", xq, xk,
                   preferred_element_type=jnp.float32) / math.sqrt(head_dim)
    q_pos = jnp.arange(S)[:, None]
    k_pos = jnp.arange(S)[None, :]
    mask = q_pos >= k_pos
    if sliding_window is not None:
        mask = jnp.logical_and(mask, q_pos - k_pos <= sliding_window)
    s = jnp.where(mask[None, None], s, -jnp.inf)
    p = jax.nn.softmax(s, axis=-1)
    o = jnp.einsum("bhqk,bhkd->bhqd", p.astype(jnp.bfloat16), xv,
                   preferred_element_type=jnp.float32).astype(jnp.bfloat16)
    o = o.transpose(0, 2, 1, 3).reshape(B, S, n_heads * head_dim)
    return o.astype(hidden_states.dtype) @ params["wo"]


# ---------------------------------------------------------------------------
# Main
# ---------------------------------------------------------------------------

if __name__ == "__main__":
    # Small (but tiling-exercising) Mistral-style config: head_dim=128, GQA 2:1.
    B, S = 2, 256
    n_heads, n_kv_heads = 4, 2
    head_dim = 128
    dim = n_heads * head_dim          # 512
    max_seq_len = 512
    rope_theta = 10000.0
    dtype = jnp.float32

    key = jax.random.PRNGKey(0)
    k_x, k_q, k_k, k_v, k_o = jax.random.split(key, 5)

    hidden_states = jax.random.normal(k_x, (B, S, dim), dtype=dtype)
    w_scale = 1.0 / math.sqrt(dim)
    params = {
        "wq": jax.random.normal(k_q, (dim, n_heads * head_dim), dtype) * w_scale,
        "wk": jax.random.normal(k_k, (dim, n_kv_heads * head_dim), dtype) * w_scale,
        "wv": jax.random.normal(k_v, (dim, n_kv_heads * head_dim), dtype) * w_scale,
        "wo": jax.random.normal(k_o, (n_heads * head_dim, dim), dtype) * w_scale,
    }
    cos_table, sin_table = precompute_rope_angle(head_dim, max_seq_len, rope_theta)

    # --- causal (no sliding window, matching kv_seq_len <= sliding_window) ---
    out = mistral_flash_attention_forward(
        hidden_states, params, n_heads=n_heads, n_kv_heads=n_kv_heads,
        cos_table=cos_table, sin_table=sin_table, sliding_window=None,
        tq=128, tk=128)
    out = jax.block_until_ready(out)
    ref = _reference_forward(
        hidden_states, params, n_heads=n_heads, n_kv_heads=n_kv_heads,
        cos_table=cos_table, sin_table=sin_table, sliding_window=None)
    assert out.shape == (B, S, dim)
    assert jnp.allclose(out, ref, atol=2e-2, rtol=2e-2), (
        "causal mismatch, max abs err = %e" % float(jnp.max(jnp.abs(out - ref))))

    # --- sliding-window path (kv_seq_len > sliding_window) ---
    out_w = mistral_flash_attention_forward(
        hidden_states, params, n_heads=n_heads, n_kv_heads=n_kv_heads,
        cos_table=cos_table, sin_table=sin_table, sliding_window=64,
        tq=128, tk=128)
    out_w = jax.block_until_ready(out_w)
    ref_w = _reference_forward(
        hidden_states, params, n_heads=n_heads, n_kv_heads=n_kv_heads,
        cos_table=cos_table, sin_table=sin_table, sliding_window=64)
    assert jnp.allclose(out_w, ref_w, atol=2e-2, rtol=2e-2), (
        "sliding-window mismatch, max abs err = %e"
        % float(jnp.max(jnp.abs(out_w - ref_w))))

    print("KERNEL_OK")
</pallas_src>

<mosaic_0001>
module attributes {stable_mosaic.version = 11 : i64} {
  func.func @_qkv_rope_kernel(%arg0: i32, %arg1: i32, %arg2: i32, %arg3: memref<256x512xf32, #tpu.memory_space<vmem>>, %arg4: memref<512x256xf32, #tpu.memory_space<vmem>>, %arg5: memref<256x128xf32, #tpu.memory_space<vmem>>, %arg6: memref<256x128xf32, #tpu.memory_space<vmem>>, %arg7: memref<256x256xbf16, #tpu.memory_space<vmem>>, %arg8: memref<256x256xf32, #tpu.memory_space<vmem>>) attributes {dimension_semantics = [#tpu.dimension_semantics<parallel>, #tpu.dimension_semantics<parallel>, #tpu.dimension_semantics<arbitrary>], iteration_bounds = array<i64: 2, 4, 1>, scalar_prefetch = 0 : i64, scratch_operands = 1 : i64, tpu.core_type = #tpu.core_type<tc>, window_params = [{transform_indices = @transform_0, window_bounds = array<i64: 256, 512>}, {transform_indices = @transform_1, window_bounds = array<i64: 512, 256>}, {transform_indices = @transform_2, window_bounds = array<i64: 256, 128>}, {transform_indices = @transform_3, window_bounds = array<i64: 256, 128>}, {transform_indices = @transform_4, window_bounds = array<i64: 256, 256>}]} {
    %c0_i32 = arith.constant 0 : i32
    %0 = arith.cmpi eq, %arg2, %c0_i32 : i32
    %1 = arith.extui %0 : i1 to i32
    %c0_i32_0 = arith.constant 0 : i32
    %2 = arith.cmpi ne, %1, %c0_i32_0 : i32
    scf.if %2 {
      %cst_11 = arith.constant 0.000000e+00 : f32
      %18 = vector.broadcast %cst_11 : f32 to vector<256x256xf32>
      %c0_12 = arith.constant 0 : index
      %c0_13 = arith.constant 0 : index
      %19 = vector.load %arg8[%c0_12, %c0_13] : memref<256x256xf32, #tpu.memory_space<vmem>>, vector<256x256xf32>
      tpu.vector_store %arg8[%c0_12, %c0_13], %18 {strides = array<i32>} : memref<256x256xf32, #tpu.memory_space<vmem>>, vector<256x256xf32>,
    } else {
    }
    %c0 = arith.constant 0 : index
    %c0_1 = arith.constant 0 : index
    %3 = vector.load %arg3[%c0, %c0_1] : memref<256x512xf32, #tpu.memory_space<vmem>>, vector<256x512xf32>
    %c0_2 = arith.constant 0 : index
    %c0_3 = arith.constant 0 : index
    %4 = vector.load %arg4[%c0_2, %c0_3] : memref<512x256xf32, #tpu.memory_space<vmem>>, vector<512x256xf32>
    %c0_4 = arith.constant 0 : index
    %c0_5 = arith.constant 0 : index
    %5 = vector.load %arg8[%c0_4, %c0_5] : memref<256x256xf32, #tpu.memory_space<vmem>>, vector<256x256xf32>
    %cst = arith.constant dense<0.000000e+00> : vector<256x256xf32>
    %6 = tpu.matmul %3, %4, %cst {dimension_numbers = #tpu.dot_dimension_numbers<[1], [0], [0], [1], [0, 0, 1, 1], [], []>} : vector<256x512xf32>, vector<512x256xf32>, vector<256x256xf32> -> vector<256x256xf32>
    %7 = arith.addf %5, %6 : vector<256x256xf32>
    %c0_6 = arith.constant 0 : index
    %c0_7 = arith.constant 0 : index
    %8 = vector.load %arg8[%c0_6, %c0_7] : memref<256x256xf32, #tpu.memory_space<vmem>>, vector<256x256xf32>
    tpu.vector_store %arg8[%c0_6, %c0_7], %7 {strides = array<i32>} : memref<256x256xf32, #tpu.memory_space<vmem>>, vector<256x256xf32>,
    %c0_i32_8 = arith.constant 0 : i32
    %9 = arith.cmpi eq, %arg2, %c0_i32_8 : i32
    %c3_i32 = arith.constant 3 : i32
    %10 = arith.cmpi slt, %arg1, %c3_i32 : i32
    %11 = arith.andi %9, %10 : i1
    %12 = arith.extui %11 : i1 to i32
    %c0_i32_9 = arith.constant 0 : i32
    %13 = arith.cmpi ne, %12, %c0_i32_9 : i32
    scf.if %13 {
      %c0_11 = arith.constant 0 : index
      %c0_12 = arith.constant 0 : index
      %18 = vector.load %arg8[%c0_11, %c0_12] : memref<256x256xf32, #tpu.memory_space<vmem>>, vector<256x256xf32>
      %c0_13 = arith.constant 0 : index
      %c0_14 = arith.constant 0 : index
      %19 = vector.load %arg5[%c0_13, %c0_14] : memref<256x128xf32, #tpu.memory_space<vmem>>, vector<256x128xf32>
      %c0_15 = arith.constant 0 : index
      %c0_16 = arith.constant 0 : index
      %20 = vector.load %arg6[%c0_15, %c0_16] : memref<256x128xf32, #tpu.memory_space<vmem>>, vector<256x128xf32>
      %21 = vector.extract_strided_slice %18 {offsets = [0, 0], sizes = [256, 128], strides = [1, 1]} : vector<256x256xf32> to vector<256x128xf32>
      %c64_i32 = arith.constant 64 : i32
      %22 = tpu.dynamic_rotate %21 by %c64_i32 dim 1 : vector<256x128xf32>, i32 -> vector<256x128xf32>
      %23 = arith.mulf %21, %19 : vector<256x128xf32>
      %24 = arith.mulf %22, %20 : vector<256x128xf32>
      %25 = arith.addf %23, %24 : vector<256x128xf32>
      %26 = arith.truncf %25 : vector<256x128xf32> to vector<256x128xbf16>
      %c0_17 = arith.constant 0 : index
      %c0_18 = arith.constant 0 : index
      %27 = vector.load %arg7[%c0_17, %c0_18] : memref<256x256xbf16, #tpu.memory_space<vmem>>, vector<256x128xbf16>
      tpu.vector_store %arg7[%c0_17, %c0_18], %26 {strides = array<i32>} : memref<256x256xbf16, #tpu.memory_space<vmem>>, vector<256x128xbf16>,
      %28 = vector.extract_strided_slice %18 {offsets = [0, 128], sizes = [256, 128], strides = [1, 1]} : vector<256x256xf32> to vector<256x128xf32>
      %c64_i32_19 = arith.constant 64 : i32
      %29 = tpu.dynamic_rotate %28 by %c64_i32_19 dim 1 : vector<256x128xf32>, i32 -> vector<256x128xf32>
      %30 = arith.mulf %28, %19 : vector<256x128xf32>
      %31 = arith.mulf %29, %20 : vector<256x128xf32>
      %32 = arith.addf %30, %31 : vector<256x128xf32>
      %33 = arith.truncf %32 : vector<256x128xf32> to vector<256x128xbf16>
      %c0_20 = arith.constant 0 : index
      %c128 = arith.constant 128 : index
      %34 = vector.load %arg7[%c0_20, %c128] : memref<256x256xbf16, #tpu.memory_space<vmem>>, vector<256x128xbf16>
      tpu.vector_store %arg7[%c0_20, %c128], %33 {strides = array<i32>} : memref<256x256xbf16, #tpu.memory_space<vmem>>, vector<256x128xbf16>,
    } else {
    }
    %true = arith.constant true
    %14 = arith.xori %10, %true : i1
    %15 = arith.andi %9, %14 : i1
    %16 = arith.extui %15 : i1 to i32
    %c0_i32_10 = arith.constant 0 : i32
    %17 = arith.cmpi ne, %16, %c0_i32_10 : i32
    scf.if %17 {
      %c0_11 = arith.constant 0 : index
      %c0_12 = arith.constant 0 : index
      %18 = vector.load %arg8[%c0_11, %c0_12] : memref<256x256xf32, #tpu.memory_space<vmem>>, vector<256x256xf32>
      %19 = arith.truncf %18 : vector<256x256xf32> to vector<256x256xbf16>
      %c0_13 = arith.constant 0 : index
      %c0_14 = arith.constant 0 : index
      %20 = vector.load %arg7[%c0_13, %c0_14] : memref<256x256xbf16, #tpu.memory_space<vmem>>, vector<256x256xbf16>
      tpu.vector_store %arg7[%c0_13, %c0_14], %19 {strides = array<i32>} : memref<256x256xbf16, #tpu.memory_space<vmem>>, vector<256x256xbf16>,
    } else {
    }
    return
  }
  func.func @transform_0(%arg0: i32, %arg1: i32, %arg2: i32) -> (i32, i32) {
    %c0_i32 = arith.constant 0 : i32
    return %arg0, %arg2 : i32, i32
  }
  func.func @transform_1(%arg0: i32, %arg1: i32, %arg2: i32) -> (i32, i32) {
    %c0_i32 = arith.constant 0 : i32
    return %arg2, %arg1 : i32, i32
  }
  func.func @transform_2(%arg0: i32, %arg1: i32, %arg2: i32) -> (i32, i32) {
    %c0_i32 = arith.constant 0 : i32
    %c0_i32_0 = arith.constant 0 : i32
    return %arg0, %c0_i32 : i32, i32
  }
  func.func @transform_3(%arg0: i32, %arg1: i32, %arg2: i32) -> (i32, i32) {
    %c0_i32 = arith.constant 0 : i32
    %c0_i32_0 = arith.constant 0 : i32
    return %arg0, %c0_i32 : i32, i32
  }
  func.func @transform_4(%arg0: i32, %arg1: i32, %arg2: i32) -> (i32, i32) {
    %c0_i32 = arith.constant 0 : i32
    return %arg0, %arg1 : i32, i32
  }
}

</mosaic_0001>

<bundles_post_ra>
// kernel: tpu_custom_call.1
= control target key start
LH: loop header
LB: loop body
LE: loop exit
PB: predicated region body
PF: predicated region fallthrough
CT: control target
= control target key end

     0   :  { %s4859_s0 = inlined_call_operand.hbm [shape: f32[512,512], index: 0, kind: input, shape index: {}]   ;;  %s4860_s1 = inlined_call_operand.hbm [shape: f32[512,1024], index: 1, kind: input, shape index: {}]   ;;  %s4861_s2 = inlined_call_operand.hbm [shape: f32[512,128], index: 2, kind: input, shape index: {}]   ;;  %s4862_s3 = inlined_call_operand.hbm [shape: f32[512,128], index: 3, kind: input, shape index: {}]   ;;  %s4863_s4 = inlined_call_operand.hbm [shape: bf16[512,1024], index: 4, kind: output, shape index: {}]  }
   0x1   :  { %4917 = sst [smem:[#allocation72_spill]] %s4859_s0 }
   0x2   :  { %4918 = sst [smem:[#allocation73_spill]] %s4860_s1 }
   0x3   :  { %4919 = sst [smem:[#allocation74_spill]] %s4863_s4 }
   0x4   :  { %9 = vsyncpa [#allocation4], 0 }
   0x5   :  { %11 = vsyncpa [#allocation4 + $0x1], 0 }
   0x6   :  { %12 = vsyncpa [#allocation7], 0 }
   0x7   :  { %14 = vsyncpa [#allocation7 + $0x1], 0 }
   0x8   :  { %15 = vsyncpa [#allocation10], 0 }
   0x9   :  { %17 = vsyncpa [#allocation10 + $0x1], 0 }
   0xa   :  { %18 = vsyncpa [#allocation5], 0 }
   0xb   :  { %20 = vsyncpa [#allocation5 + $0x1], 0  ;;  %s3279_s15 = smov 0   ;;  %s3281_s16 = smov 0  }
   0xc   :  { %s3283_s17 = smov 0   ;;  %s3285_s18 = smov 0  }
   0xd   :  { %s3287_s19 = smov 0   ;;  %s3289_s20 = smov 0  }
   0xe   :  { %s3291_s21 = smov 0   ;;  %s3293_s22 = smov 0  }
   0xf   :  { %s3295_s23 = smov 0   ;;  %s3297_s24 = smov 0  }
  0x10   :  { %s3299_s25 = smov 0   ;;  %s3301_s26 = smov 0  }
  0x11   :  { %s3303_s27 = smov 0   ;;  %s3305_s28 = smov 0  }
  0x12 LB: > { %4920 = sst [smem:[#allocation17_spill]] %s3189_s15  ;;  %s3348_s29 = sadd.s32 4294967295, %s3241_s28   ;;  %s3241_s28 = sphi %s3305_s28, %s26_s28   ;;  %s3237_s27 = sphi %s3303_s27, %s5053_s27   ;;  %s3233_s26 = sphi %s3301_s26, %s5044_s26   ;;  %s3229_s25 = sphi %s3299_s25, %s5052_s25   ;;  %s3225_s24 = sphi %s3297_s24, %s5043_s24   ;;  %s3221_s23 = sphi %s3295_s23, %s5042_s23   ;;  %s3217_s22 = sphi %s3293_s22, %s5051_s22   ;;  %s3213_s21 = sphi %s3291_s21, %s5050_s21   ;;  %s3209_s20 = sphi %s3289_s20, %s5040_s20   ;;  %s3205_s19 = sphi %s3287_s19, %s5049_s19   ;;  %s3201_s18 = sphi %s3285_s18, %s5048_s18   ;;  %s3197_s17 = sphi %s3283_s17, %s5038_s17   ;;  %s3193_s16 = sphi %s3281_s16, %s5047_s16   ;;  %s3189_s15 = sphi %s3279_s15, %s5046_s15  }
  0x13   : > { %4921 = sst [smem:[#allocation18_spill]] %s3197_s17  ;;  %s41_s30 = sadd.s32 1, %s3233_s26 }
  0x14   : > { %4922 = sst [smem:[#allocation19_spill]] %s3209_s20  ;;  %p3351_p0 = scmp.ge.s32.totalorder %s41_s30, 4 }
  0x15   : > { %4923 = sst [smem:[#allocation20_spill]] %s3221_s23  ;;  %p62_p1 = scmp.eq.s32.totalorder %s3241_s28, 0 }
  0x16   : > { %4924 = sst [smem:[#allocation21_spill]] %s3225_s24  ;;  %p68_p2 = scmp.eq.s32.totalorder %s3348_s29, 0 }
  0x17   : > { %4925 = sst [smem:[#allocation22_spill]] %s3229_s25  ;;  %s82_s6 = sadd.s32 1, %s3209_s20 }
  0x18   : > { %4926 = sst [smem:[#allocation23_spill]] %s3233_s26  ;;  %s5055_s30 = smov (%p3351_p0, %s41_s30), 0 }
  0x19   : > { %4928 = sst [smem:[#allocation24_spill]] %s5055_s30  ;;  %p89_p3 = scmp.ne.s32.totalorder %s3209_s20, %s3205_s19 }
  0x1a   : > { %p95_p4 = scmp.ne.s32.totalorder %s3205_s19, %s3201_s18  ;;  %s3367_s7 = ssub.s32 %s3233_s26, %s5055_s30 }
  0x1b   : > { %p173_p5 = scmp.eq.s32.totalorder %s3348_s29, 7  ;;  %p80_p6 = scmp.eq.s32.totalorder %s3367_s7, 0 }
  0x1c   : > { %p3373_p7 = por %p89_p3, %p62_p1  ;;  %p3379_p8 = por %p95_p4, %p68_p2 }
  0x1d   : > { %s3384_s10 = scalar_select %p80_p6, %s3209_s20, %s82_s6  }
  0x1e   : > { %s4930_s9 = scalar_select %p3379_p8, 1, 0 }
  0x1f   : > { %4932 = sst [smem:[#allocation26_spill]] %s3384_s10  ;;  %p2762_p9 = scmp.lt.s32.totalorder %s3241_s28, 8 }
  0x20   : > { %4931 = sst [smem:[#allocation25_spill]] %s4930_s9  ;;  %s224_s11 = sand.u32 1, %s3241_s28  }
  0x21   : > { %s226_s12 = sand.u32 1, %s3209_s20   ;;  %s2729_s14 = sshll.u32 %s3233_s26, 4 }
  0x22   : > { %s2703_s13 = sshll.u32 %s226_s12, 10  ;;  %s4933_s1 = sld [smem:[#allocation73_spill]] }
  0x23   : > { %s228_s24 = scalar_lea.vmem [#allocation6], %s2703_s13  ;;  %p2749_p10 = pnand %p2762_p9, %p3373_p7 }
  0x24   : > { %s239_s9 = sshll.u32 %s228_s24, 4  ;;  %p2712_p11 = scmp.ge.s32.totalorder %s3241_s28, 1  ;;  %s240_s9 = int_to_ptr.vmem [resolvable:$true] %s239_s9 }
  0x25   : > { %s3398_s30 = scalar_lea.sflag [#allocation7], %s224_s11  ;;  %s3244_s6 = smov 256  }
  0x26   : > { %s3245_s24 = smov 16   ;;  %p291_p12 = scmp.lt.s32.totalorder %s3241_s28, 9 }
  0x27   : > { %s2696_s12 = sadd.s32 4294967294, %s3241_s28   ;;  %s45_s11 = sadd.s32 1, %s3237_s27 }
  0x28   : > { %s236_s4 = scalar_lea.hbm %s4933_s1, %s2729_s14  ;;  %p3402_p13 = pnand %p2712_p11, %p291_p12 }
  0x29   : > { %s237_s25 = sshll.u32 %s236_s4, 4  ;;  %s3243_s4 = smov 1024   ;;  %s238_s25 = int_to_ptr.hbm [resolvable:$true] %s237_s25 }
  0x2a   : > { %2751 = dma.hbm_to_vmem [thread:$0]  (!%p2749_p10), %s238_s25, 16384, %s240_s9, %s3398_s30, %s3243_s4, %s3244_s6, %s3245_s24  }
  0x2b   : > { %s5057_s11 = smov (!%p3351_p0, %s45_s11), %s3237_s27  ;;  %s54_s13 = sadd.s32 1, %s3221_s23 }
  0x2c   : > { %p61_p3 = scmp.ne.s32.totalorder %s3221_s23, %s3217_s22  ;;  %p47_p4 = scmp.ge.s32.totalorder %s5057_s11, 2 }
  0x2d   : > { %p67_p6 = scmp.ne.s32.totalorder %s3217_s22, %s3213_s21  ;;  %s162_s9 = sadd.s32 1, %s3197_s17 }
  0x2e   : > { %p3418_p7 = por %p62_p1, %p61_p3  ;;  %s5059_s11 = smov (%p47_p4, %s5057_s11), 0 }
  0x2f   : > { %4936 = sst [smem:[#allocation27_spill]] %s5059_s11  ;;  %p3427_p10 = por %p68_p2, %p67_p6 }
  0x30   : > { %p172_p0 = scmp.ne.s32.totalorder %s3197_s17, %s3193_s16  ;;  %s49_s14 = ssub.s32 %s3237_s27, %s5059_s11 }
  0x31   : > { %p178_p11 = scmp.ne.s32.totalorder %s3193_s16, %s3189_s15  ;;  %p52_p12 = scmp.eq.s32.totalorder %s49_s14, 0 }
  0x32   : > { %s159_s21 = sor.u32 %s3367_s7, %s49_s14  ;;  %p3440_p3 = por %p173_p5, %p172_p0 }
  0x33   : > { %p160_p1 = scmp.eq.s32.totalorder %s159_s21, 0  ;;  %p179_p2 = scmp.eq.s32.totalorder %s2696_s12, 7 }
  0x34   : > { %s3445_s4 = scalar_select %p52_p12, %s3221_s23, %s54_s13  }
  0x35   : > { %s3448_s6 = scalar_select %p160_p1, %s3197_s17, %s162_s9  }
  0x36   : > { %4939 = sst [smem:[#allocation28_spill]] %s3445_s4  ;;  %s3451_s24 = sand.u32 1, %s3221_s23  }
  0x37   : > { %4940 = sst [smem:[#allocation29_spill]] %s3448_s6  ;;  %s2699_s1 = sshll.u32 %s3451_s24, 10 }
  0x38   : > { %p3454_p4 = por %p179_p2, %p178_p11  ;;  %s2728_s14 = sshll.u32 %s3237_s27, 10 }
  0x39   : > { %s203_s21 = scalar_lea.vmem [#allocation3], %s2699_s1  ;;  %s4943_s0 = sld [smem:[#allocation72_spill]] }
  0x3a   : > { %s4941_s7 = scalar_select %p3454_p4, 1, 0 }
  0x3b   : > { %s214_s11 = sshll.u32 %s203_s21, 4  ;;  %p3466_p5 = pnand %p2762_p9, %p3418_p7  ;;  %s215_s11 = int_to_ptr.vmem [resolvable:$true] %s214_s11 }
  0x3c   : > { %4942 = sst [smem:[#allocation30_spill]] %s4941_s7  ;;  %s200_s23 = scalar_lea.sflag [#allocation4], %s3451_s24 }
  0x3d   : > { %s3246_s10 = smov 512   ;;  %s3247_s1 = smov 32  }
  0x3e   : > { %s2706_s21 = sshll.u32 %s3451_s24, 8  ;;  %s2730_s26 = sshll.u32 %s3237_s27, 8 }
  0x3f   : > { %s211_s9 = scalar_lea.hbm %s4943_s0, %s2728_s14  ;;  %s258_s25 = scalar_lea.hbm %s4861_s2, %s2730_s26 }
  0x40   : > { %s212_s12 = sshll.u32 %s211_s9, 4  ;;  %s259_s9 = sshll.u32 %s258_s25, 4  ;;  %s213_s12 = int_to_ptr.hbm [resolvable:$true] %s212_s12  ;;  %s260_s9 = int_to_ptr.hbm [resolvable:$true] %s259_s9 }
  0x41   : > { %2748 = dma.hbm_to_vmem [thread:$0]  (!%p3466_p5), %s213_s12, 16384, %s215_s11, %s200_s23, %s3246_s10, %s3246_s10, %s3247_s1  }
  0x42   : > { %s253_s0 = scalar_lea.vmem [#allocation8], %s2706_s21  ;;  %s3248_s6 = smov 128  }
  0x43   : > { %s261_s20 = sshll.u32 %s253_s0, 4  ;;  %s3249_s17 = smov 8   ;;  %s262_s20 = int_to_ptr.vmem [resolvable:$true] %s261_s20 }
  0x44   : > { %2754 = dma.hbm_to_vmem [thread:$0]  (!%p3466_p5), %s260_s9, 4096, %s262_s20, %s3398_s30, %s3248_s6, %s3248_s6, %s3249_s17  }
  0x45   : > { %s280_s23 = scalar_lea.hbm %s4862_s3, %s2730_s26  ;;  %s275_s10 = scalar_lea.vmem [#allocation9], %s2706_s21 }
  0x46   : > { %s283_s11 = sshll.u32 %s275_s10, 4  ;;  %s281_s12 = sshll.u32 %s280_s23, 4  ;;  %s284_s11 = int_to_ptr.vmem [resolvable:$true] %s283_s11  ;;  %s282_s12 = int_to_ptr.hbm [resolvable:$true] %s281_s12 }
  0x47   : > { %s272_s1 = scalar_lea.sflag [#allocation10], %s3451_s24  ;;  %295 = sbr.rel (%p3402_p13) target bundleno = 1123 (0x463), region = 36 }
  0x48   : > { %2757 = dma.hbm_to_vmem [thread:$0]  (!%p3466_p5), %s282_s12, 4096, %s284_s11, %s272_s1, %s3248_s6, %s3248_s6, %s3249_s17  }
  0x4c   : > { %s297_s0 = sand.u32 1, %s3217_s22  }
  0x4d   : > { %s2713_s14 = sshll.u32 %s297_s0, 10  ;;  %s298_s20 = scalar_lea.sflag [#allocation4], %s297_s0 }
  0x4e   : > { %s3490_s30 = scalar_lea.vmem [#allocation3], %s2713_s14 }
  0x4f   : > { %3168 = dma.done.wait (%p3427_p10), %s298_s20, 16384  }
  0x50   : > { %3170 = vsyncadd (%p3427_p10), %s298_s20, 4294950912  ;;  %s307_s4 = sand.u32 1, %s3348_s29   ;;  %s309_s17 = sand.u32 1, %s3205_s19  }
  0x51   : > { %s2714_s6 = sshll.u32 %s309_s17, 10  ;;  %s308_s8 = scalar_lea.sflag [#allocation7], %s307_s4 }
  0x52   : > { %s3498_s24 = scalar_lea.vmem [#allocation6], %s2714_s6 }
  0x53   : > { %3172 = dma.done.wait (%p3379_p8), %s308_s8, 16384  }
  0x54   : > { %3174 = vsyncadd (%p3379_p8), %s308_s8, 4294950912  ;;  %s2715_s7 = sshll.u32 %s297_s0, 8 }
  0x55   : > { %s3504_s21 = scalar_lea.vmem [#allocation8], %s2715_s7 }
  0x56   : > { %3176 = dma.done.wait (%p3427_p10), %s308_s8, 4096  }
  0x57   : > { %3178 = vsyncadd (%p3427_p10), %s308_s8, 4294963200  ;;  %s328_s29 = scalar_lea.sflag [#allocation10], %s297_s0  ;;  %s3510_s26 = scalar_lea.vmem [#allocation9], %s2715_s7 }
  0x58   : > { %3180 = dma.done.wait (%p3427_p10), %s328_s29, 4096  }
  0x59   : > { %3182 = vsyncadd (%p3427_p10), %s328_s29, 4294963200  ;;  %s369_s13 = sand.u32 1, %s3193_s16   ;;  %v670_v0 = vld [vmem:[%s3498_s24 + $0x2f0] sm:$0xff]  ;;  %v668_v1 = vld [vmem:[%s3498_s24 + $0x2e0] sm:$0xff]  ;;  %s4953_s5 = sld [smem:[#allocation21_spill]] }
  0x5a   : > { %s3519_s25 = sshll.u32 %s369_s13, 8  ;;  %v702_v2 = vld [vmem:[%s3498_s24 + $0x3f0] sm:$0xff]  ;;  %994 = vmatpush.msra.mxu2 %v670_v0  ;;  %v700_v6 = vld [vmem:[%s3498_s24 + $0x3e0] sm:$0xff]  ;;  %v451_v63 = vld [vmem:[%s3490_s30 + $0x18] sm:$0xff] }
  0x5b   : > { %1107 = vmatpush.msra.mxu3 %v702_v2  ;;  %v606_v3 = vld [vmem:[%s3498_s24 + $0xf0] sm:$0xff]  ;;  %v604_v7 = vld [vmem:[%s3498_s24 + $0xe0] sm:$0xff]  ;;  %v671_v0 = vld [vmem:[%s3498_s24 + $0x2f8] sm:$0xff]  ;;  %s4066_s9 = scalar_lea.vmem [#allocation11], %s3519_s25 }
  0x5c   : > { %v638_v4 = vld [vmem:[%s3498_s24 + $0x1f0] sm:$0xff]  ;;  %768 = vmatpush.msra.mxu0 %v606_v3  ;;  %v636_v8 = vld [vmem:[%s3498_s24 + $0x1e0] sm:$0xff]  ;;  %995 = vmatpush.msra.mxu2 %v668_v1  ;;  %v703_v1 = vld [vmem:[%s3498_s24 + $0x3f8] sm:$0xff] }
  0x5d   : > { %v666_v5 = vld [vmem:[%s3498_s24 + $0x2d0] sm:$0xff]  ;;  %881 = vmatpush.msra.mxu1 %v638_v4  ;;  %1108 = vmatpush.msra.mxu3 %v700_v6  ;;  %v664_v11 = vld [vmem:[%s3498_s24 + $0x2c0] sm:$0xff]  ;;  %v607_v6 = vld [vmem:[%s3498_s24 + $0xf8] sm:$0xff] }
  0x5e   : > { %v698_v9 = vld [vmem:[%s3498_s24 + $0x3d0] sm:$0xff]  ;;  %769 = vmatpush.msra.mxu0 %v604_v7  ;;  %v696_v13 = vld [vmem:[%s3498_s24 + $0x3c0] sm:$0xff]  ;;  %996 = vmatpush.msra.mxu2 %v666_v5  ;;  %v449_v5 = vld [vmem:[%s3490_s30 + $0x8] sm:$0xff] }
  0x5f   : > { %v602_v10 = vld [vmem:[%s3498_s24 + $0xd0] sm:$0xff]  ;;  %882 = vmatpush.msra.mxu1 %v636_v8  ;;  %1109 = vmatpush.msra.mxu3 %v698_v9  ;;  %v600_v14 = vld [vmem:[%s3498_s24 + $0xc0] sm:$0xff]  ;;  %v639_v7 = vld [vmem:[%s3498_s24 + $0x1f8] sm:$0xff]  ;;  %p1800_p8 = scmp.lt.s32.totalorder %s4953_s5, 3 }
  0x60   : > { %v634_v12 = vld [vmem:[%s3498_s24 + $0x1d0] sm:$0xff]  ;;  %v632_v15 = vld [vmem:[%s3498_s24 + $0x1c0] sm:$0xff]  ;;  %770 = vmatpush.msra.mxu0 %v602_v10  ;;  %997 = vmatpush.msra.mxu2 %v664_v11  ;;  %v669_v8 = vld [vmem:[%s3498_s24 + $0x2e8] sm:$0xff] }
  0x61   : > { %883 = vmatpush.msra.mxu1 %v634_v12  ;;  %v662_v16 = vld [vmem:[%s3498_s24 + $0x2b0] sm:$0xff]  ;;  %1110 = vmatpush.msra.mxu3 %v696_v13  ;;  %v660_v20 = vld [vmem:[%s3498_s24 + $0x2a0] sm:$0xff]  ;;  %v701_v9 = vld [vmem:[%s3498_s24 + $0x3e8] sm:$0xff] }
  0x62   : > { %v694_v17 = vld [vmem:[%s3498_s24 + $0x3b0] sm:$0xff]  ;;  %771 = vmatpush.msra.mxu0 %v600_v14  ;;  %v692_v21 = vld [vmem:[%s3498_s24 + $0x3a0] sm:$0xff]  ;;  %998 = vmatpush.msra.mxu2 %v662_v16  ;;  %v605_v10 = vld [vmem:[%s3498_s24 + $0xe8] sm:$0xff] }
  0x63   : > { %v598_v18 = vld [vmem:[%s3498_s24 + $0xb0] sm:$0xff]  ;;  %884 = vmatpush.msra.mxu1 %v632_v15  ;;  %1111 = vmatpush.msra.mxu3 %v694_v17  ;;  %v596_v22 = vld [vmem:[%s3498_s24 + $0xa0] sm:$0xff]  ;;  %v637_v11 = vld [vmem:[%s3498_s24 + $0x1e8] sm:$0xff] }
  0x64   : > { %v630_v19 = vld [vmem:[%s3498_s24 + $0x1b0] sm:$0xff]  ;;  %v628_v23 = vld [vmem:[%s3498_s24 + $0x1a0] sm:$0xff]  ;;  %772 = vmatpush.msra.mxu0 %v598_v18  ;;  %999 = vmatpush.msra.mxu2 %v660_v20  ;;  %v667_v12 = vld [vmem:[%s3498_s24 + $0x2d8] sm:$0xff] }
  0x65   : > { %885 = vmatpush.msra.mxu1 %v630_v19  ;;  %v658_v24 = vld [vmem:[%s3498_s24 + $0x290] sm:$0xff]  ;;  %1112 = vmatpush.msra.mxu3 %v692_v21  ;;  %v656_v28 = vld [vmem:[%s3498_s24 + $0x280] sm:$0xff]  ;;  %v699_v13 = vld [vmem:[%s3498_s24 + $0x3d8] sm:$0xff] }
  0x66   : > { %v690_v25 = vld [vmem:[%s3498_s24 + $0x390] sm:$0xff]  ;;  %773 = vmatpush.msra.mxu0 %v596_v22  ;;  %v688_v29 = vld [vmem:[%s3498_s24 + $0x380] sm:$0xff]  ;;  %1000 = vmatpush.msra.mxu2 %v658_v24  ;;  %v455_v15 = vld [vmem:[%s3490_s30 + $0x38] sm:$0xff] }
  0x67   : > { %v594_v26 = vld [vmem:[%s3498_s24 + $0x90] sm:$0xff]  ;;  %886 = vmatpush.msra.mxu1 %v628_v23  ;;  %1113 = vmatpush.msra.mxu3 %v690_v25  ;;  %v592_v30 = vld [vmem:[%s3498_s24 + $0x80] sm:$0xff]  ;;  %v603_v16 = vld [vmem:[%s3498_s24 + $0xd8] sm:$0xff] }
  0x68   : > { %v626_v27 = vld [vmem:[%s3498_s24 + $0x190] sm:$0xff]  ;;  %v624_v31 = vld [vmem:[%s3498_s24 + $0x180] sm:$0xff]  ;;  %774 = vmatpush.msra.mxu0 %v594_v26  ;;  %1001 = vmatpush.msra.mxu2 %v656_v28  ;;  %v635_v17 = vld [vmem:[%s3498_s24 + $0x1d8] sm:$0xff] }
  0x69   : > { %887 = vmatpush.msra.mxu1 %v626_v27  ;;  %v654_v32 = vld [vmem:[%s3498_s24 + $0x270] sm:$0xff]  ;;  %1114 = vmatpush.msra.mxu3 %v688_v29  ;;  %v652_v36 = vld [vmem:[%s3498_s24 + $0x260] sm:$0xff]  ;;  %v453_v19 = vld [vmem:[%s3490_s30 + $0x28] sm:$0xff] }
  0x6a   : > { %v686_v33 = vld [vmem:[%s3498_s24 + $0x370] sm:$0xff]  ;;  %775 = vmatpush.msra.mxu0 %v592_v30  ;;  %v684_v37 = vld [vmem:[%s3498_s24 + $0x360] sm:$0xff]  ;;  %1002 = vmatpush.msra.mxu2 %v654_v32  ;;  %v459_v21 = vld [vmem:[%s3490_s30 + $0x58] sm:$0xff] }
  0x6b   : > { %v590_v34 = vld [vmem:[%s3498_s24 + $0x70] sm:$0xff]  ;;  %888 = vmatpush.msra.mxu1 %v624_v31  ;;  %1115 = vmatpush.msra.mxu3 %v686_v33  ;;  %v588_v38 = vld [vmem:[%s3498_s24 + $0x60] sm:$0xff]  ;;  %v457_v23 = vld [vmem:[%s3490_s30 + $0x48] sm:$0xff] }
  0x6c   : > { %v622_v35 = vld [vmem:[%s3498_s24 + $0x170] sm:$0xff]  ;;  %v620_v39 = vld [vmem:[%s3498_s24 + $0x160] sm:$0xff]  ;;  %776 = vmatpush.msra.mxu0 %v590_v34  ;;  %1003 = vmatpush.msra.mxu2 %v652_v36  ;;  %v665_v24 = vld [vmem:[%s3498_s24 + $0x2c8] sm:$0xff] }
  0x6d   : > { %889 = vmatpush.msra.mxu1 %v622_v35  ;;  %v650_v40 = vld [vmem:[%s3498_s24 + $0x250] sm:$0xff]  ;;  %1116 = vmatpush.msra.mxu3 %v684_v37  ;;  %v648_v44 = vld [vmem:[%s3498_s24 + $0x240] sm:$0xff]  ;;  %v697_v25 = vld [vmem:[%s3498_s24 + $0x3c8] sm:$0xff] }
  0x6e   : > { %v682_v41 = vld [vmem:[%s3498_s24 + $0x350] sm:$0xff]  ;;  %777 = vmatpush.msra.mxu0 %v588_v38  ;;  %v680_v45 = vld [vmem:[%s3498_s24 + $0x340] sm:$0xff]  ;;  %1004 = vmatpush.msra.mxu2 %v650_v40  ;;  %v601_v26 = vld [vmem:[%s3498_s24 + $0xc8] sm:$0xff] }
  0x6f   : > { %v586_v42 = vld [vmem:[%s3498_s24 + $0x50] sm:$0xff]  ;;  %890 = vmatpush.msra.mxu1 %v620_v39  ;;  %1117 = vmatpush.msra.mxu3 %v682_v41  ;;  %v584_v46 = vld [vmem:[%s3498_s24 + $0x40] sm:$0xff]  ;;  %v633_v27 = vld [vmem:[%s3498_s24 + $0x1c8] sm:$0xff] }
  0x70   : > { %v618_v43 = vld [vmem:[%s3498_s24 + $0x150] sm:$0xff]  ;;  %v616_v47 = vld [vmem:[%s3498_s24 + $0x140] sm:$0xff]  ;;  %778 = vmatpush.msra.mxu0 %v586_v42  ;;  %1005 = vmatpush.msra.mxu2 %v648_v44  ;;  %v463_v29 = vld [vmem:[%s3490_s30 + $0x78] sm:$0xff] }
  0x71   : > { %891 = vmatpush.msra.mxu1 %v618_v43  ;;  %v646_v48 = vld [vmem:[%s3498_s24 + $0x230] sm:$0xff]  ;;  %1118 = vmatpush.msra.mxu3 %v680_v45  ;;  %v644_v52 = vld [vmem:[%s3498_s24 + $0x220] sm:$0xff]  ;;  %v461_v31 = vld [vmem:[%s3490_s30 + $0x68] sm:$0xff] }
  0x72   : > { %v678_v49 = vld [vmem:[%s3498_s24 + $0x330] sm:$0xff]  ;;  %779 = vmatpush.msra.mxu0 %v584_v46  ;;  %v676_v53 = vld [vmem:[%s3498_s24 + $0x320] sm:$0xff]  ;;  %1006 = vmatpush.msra.mxu2 %v646_v48  ;;  %v467_v33 = vld [vmem:[%s3490_s30 + $0x98] sm:$0xff] }
  0x73   : > { %v582_v50 = vld [vmem:[%s3498_s24 + $0x30] sm:$0xff]  ;;  %892 = vmatpush.msra.mxu1 %v616_v47  ;;  %1119 = vmatpush.msra.mxu3 %v678_v49  ;;  %v580_v54 = vld [vmem:[%s3498_s24 + $0x20] sm:$0xff]  ;;  %v465_v35 = vld [vmem:[%s3490_s30 + $0x88] sm:$0xff] }
  0x74   : > { %v614_v51 = vld [vmem:[%s3498_s24 + $0x130] sm:$0xff]  ;;  %v612_v55 = vld [vmem:[%s3498_s24 + $0x120] sm:$0xff]  ;;  %780 = vmatpush.msra.mxu0 %v582_v50  ;;  %1007 = vmatpush.msra.mxu2 %v644_v52  ;;  %v663_v36 = vld [vmem:[%s3498_s24 + $0x2b8] sm:$0xff] }
  0x75   : > { %893 = vmatpush.msra.mxu1 %v614_v51  ;;  %v642_v56 = vld [vmem:[%s3498_s24 + $0x210] sm:$0xff]  ;;  %1120 = vmatpush.msra.mxu3 %v676_v53  ;;  %v640_v60 = vld [vmem:[%s3498_s24 + $0x200] sm:$0xff]  ;;  %v695_v37 = vld [vmem:[%s3498_s24 + $0x3b8] sm:$0xff] }
  0x76   : > { %v674_v57 = vld [vmem:[%s3498_s24 + $0x310] sm:$0xff]  ;;  %781 = vmatpush.msra.mxu0 %v580_v54  ;;  %v672_v61 = vld [vmem:[%s3498_s24 + $0x300] sm:$0xff]  ;;  %1008 = vmatpush.msra.mxu2 %v642_v56  ;;  %v599_v38 = vld [vmem:[%s3498_s24 + $0xb8] sm:$0xff] }
  0x77   : > { %v578_v58 = vld [vmem:[%s3498_s24 + $0x10] sm:$0xff]  ;;  %894 = vmatpush.msra.mxu1 %v612_v55  ;;  %1121 = vmatpush.msra.mxu3 %v674_v57  ;;  %v576_v2 = vld [vmem:[%s3498_s24] sm:$0xff]  ;;  %v631_v39 = vld [vmem:[%s3498_s24 + $0x1b8] sm:$0xff] }
  0x78   : > { %v610_v59 = vld [vmem:[%s3498_s24 + $0x110] sm:$0xff]  ;;  %782 = vmatpush.msra.mxu0 %v578_v58  ;;  %1009 = vmatpush.msra.mxu2 %v640_v60  ;;  %v608_v3 = vld [vmem:[%s3498_s24 + $0x100] sm:$0xff]  ;;  %v471_v41 = vld [vmem:[%s3490_s30 + $0xb8] sm:$0xff] }
  0x79   : > { %v450_v62 = vld [vmem:[%s3490_s30 + $0x10] sm:$0xff]  ;;  %895 = vmatpush.msra.mxu1 %v610_v59  ;;  %1122 = vmatpush.msra.mxu3 %v672_v61  ;;  %v448_v4 = vld [vmem:[%s3490_s30] sm:$0xff]  ;;  %v469_v43 = vld [vmem:[%s3490_s30 + $0xa8] sm:$0xff] }
  0x7a   : > { %1010 = vmatmul.f32.vlgmr.msra.gmra.mxu2 %v450_v62  ;;  %1123 = vmatmul.f32.vlgmr.msra.gmra.mxu3 %v451_v63  ;;  %v454_v14 = vld [vmem:[%s3490_s30 + $0x30] sm:$0xff]  ;;  %v452_v18 = vld [vmem:[%s3490_s30 + $0x20] sm:$0xff]  ;;  %v475_v45 = vld [vmem:[%s3490_s30 + $0xd8] sm:$0xff] }
  0x7b   : > { %1446 = vmatpush.msrb.mxu2 %v671_v0  ;;  %1559 = vmatpush.msrb.mxu3 %v703_v1  ;;  %v458_v20 = vld [vmem:[%s3490_s30 + $0x50] sm:$0xff]  ;;  %v456_v22 = vld [vmem:[%s3490_s30 + $0x40] sm:$0xff]  ;;  %v473_v47 = vld [vmem:[%s3490_s30 + $0xc8] sm:$0xff] }
  0x7c   : > { %783 = vmatpush.msra.mxu0 %v576_v2  ;;  %896 = vmatpush.msra.mxu1 %v608_v3  ;;  %v3614_v28 = vld [vmem:[%s3490_s30 + $0x70] sm:$0xff]  ;;  %v460_v30 = vld [vmem:[%s3490_s30 + $0x60] sm:$0xff]  ;;  %v661_v48 = vld [vmem:[%s3498_s24 + $0x2a8] sm:$0xff] }
  0x7d   : > { %784 = vmatmul.f32.vlgmr.msra.gmra.mxu0 %v448_v4  ;;  %897 = vmatmul.f32.vlgmr.msra.gmra.mxu1 %v449_v5  ;;  %v466_v32 = vld [vmem:[%s3490_s30 + $0x90] sm:$0xff]  ;;  %v464_v34 = vld [vmem:[%s3490_s30 + $0x80] sm:$0xff]  ;;  %v693_v49 = vld [vmem:[%s3498_s24 + $0x3a8] sm:$0xff] }
  0x7e   : > { %1220 = vmatpush.msrb.mxu0 %v607_v6  ;;  %1333 = vmatpush.msrb.mxu1 %v639_v7  ;;  %v470_v40 = vld [vmem:[%s3490_s30 + $0xb0] sm:$0xff]  ;;  %v468_v42 = vld [vmem:[%s3490_s30 + $0xa0] sm:$0xff]  ;;  %v597_v50 = vld [vmem:[%s3498_s24 + $0xa8] sm:$0xff] }
  0x7f   : > { %1447 = vmatpush.msrb.mxu2 %v669_v8  ;;  %1560 = vmatpush.msrb.mxu3 %v701_v9  ;;  %v474_v44 = vld [vmem:[%s3490_s30 + $0xd0] sm:$0xff]  ;;  %v472_v46 = vld [vmem:[%s3490_s30 + $0xc0] sm:$0xff]  ;;  %v629_v51 = vld [vmem:[%s3498_s24 + $0x1a8] sm:$0xff] }
  0x80   : > { %1221 = vmatpush.msrb.mxu0 %v605_v10  ;;  %1334 = vmatpush.msrb.mxu1 %v637_v11  ;;  %v478_v52 = vld [vmem:[%s3490_s30 + $0xf0] sm:$0xff]  ;;  %v479_v53 = vld [vmem:[%s3490_s30 + $0xf8] sm:$0xff]  ;;  %v476_v54 = vld [vmem:[%s3490_s30 + $0xe0] sm:$0xff] }
  0x81   : > { %1448 = vmatpush.msrb.mxu2 %v667_v12  ;;  %1561 = vmatpush.msrb.mxu3 %v699_v13  ;;  %v477_v55 = vld [vmem:[%s3490_s30 + $0xe8] sm:$0xff]  ;;  %v482_v56 = vld [vmem:[%s3490_s30 + $0x110] sm:$0xff]  ;;  %v483_v57 = vld [vmem:[%s3490_s30 + $0x118] sm:$0xff] }
  0x82   : > { %1013 = vmatmul.f32.gmra.mxu2 %v454_v14  ;;  %1126 = vmatmul.f32.gmra.mxu3 %v455_v15  ;;  %v480_v58 = vld [vmem:[%s3490_s30 + $0x100] sm:$0xff]  ;;  %v481_v59 = vld [vmem:[%s3490_s30 + $0x108] sm:$0xff]  ;;  %v659_v60 = vld [vmem:[%s3498_s24 + $0x298] sm:$0xff] }
  0x83   : > { %1222 = vmatpush.msrb.mxu0 %v603_v16  ;;  %1335 = vmatpush.msrb.mxu1 %v635_v17  ;;  %v691_v61 = vld [vmem:[%s3498_s24 + $0x398] sm:$0xff]  ;;  %v486_v0 = vld [vmem:[%s3490_s30 + $0x130] sm:$0xff]  ;;  %v484_v2 = vld [vmem:[%s3490_s30 + $0x120] sm:$0xff] }
  0x84   : > { %1449 = vmatpush.msrb.mxu2 %v665_v24  ;;  %1562 = vmatpush.msrb.mxu3 %v697_v25  ;;  %v595_v62 = vld [vmem:[%s3498_s24 + $0x98] sm:$0xff]  ;;  %v485_v3 = vld [vmem:[%s3490_s30 + $0x128] sm:$0xff]  ;;  %v490_v4 = vld [vmem:[%s3490_s30 + $0x150] sm:$0xff] }
  0x85   : > { %787 = vmatmul.f32.gmra.mxu0 %v452_v18  ;;  %900 = vmatmul.f32.gmra.mxu1 %v453_v19  ;;  %v627_v63 = vld [vmem:[%s3498_s24 + $0x198] sm:$0xff]  ;;  %v488_v6 = vld [vmem:[%s3490_s30 + $0x140] sm:$0xff]  ;;  %v489_v7 = vld [vmem:[%s3490_s30 + $0x148] sm:$0xff] }
  0x86   : > { %1223 = vmatpush.msrb.mxu0 %v601_v26  ;;  %1336 = vmatpush.msrb.mxu1 %v633_v27  ;;  %v487_v1 = vld [vmem:[%s3490_s30 + $0x138] sm:$0xff]  ;;  %v657_v8 = vld [vmem:[%s3498_s24 + $0x288] sm:$0xff]  ;;  %v494_v12 = vld [vmem:[%s3490_s30 + $0x170] sm:$0xff] }
  0x87   : > { %1450 = vmatpush.msrb.mxu2 %v663_v36  ;;  %1563 = vmatpush.msrb.mxu3 %v695_v37  ;;  %v491_v5 = vld [vmem:[%s3490_s30 + $0x158] sm:$0xff]  ;;  %v689_v9 = vld [vmem:[%s3498_s24 + $0x388] sm:$0xff]  ;;  %v492_v14 = vld [vmem:[%s3490_s30 + $0x160] sm:$0xff] }
  0x88   : > { %1224 = vmatpush.msrb.mxu0 %v599_v38  ;;  %1337 = vmatpush.msrb.mxu1 %v631_v39  ;;  %v593_v10 = vld [vmem:[%s3498_s24 + $0x88] sm:$0xff]  ;;  %v495_v13 = vld [vmem:[%s3490_s30 + $0x178] sm:$0xff]  ;;  %v498_v16 = vld [vmem:[%s3490_s30 + $0x190] sm:$0xff] }
  0x89   : > { %1451 = vmatpush.msrb.mxu2 %v661_v48  ;;  %1564 = vmatpush.msrb.mxu3 %v693_v49  ;;  %v625_v11 = vld [vmem:[%s3498_s24 + $0x188] sm:$0xff]  ;;  %v499_v17 = vld [vmem:[%s3490_s30 + $0x198] sm:$0xff]  ;;  %v496_v18 = vld [vmem:[%s3490_s30 + $0x180] sm:$0xff] }
  0x8a   : > { %1016 = vmatmul.f32.gmra.mxu2 %v458_v20  ;;  %1129 = vmatmul.f32.gmra.mxu3 %v459_v21  ;;  %v493_v15 = vld [vmem:[%s3490_s30 + $0x168] sm:$0xff]  ;;  %v655_v20 = vld [vmem:[%s3498_s24 + $0x278] sm:$0xff]  ;;  %v502_v24 = vld [vmem:[%s3490_s30 + $0x1b0] sm:$0xff] }
  0x8b   : > { %1225 = vmatpush.msrb.mxu0 %v597_v50  ;;  %1338 = vmatpush.msrb.mxu1 %v629_v51  ;;  %v497_v19 = vld [vmem:[%s3490_s30 + $0x188] sm:$0xff]  ;;  %v687_v21 = vld [vmem:[%s3498_s24 + $0x378] sm:$0xff]  ;;  %v500_v26 = vld [vmem:[%s3490_s30 + $0x1a0] sm:$0xff] }
  0x8c   : > { %1452 = vmatpush.msrb.mxu2 %v659_v60  ;;  %1565 = vmatpush.msrb.mxu3 %v691_v61  ;;  %v503_v25 = vld [vmem:[%s3490_s30 + $0x1b8] sm:$0xff]  ;;  %v501_v27 = vld [vmem:[%s3490_s30 + $0x1a8] sm:$0xff]  ;;  %v510_v37 = vld [vmem:[%s3490_s30 + $0x1f0] sm:$0xff] }
  0x8d   : > { %790 = vmatmul.f32.gmra.mxu0 %v456_v22  ;;  %903 = vmatmul.f32.gmra.mxu1 %v457_v23  ;;  %v591_v22 = vld [vmem:[%s3498_s24 + $0x78] sm:$0xff]  ;;  %v621_v36 = vld [vmem:[%s3498_s24 + $0x168] sm:$0xff]  ;;  %v508_v39 = vld [vmem:[%s3490_s30 + $0x1e0] sm:$0xff] }
  0x8e   : > { %1226 = vmatpush.msrb.mxu0 %v595_v62  ;;  %1339 = vmatpush.msrb.mxu1 %v627_v63  ;;  %v623_v23 = vld [vmem:[%s3498_s24 + $0x178] sm:$0xff]  ;;  %v516_v60 = vld [vmem:[%s3490_s30 + $0x220] sm:$0xff]  ;;  %v517_v61 = vld [vmem:[%s3490_s30 + $0x228] sm:$0xff] }
  0x8f   : > { %1453 = vmatpush.msrb.mxu2 %v657_v8  ;;  %1566 = vmatpush.msrb.mxu3 %v689_v9  ;;  %v511_v38 = vld [vmem:[%s3490_s30 + $0x1f8] sm:$0xff]  ;;  %v521_v8 = vld [vmem:[%s3490_s30 + $0x248] sm:$0xff] }
  0x90   : > { %1227 = vmatpush.msrb.mxu0 %v593_v10  ;;  %1340 = vmatpush.msrb.mxu1 %v625_v11  ;;  %v651_v48 = vld [vmem:[%s3498_s24 + $0x258] sm:$0xff]  ;;  %v649_v10 = vld [vmem:[%s3498_s24 + $0x248] sm:$0xff] }
  0x91   : > { %1454 = vmatpush.msrb.mxu2 %v655_v20  ;;  %1567 = vmatpush.msrb.mxu3 %v687_v21  ;;  %v683_v49 = vld [vmem:[%s3498_s24 + $0x358] sm:$0xff]  ;;  %v681_v11 = vld [vmem:[%s3498_s24 + $0x348] sm:$0xff] }
  0x92   : > { %1019 = vmatmul.f32.gmra.mxu2 %v3614_v28  ;;  %1132 = vmatmul.f32.gmra.mxu3 %v463_v29  ;;  %v506_v29 = vld [vmem:[%s3490_s30 + $0x1d0] sm:$0xff] }
  0x93   : > { %1228 = vmatpush.msrb.mxu0 %v591_v22  ;;  %1341 = vmatpush.msrb.mxu1 %v623_v23  ;;  %v3721_v22 = vld [vmem:[%s3490_s30 + $0x260] sm:$0xff]  ;;  %v3724_v23 = vld [vmem:[%s3490_s30 + $0x268] sm:$0xff] }
  0x95   : > { %793 = vmatmul.f32.gmra.mxu0 %v460_v30  ;;  %906 = vmatmul.f32.gmra.mxu1 %v461_v31  ;;  %v507_v30 = vld [vmem:[%s3490_s30 + $0x1d8] sm:$0xff]  ;;  %v504_v31 = vld [vmem:[%s3490_s30 + $0x1c0] sm:$0xff] }
  0x96   : > { %1342 = vmatpush.msrb.mxu1 %v621_v36 }
  0x9a   : > { %1022 = vmatmul.f32.gmra.mxu2 %v466_v32  ;;  %1135 = vmatmul.f32.gmra.mxu3 %v467_v33  ;;  %v505_v32 = vld [vmem:[%s3490_s30 + $0x1c8] sm:$0xff] }
  0x9b   : > { %v653_v33 = vld [vmem:[%s3498_s24 + $0x268] sm:$0xff] }
  0x9c   : > { %1455 = vmatpush.msrb.mxu2 %v653_v33 }
  0x9d   : > { %796 = vmatmul.f32.gmra.mxu0 %v464_v34  ;;  %909 = vmatmul.f32.gmra.mxu1 %v465_v35  ;;  %v685_v34 = vld [vmem:[%s3498_s24 + $0x368] sm:$0xff] }
  0x9e   : > { %1568 = vmatpush.msrb.mxu3 %v685_v34  ;;  %v589_v35 = vld [vmem:[%s3498_s24 + $0x68] sm:$0xff]  ;;  %1456 = vmatpush.msrb.mxu2 %v651_v48  ;;  %v3737_v34 = vld [vmem:[%s3490_s30 + $0x280] sm:$0xff] }
  0x9f   : > { %1229 = vmatpush.msrb.mxu0 %v589_v35  ;;  %v3740_v35 = vld [vmem:[%s3490_s30 + $0x288] sm:$0xff] }
  0xa0   : > { %1569 = vmatpush.msrb.mxu3 %v683_v49  ;;  %1457 = vmatpush.msrb.mxu2 %v649_v10  ;;  %v3757_v49 = vld [vmem:[%s3490_s30 + $0x2a0] sm:$0xff] }
  0xa2   : > { %1025 = vmatmul.f32.gmra.mxu2 %v470_v40  ;;  %1138 = vmatmul.f32.gmra.mxu3 %v471_v41  ;;  %v509_v40 = vld [vmem:[%s3490_s30 + $0x1e8] sm:$0xff]  ;;  %v514_v41 = vld [vmem:[%s3490_s30 + $0x210] sm:$0xff] }
  0xa3   : > { %1570 = vmatpush.msrb.mxu3 %v681_v11  ;;  %v3793_v11 = vld [vmem:[%s3490_s30 + $0x2e0] sm:$0xff] }
  0xa5   : > { %799 = vmatmul.f32.gmra.mxu0 %v468_v42  ;;  %912 = vmatmul.f32.gmra.mxu1 %v469_v43  ;;  %v515_v42 = vld [vmem:[%s3490_s30 + $0x218] sm:$0xff] }
  0xaa   : > { %1028 = vmatmul.f32.gmra.mxu2 %v474_v44  ;;  %1141 = vmatmul.f32.gmra.mxu3 %v475_v45  ;;  %v512_v45 = vld [vmem:[%s3490_s30 + $0x200] sm:$0xff] }
  0xad   : > { %802 = vmatmul.f32.gmra.mxu0 %v472_v46  ;;  %915 = vmatmul.f32.gmra.mxu1 %v473_v47  ;;  %v513_v46 = vld [vmem:[%s3490_s30 + $0x208] sm:$0xff] }
  0xb2   : > { %1031 = vmatmul.f32.gmra.mxu2 %v478_v52  ;;  %1144 = vmatmul.f32.gmra.mxu3 %v479_v53  ;;  %v587_v53 = vld [vmem:[%s3498_s24 + $0x58] sm:$0xff] }
  0xb3   : > { %1230 = vmatpush.msrb.mxu0 %v587_v53 }
  0xb5   : > { %805 = vmatmul.f32.gmra.mxu0 %v476_v54  ;;  %918 = vmatmul.f32.gmra.mxu1 %v477_v55  ;;  %v619_v54 = vld [vmem:[%s3498_s24 + $0x158] sm:$0xff]  ;;  %v518_v55 = vld [vmem:[%s3490_s30 + $0x230] sm:$0xff] }
  0xb6   : > { %1343 = vmatpush.msrb.mxu1 %v619_v54 }
  0xba   : > { %1034 = vmatmul.f32.gmra.mxu2 %v482_v56  ;;  %1147 = vmatmul.f32.gmra.mxu3 %v483_v57  ;;  %v519_v56 = vld [vmem:[%s3490_s30 + $0x238] sm:$0xff] }
  0xbd   : > { %808 = vmatmul.f32.gmra.mxu0 %v480_v58  ;;  %921 = vmatmul.f32.gmra.mxu1 %v481_v59 }
  0xc2   : > { %1037 = vmatmul.f32.gmra.mxu2 %v486_v0  ;;  %1150 = vmatmul.f32.gmra.mxu3 %v487_v1 }
  0xc5   : > { %811 = vmatmul.f32.gmra.mxu0 %v484_v2  ;;  %924 = vmatmul.f32.gmra.mxu1 %v485_v3  ;;  %v522_v2 = vld [vmem:[%s3490_s30 + $0x250] sm:$0xff]  ;;  %v523_v3 = vld [vmem:[%s3490_s30 + $0x258] sm:$0xff] }
  0xca   : > { %1040 = vmatmul.f32.gmra.mxu2 %v490_v4  ;;  %1153 = vmatmul.f32.gmra.mxu3 %v491_v5 }
  0xcd   : > { %814 = vmatmul.f32.gmra.mxu0 %v488_v6  ;;  %927 = vmatmul.f32.gmra.mxu1 %v489_v7  ;;  %v520_v7 = vld [vmem:[%s3490_s30 + $0x240] sm:$0xff] }
  0xd2   : > { %1043 = vmatmul.f32.gmra.mxu2 %v494_v12  ;;  %1156 = vmatmul.f32.gmra.mxu3 %v495_v13 }
  0xd5   : > { %817 = vmatmul.f32.gmra.mxu0 %v492_v14  ;;  %930 = vmatmul.f32.gmra.mxu1 %v493_v15  ;;  %v585_v15 = vld [vmem:[%s3498_s24 + $0x48] sm:$0xff] }
  0xd6   : > { %1231 = vmatpush.msrb.mxu0 %v585_v15 }
  0xda   : > { %1046 = vmatmul.f32.gmra.mxu2 %v498_v16  ;;  %1159 = vmatmul.f32.gmra.mxu3 %v499_v17  ;;  %v617_v16 = vld [vmem:[%s3498_s24 + $0x148] sm:$0xff]  ;;  %v3713_v17 = vld [vmem:[%s3490_s30 + $0x270] sm:$0xff] }
  0xdb   : > { %1344 = vmatpush.msrb.mxu1 %v617_v16 }
  0xdd   : > { %820 = vmatmul.f32.gmra.mxu0 %v496_v18  ;;  %933 = vmatmul.f32.gmra.mxu1 %v497_v19  ;;  %v3716_v18 = vld [vmem:[%s3490_s30 + $0x278] sm:$0xff] }
  0xe2   : > { %1049 = vmatmul.f32.gmra.mxu2 %v502_v24  ;;  %1162 = vmatmul.f32.gmra.mxu3 %v503_v25 }
  0xe5   : > { %823 = vmatmul.f32.gmra.mxu0 %v500_v26  ;;  %936 = vmatmul.f32.gmra.mxu1 %v501_v27 }
  0xea   : > { %1052 = vmatmul.f32.gmra.mxu2 %v506_v29  ;;  %1165 = vmatmul.f32.gmra.mxu3 %v507_v30  ;;  %v3729_v29 = vld [vmem:[%s3490_s30 + $0x290] sm:$0xff]  ;;  %v3732_v30 = vld [vmem:[%s3490_s30 + $0x298] sm:$0xff] }
  0xed   : > { %826 = vmatmul.f32.gmra.mxu0 %v504_v31  ;;  %939 = vmatmul.f32.gmra.mxu1 %v505_v32 }
  0xf2   : > { %1055 = vmatmul.f32.gmra.mxu2 %v510_v37  ;;  %1168 = vmatmul.f32.gmra.mxu3 %v511_v38  ;;  %v647_v37 = vld [vmem:[%s3498_s24 + $0x238] sm:$0xff] }
  0xf3   : > { %v679_v38 = vld [vmem:[%s3498_s24 + $0x338] sm:$0xff]  ;;  %1458 = vmatpush.msrb.mxu2 %v647_v37 }
  0xf4   : > { %1571 = vmatpush.msrb.mxu3 %v679_v38 }
  0xf5   : > { %829 = vmatmul.f32.gmra.mxu0 %v508_v39  ;;  %942 = vmatmul.f32.gmra.mxu1 %v509_v40 }
  0xfa   : > { %1058 = vmatmul.f32.gmra.mxu2 %v514_v41  ;;  %v785_v43 = vpop.f32.mrf.mxu0  ;;  %v898_v44 = vpop.f32.mrf.mxu1  ;;  %1171 = vmatmul.f32.gmra.mxu3 %v515_v42  ;;  %v583_v42 = vld [vmem:[%s3498_s24 + $0x38] sm:$0xff] }
  0xfb   : > { %v899_v47 = vadd.f32 %v898_v44, %v785_v43  ;;  %v615_v43 = vld [vmem:[%s3498_s24 + $0x138] sm:$0xff]  ;;  %v3749_v44 = vld [vmem:[%s3490_s30 + $0x2b0] sm:$0xff]  ;;  %1232 = vmatpush.msrb.mxu0 %v583_v42 }
  0xfc   : > { %1345 = vmatpush.msrb.mxu1 %v615_v43  ;;  %v3824_v42 = vld [vmem:[%s3490_s30 + $0x338] sm:$0xff] }
  0xfd   : > { %v1011_v50 = vpop.f32.mrf.mxu2  ;;  %832 = vmatmul.f32.gmra.mxu0 %v512_v45  ;;  %945 = vmatmul.f32.gmra.mxu1 %v513_v46  ;;  %v1124_v51 = vpop.f32.mrf.mxu3  ;;  %v3752_v45 = vld [vmem:[%s3490_s30 + $0x2b8] sm:$0xff] }
  0xfe   : > { %v1012_v52 = vadd.f32 %v1011_v50, %v899_v47  ;;  %v3760_v50 = vld [vmem:[%s3490_s30 + $0x2a8] sm:$0xff] }
 0x100   : > { %v1125_v57 = vadd.f32 %v1124_v51, %v1012_v52 }
 0x102   : > { %1061 = vmatmul.f32.gmra.mxu2 %v518_v55  ;;  %v788_v58 = vpop.f32.mrf.mxu0  ;;  %v901_v59 = vpop.f32.mrf.mxu1  ;;  %1174 = vmatmul.f32.gmra.mxu3 %v519_v56  ;;  %1736 = vst [vmem:[#allocation2 + $0xb0] sm:$0xff] %v1125_v57  ;;  %v3765_v55 = vld [vmem:[%s3490_s30 + $0x2d0] sm:$0xff]  ;;  %v3768_v56 = vld [vmem:[%s3490_s30 + $0x2d8] sm:$0xff] }
 0x103   : > { %v902_v62 = vadd.f32 %v901_v59, %v788_v58 }
 0x105   : > { %v1014_v63 = vpop.f32.mrf.mxu2  ;;  %835 = vmatmul.f32.gmra.mxu0 %v516_v60  ;;  %948 = vmatmul.f32.gmra.mxu1 %v517_v61  ;;  %v1127_v0 = vpop.f32.mrf.mxu3  ;;  %v3773_v60 = vld [vmem:[%s3490_s30 + $0x2c0] sm:$0xff]  ;;  %v3776_v61 = vld [vmem:[%s3490_s30 + $0x2c8] sm:$0xff] }
 0x106   : > { %v1015_v1 = vadd.f32 %v1014_v63, %v902_v62  ;;  %v645_v63 = vld [vmem:[%s3498_s24 + $0x228] sm:$0xff] }
 0x107   : > { %1459 = vmatpush.msrb.mxu2 %v645_v63 }
 0x108   : > { %v1128_v4 = vadd.f32 %v1127_v0, %v1015_v1  ;;  %v677_v0 = vld [vmem:[%s3498_s24 + $0x328] sm:$0xff] }
 0x109   : > { %1572 = vmatpush.msrb.mxu3 %v677_v0 }
 0x10a   : > { %1064 = vmatmul.f32.gmra.mxu2 %v522_v2  ;;  %v791_v5 = vpop.f32.mrf.mxu0  ;;  %v904_v6 = vpop.f32.mrf.mxu1  ;;  %1177 = vmatmul.f32.gmra.mxu3 %v523_v3  ;;  %1738 = vst [vmem:[#allocation2 + $0xd8] sm:$0xff] %v1128_v4  ;;  %v581_v4 = vld [vmem:[%s3498_s24 + $0x28] sm:$0xff] }
 0x10b   : > { %v905_v9 = vadd.f32 %v904_v6, %v791_v5  ;;  %v613_v5 = vld [vmem:[%s3498_s24 + $0x128] sm:$0xff]  ;;  %v3785_v6 = vld [vmem:[%s3490_s30 + $0x2f0] sm:$0xff]  ;;  %1233 = vmatpush.msrb.mxu0 %v581_v4 }
 0x10c   : > { %1346 = vmatpush.msrb.mxu1 %v613_v5  ;;  %v641_v4 = vld [vmem:[%s3498_s24 + $0x208] sm:$0xff] }
 0x10d   : > { %v1017_v12 = vpop.f32.mrf.mxu2  ;;  %838 = vmatmul.f32.gmra.mxu0 %v520_v7  ;;  %951 = vmatmul.f32.gmra.mxu1 %v521_v8  ;;  %v1130_v13 = vpop.f32.mrf.mxu3  ;;  %v3788_v7 = vld [vmem:[%s3490_s30 + $0x2f8] sm:$0xff]  ;;  %v673_v5 = vld [vmem:[%s3498_s24 + $0x308] sm:$0xff] }
 0x10e   : > { %v1018_v14 = vadd.f32 %v1017_v12, %v905_v9  ;;  %v3796_v12 = vld [vmem:[%s3490_s30 + $0x2e8] sm:$0xff] }
 0x110   : > { %v1131_v19 = vadd.f32 %v1130_v13, %v1018_v14 }
 0x112   : > { %1067 = vmatmul.f32.gmra.mxu2 %v3713_v17  ;;  %v794_v20 = vpop.f32.mrf.mxu0  ;;  %v907_v21 = vpop.f32.mrf.mxu1  ;;  %1180 = vmatmul.f32.gmra.mxu3 %v3716_v18  ;;  %1740 = vst [vmem:[#allocation2 + $0x50] sm:$0xff] %v1131_v19  ;;  %v3801_v19 = vld [vmem:[%s3490_s30 + $0x310] sm:$0xff] }
 0x113   : > { %v908_v24 = vadd.f32 %v907_v21, %v794_v20  ;;  %v3804_v20 = vld [vmem:[%s3490_s30 + $0x318] sm:$0xff] }
 0x115   : > { %v1020_v25 = vpop.f32.mrf.mxu2  ;;  %841 = vmatmul.f32.gmra.mxu0 %v3721_v22  ;;  %954 = vmatmul.f32.gmra.mxu1 %v3724_v23  ;;  %v1133_v26 = vpop.f32.mrf.mxu3 }
 0x116   : > { %v1021_v27 = vadd.f32 %v1020_v25, %v908_v24 }
 0x118   : > { %v1134_v31 = vadd.f32 %v1133_v26, %v1021_v27  ;;  %v3809_v26 = vld [vmem:[%s3490_s30 + $0x300] sm:$0xff]  ;;  %v3812_v27 = vld [vmem:[%s3490_s30 + $0x308] sm:$0xff] }
 0x11a   : > { %1070 = vmatmul.f32.gmra.mxu2 %v3729_v29  ;;  %v797_v32 = vpop.f32.mrf.mxu0  ;;  %v910_v33 = vpop.f32.mrf.mxu1  ;;  %1183 = vmatmul.f32.gmra.mxu3 %v3732_v30  ;;  %1742 = vst [vmem:[#allocation2 + $0x130] sm:$0xff] %v1134_v31 }
 0x11b   : > { %v911_v36 = vadd.f32 %v910_v33, %v797_v32  ;;  %v643_v32 = vld [vmem:[%s3498_s24 + $0x218] sm:$0xff] }
 0x11c   : > { %v675_v33 = vld [vmem:[%s3498_s24 + $0x318] sm:$0xff]  ;;  %1460 = vmatpush.msrb.mxu2 %v643_v32  ;;  %v3868_v32 = vld [vmem:[%s3490_s30 + $0x368] sm:$0xff] }
 0x11d   : > { %v1023_v39 = vpop.f32.mrf.mxu2  ;;  %844 = vmatmul.f32.gmra.mxu0 %v3737_v34  ;;  %957 = vmatmul.f32.gmra.mxu1 %v3740_v35  ;;  %v1136_v40 = vpop.f32.mrf.mxu3 }
 0x11e   : > { %v1024_v41 = vadd.f32 %v1023_v39, %v911_v36  ;;  %1573 = vmatpush.msrb.mxu3 %v675_v33  ;;  %v579_v39 = vld [vmem:[%s3498_s24 + $0x18] sm:$0xff]  ;;  %1461 = vmatpush.msrb.mxu2 %v641_v4 }
 0x11f   : > { %1234 = vmatpush.msrb.mxu0 %v579_v39  ;;  %v3873_v39 = vld [vmem:[%s3490_s30 + $0x390] sm:$0xff] }
 0x120   : > { %v1137_v46 = vadd.f32 %v1136_v40, %v1024_v41  ;;  %v611_v40 = vld [vmem:[%s3498_s24 + $0x118] sm:$0xff]  ;;  %v3821_v41 = vld [vmem:[%s3490_s30 + $0x330] sm:$0xff]  ;;  %1574 = vmatpush.msrb.mxu3 %v673_v5 }
 0x121   : > { %1347 = vmatpush.msrb.mxu1 %v611_v40  ;;  %v3876_v40 = vld [vmem:[%s3490_s30 + $0x398] sm:$0xff] }
 0x122   : > { %1073 = vmatmul.f32.gmra.mxu2 %v3749_v44  ;;  %v800_v47 = vpop.f32.mrf.mxu0  ;;  %v913_v48 = vpop.f32.mrf.mxu1  ;;  %1186 = vmatmul.f32.gmra.mxu3 %v3752_v45  ;;  %1744 = vst [vmem:[#allocation2 + $0x180] sm:$0xff] %v1137_v46 }
 0x123   : > { %v914_v51 = vadd.f32 %v913_v48, %v800_v47  ;;  %v3829_v48 = vld [vmem:[%s3490_s30 + $0x320] sm:$0xff] }
 0x125   : > { %v1026_v52 = vpop.f32.mrf.mxu2  ;;  %847 = vmatmul.f32.gmra.mxu0 %v3757_v49  ;;  %960 = vmatmul.f32.gmra.mxu1 %v3760_v50  ;;  %v1139_v53 = vpop.f32.mrf.mxu3 }
 0x126   : > { %v1027_v54 = vadd.f32 %v1026_v52, %v914_v51  ;;  %v3832_v51 = vld [vmem:[%s3490_s30 + $0x328] sm:$0xff] }
 0x128   : > { %v1140_v57 = vadd.f32 %v1139_v53, %v1027_v54 }
 0x12a   : > { %1076 = vmatmul.f32.gmra.mxu2 %v3765_v55  ;;  %v803_v58 = vpop.f32.mrf.mxu0  ;;  %v916_v59 = vpop.f32.mrf.mxu1  ;;  %1189 = vmatmul.f32.gmra.mxu3 %v3768_v56  ;;  %1746 = vst [vmem:[#allocation2 + $0x118] sm:$0xff] %v1140_v57 }
 0x12b   : > { %v917_v62 = vadd.f32 %v916_v59, %v803_v58  ;;  %v3837_v58 = vld [vmem:[%s3490_s30 + $0x350] sm:$0xff]  ;;  %v3840_v59 = vld [vmem:[%s3490_s30 + $0x358] sm:$0xff] }
 0x12d   : > { %v1029_v1 = vpop.f32.mrf.mxu2  ;;  %850 = vmatmul.f32.gmra.mxu0 %v3773_v60  ;;  %963 = vmatmul.f32.gmra.mxu1 %v3776_v61  ;;  %v1142_v2 = vpop.f32.mrf.mxu3 }
 0x12e   : > { %v1030_v3 = vadd.f32 %v1029_v1, %v917_v62  ;;  %v3845_v1 = vld [vmem:[%s3490_s30 + $0x340] sm:$0xff] }
 0x130   : > { %v1143_v8 = vadd.f32 %v1142_v2, %v1030_v3  ;;  %v3848_v2 = vld [vmem:[%s3490_s30 + $0x348] sm:$0xff] }
 0x132   : > { %1079 = vmatmul.f32.gmra.mxu2 %v3785_v6  ;;  %v806_v9 = vpop.f32.mrf.mxu0  ;;  %v919_v10 = vpop.f32.mrf.mxu1  ;;  %1192 = vmatmul.f32.gmra.mxu3 %v3788_v7  ;;  %1748 = vst [vmem:[#allocation2 + $0x120] sm:$0xff] %v1143_v8 }
 0x133   : > { %v920_v13 = vadd.f32 %v919_v10, %v806_v9 }
 0x135   : > { %v1032_v14 = vpop.f32.mrf.mxu2  ;;  %853 = vmatmul.f32.gmra.mxu0 %v3793_v11  ;;  %966 = vmatmul.f32.gmra.mxu1 %v3796_v12  ;;  %v1145_v15 = vpop.f32.mrf.mxu3 }
 0x136   : > { %v1033_v16 = vadd.f32 %v1032_v14, %v920_v13  ;;  %v577_v13 = vld [vmem:[%s3498_s24 + $0x8] sm:$0xff] }
 0x137   : > { %v609_v14 = vld [vmem:[%s3498_s24 + $0x108] sm:$0xff]  ;;  %1235 = vmatpush.msrb.mxu0 %v577_v13 }
 0x138   : > { %v1146_v21 = vadd.f32 %v1145_v15, %v1033_v16  ;;  %v3857_v15 = vld [vmem:[%s3490_s30 + $0x370] sm:$0xff]  ;;  %v3860_v16 = vld [vmem:[%s3490_s30 + $0x378] sm:$0xff]  ;;  %1348 = vmatpush.msrb.mxu1 %v609_v14 }
 0x13a   : > { %1082 = vmatmul.f32.gmra.mxu2 %v3801_v19  ;;  %v809_v24 = vpop.f32.mrf.mxu0  ;;  %v922_v25 = vpop.f32.mrf.mxu1  ;;  %1195 = vmatmul.f32.gmra.mxu3 %v3804_v20  ;;  %1750 = vst [vmem:[#allocation2 + $0x108] sm:$0xff] %v1146_v21 }
 0x13b   : > { %v923_v31 = vadd.f32 %v922_v25, %v809_v24 }
 0x13d   : > { %v1035_v36 = vpop.f32.mrf.mxu2  ;;  %856 = vmatmul.f32.gmra.mxu0 %v3809_v26  ;;  %969 = vmatmul.f32.gmra.mxu1 %v3812_v27  ;;  %v1148_v37 = vpop.f32.mrf.mxu3 }
 0x13e   : > { %v1036_v38 = vadd.f32 %v1035_v36, %v923_v31  ;;  %v3865_v31 = vld [vmem:[%s3490_s30 + $0x360] sm:$0xff] }
 0x140   : > { %v1149_v43 = vadd.f32 %v1148_v37, %v1036_v38 }
 0x142   : > { %1085 = vmatmul.f32.gmra.mxu2 %v3821_v41  ;;  %v812_v46 = vpop.f32.mrf.mxu0  ;;  %v925_v47 = vpop.f32.mrf.mxu1  ;;  %1198 = vmatmul.f32.gmra.mxu3 %v3824_v42  ;;  %1752 = vst [vmem:[#allocation2 + $0xe0] sm:$0xff] %v1149_v43 }
 0x143   : > { %v926_v52 = vadd.f32 %v925_v47, %v812_v46 }
 0x145   : > { %v1038_v53 = vpop.f32.mrf.mxu2  ;;  %859 = vmatmul.f32.gmra.mxu0 %v3829_v48  ;;  %972 = vmatmul.f32.gmra.mxu1 %v3832_v51  ;;  %v1151_v54 = vpop.f32.mrf.mxu3 }
 0x146   : > { %v1039_v57 = vadd.f32 %v1038_v53, %v926_v52  ;;  %v3881_v52 = vld [vmem:[%s3490_s30 + $0x380] sm:$0xff]  ;;  %v3884_v53 = vld [vmem:[%s3490_s30 + $0x388] sm:$0xff] }
 0x148   : > { %v1152_v62 = vadd.f32 %v1151_v54, %v1039_v57 }
 0x14a   : > { %1088 = vmatmul.f32.gmra.mxu2 %v3837_v58  ;;  %v815_v63 = vpop.f32.mrf.mxu0  ;;  %v928_v0 = vpop.f32.mrf.mxu1  ;;  %1201 = vmatmul.f32.gmra.mxu3 %v3840_v59  ;;  %1754 = vst [vmem:[#allocation2 + $0x138] sm:$0xff] %v1152_v62 }
 0x14b   : > { %v929_v3 = vadd.f32 %v928_v0, %v815_v63  ;;  %v3889_v0 = vld [vmem:[%s3490_s30 + $0x3b0] sm:$0xff] }
 0x14d   : > { %v1041_v8 = vpop.f32.mrf.mxu2  ;;  %862 = vmatmul.f32.gmra.mxu0 %v3845_v1  ;;  %975 = vmatmul.f32.gmra.mxu1 %v3848_v2  ;;  %v1154_v9 = vpop.f32.mrf.mxu3 }
 0x14e   : > { %v1042_v10 = vadd.f32 %v1041_v8, %v929_v3  ;;  %v3892_v3 = vld [vmem:[%s3490_s30 + $0x3b8] sm:$0xff] }
 0x150   : > { %v1155_v21 = vadd.f32 %v1154_v9, %v1042_v10  ;;  %v3897_v9 = vld [vmem:[%s3490_s30 + $0x3a0] sm:$0xff]  ;;  %v3900_v10 = vld [vmem:[%s3490_s30 + $0x3a8] sm:$0xff] }
 0x152   : > { %1091 = vmatmul.f32.gmra.mxu2 %v3857_v15  ;;  %v818_v24 = vpop.f32.mrf.mxu0  ;;  %v931_v25 = vpop.f32.mrf.mxu1  ;;  %1204 = vmatmul.f32.gmra.mxu3 %v3860_v16  ;;  %1756 = vst [vmem:[#allocation2 + $0x80] sm:$0xff] %v1155_v21 }
 0x153   : > { %v932_v33 = vadd.f32 %v931_v25, %v818_v24  ;;  %v3905_v25 = vld [vmem:[%s3490_s30 + $0x3d0] sm:$0xff] }
 0x155   : > { %v1044_v36 = vpop.f32.mrf.mxu2  ;;  %865 = vmatmul.f32.gmra.mxu0 %v3865_v31  ;;  %978 = vmatmul.f32.gmra.mxu1 %v3868_v32  ;;  %v1157_v37 = vpop.f32.mrf.mxu3 }
 0x156   : > { %v1045_v38 = vadd.f32 %v1044_v36, %v932_v33  ;;  %v3908_v33 = vld [vmem:[%s3490_s30 + $0x3d8] sm:$0xff] }
 0x158   : > { %v1158_v43 = vadd.f32 %v1157_v37, %v1045_v38 }
 0x15a   : > { %1094 = vmatmul.f32.gmra.mxu2 %v3873_v39  ;;  %v821_v46 = vpop.f32.mrf.mxu0  ;;  %v934_v47 = vpop.f32.mrf.mxu1  ;;  %1207 = vmatmul.f32.gmra.mxu3 %v3876_v40  ;;  %1758 = vst [vmem:[#allocation2 + $0x1b8] sm:$0xff] %v1158_v43  ;;  %v3913_v43 = vld [vmem:[%s3490_s30 + $0x3c0] sm:$0xff] }
 0x15b   : > { %v935_v54 = vadd.f32 %v934_v47, %v821_v46  ;;  %v3916_v46 = vld [vmem:[%s3490_s30 + $0x3c8] sm:$0xff] }
 0x15c   : > { %4946 = vst [vmem:[#allocation31_spill] sm:$0xff] %v3916_v46 }
 0x15d   : > { %v1047_v57 = vpop.f32.mrf.mxu2  ;;  %868 = vmatmul.f32.gmra.mxu0 %v3881_v52  ;;  %981 = vmatmul.f32.gmra.mxu1 %v3884_v53  ;;  %v1160_v62 = vpop.f32.mrf.mxu3 }
 0x15e   : > { %v1048_v63 = vadd.f32 %v1047_v57, %v935_v54 }
 0x160   : > { %v1161_v4 = vadd.f32 %v1160_v62, %v1048_v63  ;;  %v3921_v63 = vld [vmem:[%s3490_s30 + $0x3f0] sm:$0xff] }
 0x161   : > { %4947 = vst [vmem:[#allocation32_spill] sm:$0xff] %v3921_v63 }
 0x162   : > { %1097 = vmatmul.f32.gmra.mxu2 %v3889_v0  ;;  %v824_v5 = vpop.f32.mrf.mxu0  ;;  %v937_v8 = vpop.f32.mrf.mxu1  ;;  %1210 = vmatmul.f32.gmra.mxu3 %v3892_v3  ;;  %1760 = vst [vmem:[#allocation2 + $0x1e8] sm:$0xff] %v1161_v4  ;;  %v3924_v4 = vld [vmem:[%s3490_s30 + $0x3f8] sm:$0xff] }
 0x163   : > { %v938_v13 = vadd.f32 %v937_v8, %v824_v5  ;;  %4948 = vst [vmem:[#allocation33_spill] sm:$0xff] %v3924_v4 }
 0x165   : > { %v1050_v14 = vpop.f32.mrf.mxu2  ;;  %871 = vmatmul.f32.gmra.mxu0 %v3897_v9  ;;  %984 = vmatmul.f32.gmra.mxu1 %v3900_v10  ;;  %v1163_v21 = vpop.f32.mrf.mxu3 }
 0x166   : > { %v1051_v24 = vadd.f32 %v1050_v14, %v938_v13  ;;  %v3929_v14 = vld [vmem:[%s3490_s30 + $0x3e0] sm:$0xff] }
 0x167   : > { %4949 = vst [vmem:[#allocation34_spill] sm:$0xff] %v3929_v14 }
 0x168   : > { %v1164_v36 = vadd.f32 %v1163_v21, %v1051_v24  ;;  %v3932_v21 = vld [vmem:[%s3490_s30 + $0x3e8] sm:$0xff] }
 0x169   : > { %4950 = vst [vmem:[#allocation35_spill] sm:$0xff] %v3932_v21 }
 0x16a   : > { %1100 = vmatmul.f32.gmra.mxu2 %v3905_v25  ;;  %v827_v37 = vpop.f32.mrf.mxu0  ;;  %v940_v38 = vpop.f32.mrf.mxu1  ;;  %1213 = vmatmul.f32.gmra.mxu3 %v3908_v33  ;;  %1762 = vst [vmem:[#allocation2 + $0x160] sm:$0xff] %v1164_v36 }
 0x16b   : > { %v941_v47 = vadd.f32 %v940_v38, %v827_v37 }
 0x16d   : > { %v1053_v54 = vpop.f32.mrf.mxu2  ;;  %874 = vmatmul.f32.gmra.mxu0 %v3913_v43  ;;  %987 = vmatmul.f32.gmra.mxu1 %v3916_v46  ;;  %v1166_v57 = vpop.f32.mrf.mxu3 }
 0x16e   : > { %v1054_v62 = vadd.f32 %v1053_v54, %v941_v47  ;;  %v2888_v54 = vld [vmem:[%s3490_s30 + $0x10] sm:$0xff] }
 0x170   : > { %v1167_v5 = vadd.f32 %v1166_v57, %v1054_v62 }
 0x172   : > { %1103 = vmatmul.f32.gmra.mxu2 %v3921_v63  ;;  %v830_v8 = vpop.f32.mrf.mxu0  ;;  %v943_v13 = vpop.f32.mrf.mxu1  ;;  %1216 = vmatmul.f32.gmra.mxu3 %v3924_v4  ;;  %1764 = vst [vmem:[#allocation2 + $0x1e0] sm:$0xff] %v1167_v5  ;;  %v2889_v4 = vld [vmem:[%s3490_s30 + $0x18] sm:$0xff] }
 0x173   : > { %v944_v24 = vadd.f32 %v943_v13, %v830_v8  ;;  %v2890_v13 = vld [vmem:[%s3490_s30] sm:$0xff]  ;;  %v2893_v63 = vld [vmem:[%s3490_s30 + $0x38] sm:$0xff] }
 0x175   : > { %v1056_v36 = vpop.f32.mrf.mxu2  ;;  %877 = vmatmul.f32.gmra.mxu0 %v3929_v14  ;;  %990 = vmatmul.f32.gmra.mxu1 %v3932_v21  ;;  %v1169_v37 = vpop.f32.mrf.mxu3  ;;  %v2891_v14 = vld [vmem:[%s3490_s30 + $0x8] sm:$0xff] }
 0x176   : > { %v1057_v38 = vadd.f32 %v1056_v36, %v944_v24 }
 0x178   : > { %v1170_v47 = vadd.f32 %v1169_v37, %v1057_v38  ;;  %v2892_v37 = vld [vmem:[%s3490_s30 + $0x30] sm:$0xff] }
 0x17a   : > { %1462 = vmatmul.f32.vlgmr.msrb.gmra.mxu2 %v2888_v54  ;;  %v833_v57 = vpop.f32.mrf.mxu0  ;;  %v946_v62 = vpop.f32.mrf.mxu1  ;;  %1575 = vmatmul.f32.vlgmr.msrb.gmra.mxu3 %v2889_v4  ;;  %1766 = vst [vmem:[#allocation2 + $0xf0] sm:$0xff] %v1170_v47 }
 0x17b   : > { %v947_v8 = vadd.f32 %v946_v62, %v833_v57  ;;  %v2894_v57 = vld [vmem:[%s3490_s30 + $0x20] sm:$0xff]  ;;  %v2895_v62 = vld [vmem:[%s3490_s30 + $0x28] sm:$0xff] }
 0x17d   : > { %v1059_v5 = vpop.f32.mrf.mxu2  ;;  %1236 = vmatmul.f32.vlgmr.msrb.gmra.mxu0 %v2890_v13  ;;  %1349 = vmatmul.f32.vlgmr.msrb.gmra.mxu1 %v2891_v14  ;;  %v1172_v21 = vpop.f32.mrf.mxu3 }
 0x17e   : > { %v1060_v24 = vadd.f32 %v1059_v5, %v947_v8  ;;  %v2896_v5 = vld [vmem:[%s3490_s30 + $0x50] sm:$0xff] }
 0x180   : > { %v1173_v36 = vadd.f32 %v1172_v21, %v1060_v24 }
 0x182   : > { %1465 = vmatmul.f32.gmra.mxu2 %v2892_v37  ;;  %v836_v38 = vpop.f32.mrf.mxu0  ;;  %v949_v54 = vpop.f32.mrf.mxu1  ;;  %1578 = vmatmul.f32.gmra.mxu3 %v2893_v63  ;;  %1768 = vst [vmem:[#allocation2 + $0x148] sm:$0xff] %v1173_v36  ;;  %v2897_v37 = vld [vmem:[%s3490_s30 + $0x58] sm:$0xff] }
 0x183   : > { %v950_v4 = vadd.f32 %v949_v54, %v836_v38  ;;  %v2898_v38 = vld [vmem:[%s3490_s30 + $0x40] sm:$0xff]  ;;  %v2899_v54 = vld [vmem:[%s3490_s30 + $0x48] sm:$0xff] }
 0x185   : > { %v1062_v47 = vpop.f32.mrf.mxu2  ;;  %1239 = vmatmul.f32.gmra.mxu0 %v2894_v57  ;;  %1352 = vmatmul.f32.gmra.mxu1 %v2895_v62  ;;  %v1175_v14 = vpop.f32.mrf.mxu3 }
 0x186   : > { %v1063_v8 = vadd.f32 %v1062_v47, %v950_v4 }
 0x188   : > { %v1176_v21 = vadd.f32 %v1175_v14, %v1063_v8  ;;  %v2900_v8 = vld [vmem:[%s3490_s30 + $0x78] sm:$0xff] }
 0x18a   : > { %1468 = vmatmul.f32.gmra.mxu2 %v2896_v5  ;;  %v839_v13 = vpop.f32.mrf.mxu0  ;;  %v952_v24 = vpop.f32.mrf.mxu1  ;;  %1581 = vmatmul.f32.gmra.mxu3 %v2897_v37  ;;  %1770 = vst [vmem:[#allocation2 + $0x100] sm:$0xff] %v1176_v21 }
 0x18b   : > { %v953_v63 = vadd.f32 %v952_v24, %v839_v13  ;;  %v2901_v13 = vld [vmem:[%s3490_s30 + $0x60] sm:$0xff]  ;;  %v2902_v24 = vld [vmem:[%s3490_s30 + $0x68] sm:$0xff] }
 0x18d   : > { %v1065_v36 = vpop.f32.mrf.mxu2  ;;  %1242 = vmatmul.f32.gmra.mxu0 %v2898_v38  ;;  %1355 = vmatmul.f32.gmra.mxu1 %v2899_v54  ;;  %v1178_v57 = vpop.f32.mrf.mxu3  ;;  %v2903_v38 = vld [vmem:[%s3490_s30 + $0x90] sm:$0xff] }
 0x18e   : > { %v1066_v62 = vadd.f32 %v1065_v36, %v953_v63 }
 0x190   : > { %v1179_v4 = vadd.f32 %v1178_v57, %v1066_v62  ;;  %v2904_v57 = vld [vmem:[%s3490_s30 + $0x98] sm:$0xff] }
 0x192   : > { %1471 = vmatmul.f32.gmra.mxu2 %v3614_v28  ;;  %v842_v47 = vpop.f32.mrf.mxu0  ;;  %v955_v14 = vpop.f32.mrf.mxu1  ;;  %1584 = vmatmul.f32.gmra.mxu3 %v2900_v8  ;;  %1772 = vst [vmem:[#allocation2 + $0x40] sm:$0xff] %v1179_v4 }
 0x193   : > { %v956_v5 = vadd.f32 %v955_v14, %v842_v47  ;;  %v2905_v47 = vld [vmem:[%s3490_s30 + $0x80] sm:$0xff]  ;;  %v2906_v14 = vld [vmem:[%s3490_s30 + $0x88] sm:$0xff] }
 0x195   : > { %v1068_v21 = vpop.f32.mrf.mxu2  ;;  %1245 = vmatmul.f32.gmra.mxu0 %v2901_v13  ;;  %1358 = vmatmul.f32.gmra.mxu1 %v2902_v24  ;;  %v1181_v37 = vpop.f32.mrf.mxu3  ;;  %v2907_v13 = vld [vmem:[%s3490_s30 + $0xb0] sm:$0xff] }
 0x196   : > { %v1069_v63 = vadd.f32 %v1068_v21, %v956_v5 }
 0x198   : > { %v1182_v36 = vadd.f32 %v1181_v37, %v1069_v63  ;;  %v2908_v63 = vld [vmem:[%s3490_s30 + $0xb8] sm:$0xff] }
 0x19a   : > { %1474 = vmatmul.f32.gmra.mxu2 %v2903_v38  ;;  %v845_v28 = vpop.f32.mrf.mxu0  ;;  %v958_v54 = vpop.f32.mrf.mxu1  ;;  %1587 = vmatmul.f32.gmra.mxu3 %v2904_v57  ;;  %1774 = vst [vmem:[#allocation2 + $0x20] sm:$0xff] %v1182_v36 }
 0x19b   : > { %v959_v62 = vadd.f32 %v958_v54, %v845_v28  ;;  %v2909_v28 = vld [vmem:[%s3490_s30 + $0xa0] sm:$0xff]  ;;  %v2910_v54 = vld [vmem:[%s3490_s30 + $0xa8] sm:$0xff] }
 0x19d   : > { %v1071_v4 = vpop.f32.mrf.mxu2  ;;  %1248 = vmatmul.f32.gmra.mxu0 %v2905_v47  ;;  %1361 = vmatmul.f32.gmra.mxu1 %v2906_v14  ;;  %v1184_v8 = vpop.f32.mrf.mxu3  ;;  %v2911_v47 = vld [vmem:[%s3490_s30 + $0xd0] sm:$0xff] }
 0x19e   : > { %v1072_v5 = vadd.f32 %v1071_v4, %v959_v62 }
 0x1a0   : > { %v1185_v21 = vadd.f32 %v1184_v8, %v1072_v5  ;;  %v2912_v5 = vld [vmem:[%s3490_s30 + $0xd8] sm:$0xff] }
 0x1a2   : > { %1477 = vmatmul.f32.gmra.mxu2 %v2907_v13  ;;  %v848_v24 = vpop.f32.mrf.mxu0  ;;  %v961_v37 = vpop.f32.mrf.mxu1  ;;  %1590 = vmatmul.f32.gmra.mxu3 %v2908_v63  ;;  %1776 = vst [vmem:[#allocation2 + $0x1a0] sm:$0xff] %v1185_v21 }
 0x1a3   : > { %v962_v38 = vadd.f32 %v961_v37, %v848_v24  ;;  %v2913_v24 = vld [vmem:[%s3490_s30 + $0xc0] sm:$0xff]  ;;  %v2914_v37 = vld [vmem:[%s3490_s30 + $0xc8] sm:$0xff] }
 0x1a5   : > { %v1074_v36 = vpop.f32.mrf.mxu2  ;;  %1251 = vmatmul.f32.gmra.mxu0 %v2909_v28  ;;  %1364 = vmatmul.f32.gmra.mxu1 %v2910_v54  ;;  %v1187_v57 = vpop.f32.mrf.mxu3  ;;  %v2915_v28 = vld [vmem:[%s3490_s30 + $0xf0] sm:$0xff] }
 0x1a6   : > { %v1075_v62 = vadd.f32 %v1074_v36, %v962_v38 }
 0x1a8   : > { %v1188_v4 = vadd.f32 %v1187_v57, %v1075_v62  ;;  %v2916_v62 = vld [vmem:[%s3490_s30 + $0xf8] sm:$0xff] }
 0x1aa   : > { %1480 = vmatmul.f32.gmra.mxu2 %v2911_v47  ;;  %v851_v14 = vpop.f32.mrf.mxu0  ;;  %v964_v8 = vpop.f32.mrf.mxu1  ;;  %1593 = vmatmul.f32.gmra.mxu3 %v2912_v5  ;;  %1778 = vst [vmem:[#allocation2 + $0xe8] sm:$0xff] %v1188_v4 }
 0x1ab   : > { %v965_v13 = vadd.f32 %v964_v8, %v851_v14  ;;  %v2917_v14 = vld [vmem:[%s3490_s30 + $0xe0] sm:$0xff]  ;;  %v2918_v8 = vld [vmem:[%s3490_s30 + $0xe8] sm:$0xff] }
 0x1ad   : > { %v1077_v21 = vpop.f32.mrf.mxu2  ;;  %1254 = vmatmul.f32.gmra.mxu0 %v2913_v24  ;;  %1367 = vmatmul.f32.gmra.mxu1 %v2914_v37  ;;  %v1190_v63 = vpop.f32.mrf.mxu3  ;;  %v2919_v24 = vld [vmem:[%s3490_s30 + $0x110] sm:$0xff] }
 0x1ae   : > { %v1078_v38 = vadd.f32 %v1077_v21, %v965_v13 }
 0x1b0   : > { %v1191_v36 = vadd.f32 %v1190_v63, %v1078_v38  ;;  %v2920_v38 = vld [vmem:[%s3490_s30 + $0x118] sm:$0xff] }
 0x1b2   : > { %1483 = vmatmul.f32.gmra.mxu2 %v2915_v28  ;;  %v854_v54 = vpop.f32.mrf.mxu0  ;;  %v967_v57 = vpop.f32.mrf.mxu1  ;;  %1596 = vmatmul.f32.gmra.mxu3 %v2916_v62  ;;  %1780 = vst [vmem:[#allocation2 + $0x70] sm:$0xff] %v1191_v36 }
 0x1b3   : > { %v968_v47 = vadd.f32 %v967_v57, %v854_v54  ;;  %v2921_v54 = vld [vmem:[%s3490_s30 + $0x100] sm:$0xff]  ;;  %v2922_v57 = vld [vmem:[%s3490_s30 + $0x108] sm:$0xff] }
 0x1b5   : > { %v1080_v4 = vpop.f32.mrf.mxu2  ;;  %1257 = vmatmul.f32.gmra.mxu0 %v2917_v14  ;;  %1370 = vmatmul.f32.gmra.mxu1 %v2918_v8  ;;  %v1193_v5 = vpop.f32.mrf.mxu3  ;;  %v2923_v14 = vld [vmem:[%s3490_s30 + $0x130] sm:$0xff] }
 0x1b6   : > { %v1081_v13 = vadd.f32 %v1080_v4, %v968_v47 }
 0x1b8   : > { %v1194_v21 = vadd.f32 %v1193_v5, %v1081_v13  ;;  %v2924_v13 = vld [vmem:[%s3490_s30 + $0x138] sm:$0xff] }
 0x1ba   : > { %1486 = vmatmul.f32.gmra.mxu2 %v2919_v24  ;;  %v857_v37 = vpop.f32.mrf.mxu0  ;;  %v970_v63 = vpop.f32.mrf.mxu1  ;;  %1599 = vmatmul.f32.gmra.mxu3 %v2920_v38  ;;  %1782 = vst [vmem:[#allocation2 + $0x1d8] sm:$0xff] %v1194_v21 }
 0x1bb   : > { %v971_v28 = vadd.f32 %v970_v63, %v857_v37  ;;  %v2925_v37 = vld [vmem:[%s3490_s30 + $0x120] sm:$0xff]  ;;  %v2926_v63 = vld [vmem:[%s3490_s30 + $0x128] sm:$0xff] }
 0x1bd   : > { %v1083_v36 = vpop.f32.mrf.mxu2  ;;  %1260 = vmatmul.f32.gmra.mxu0 %v2921_v54  ;;  %1373 = vmatmul.f32.gmra.mxu1 %v2922_v57  ;;  %v1196_v62 = vpop.f32.mrf.mxu3  ;;  %v2927_v54 = vld [vmem:[%s3490_s30 + $0x150] sm:$0xff] }
 0x1be   : > { %v1084_v47 = vadd.f32 %v1083_v36, %v971_v28 }
 0x1c0   : > { %v1197_v4 = vadd.f32 %v1196_v62, %v1084_v47  ;;  %v2928_v47 = vld [vmem:[%s3490_s30 + $0x158] sm:$0xff] }
 0x1c2   : > { %1489 = vmatmul.f32.gmra.mxu2 %v2923_v14  ;;  %v860_v8 = vpop.f32.mrf.mxu0  ;;  %v973_v5 = vpop.f32.mrf.mxu1  ;;  %1602 = vmatmul.f32.gmra.mxu3 %v2924_v13  ;;  %1784 = vst [vmem:[#allocation2 + $0xb8] sm:$0xff] %v1197_v4 }
 0x1c3   : > { %v974_v24 = vadd.f32 %v973_v5, %v860_v8  ;;  %v2929_v8 = vld [vmem:[%s3490_s30 + $0x140] sm:$0xff]  ;;  %v2930_v5 = vld [vmem:[%s3490_s30 + $0x148] sm:$0xff] }
 0x1c5   : > { %v1086_v21 = vpop.f32.mrf.mxu2  ;;  %1263 = vmatmul.f32.gmra.mxu0 %v2925_v37  ;;  %1376 = vmatmul.f32.gmra.mxu1 %v2926_v63  ;;  %v1199_v38 = vpop.f32.mrf.mxu3  ;;  %v2931_v37 = vld [vmem:[%s3490_s30 + $0x170] sm:$0xff] }
 0x1c6   : > { %v1087_v28 = vadd.f32 %v1086_v21, %v974_v24 }
 0x1c8   : > { %v1200_v36 = vadd.f32 %v1199_v38, %v1087_v28  ;;  %v2932_v28 = vld [vmem:[%s3490_s30 + $0x178] sm:$0xff] }
 0x1ca   : > { %1492 = vmatmul.f32.gmra.mxu2 %v2927_v54  ;;  %v863_v57 = vpop.f32.mrf.mxu0  ;;  %v976_v62 = vpop.f32.mrf.mxu1  ;;  %1605 = vmatmul.f32.gmra.mxu3 %v2928_v47  ;;  %1786 = vst [vmem:[#allocation2 + $0xa8] sm:$0xff] %v1200_v36 }
 0x1cb   : > { %v977_v14 = vadd.f32 %v976_v62, %v863_v57  ;;  %v2933_v57 = vld [vmem:[%s3490_s30 + $0x160] sm:$0xff]  ;;  %v2934_v62 = vld [vmem:[%s3490_s30 + $0x168] sm:$0xff] }
 0x1cd   : > { %v1089_v4 = vpop.f32.mrf.mxu2  ;;  %1266 = vmatmul.f32.gmra.mxu0 %v2929_v8  ;;  %1379 = vmatmul.f32.gmra.mxu1 %v2930_v5  ;;  %v1202_v13 = vpop.f32.mrf.mxu3  ;;  %v2935_v8 = vld [vmem:[%s3490_s30 + $0x190] sm:$0xff] }
 0x1ce   : > { %v1090_v24 = vadd.f32 %v1089_v4, %v977_v14 }
 0x1d0   : > { %v1203_v21 = vadd.f32 %v1202_v13, %v1090_v24  ;;  %v2936_v24 = vld [vmem:[%s3490_s30 + $0x198] sm:$0xff] }
 0x1d2   : > { %1495 = vmatmul.f32.gmra.mxu2 %v2931_v37  ;;  %v866_v63 = vpop.f32.mrf.mxu0  ;;  %v979_v38 = vpop.f32.mrf.mxu1  ;;  %1608 = vmatmul.f32.gmra.mxu3 %v2932_v28  ;;  %1788 = vst [vmem:[#allocation2 + $0x170] sm:$0xff] %v1203_v21 }
 0x1d3   : > { %v980_v54 = vadd.f32 %v979_v38, %v866_v63  ;;  %v2937_v63 = vld [vmem:[%s3490_s30 + $0x180] sm:$0xff]  ;;  %v2938_v38 = vld [vmem:[%s3490_s30 + $0x188] sm:$0xff] }
 0x1d5   : > { %v1092_v36 = vpop.f32.mrf.mxu2  ;;  %1269 = vmatmul.f32.gmra.mxu0 %v2933_v57  ;;  %1382 = vmatmul.f32.gmra.mxu1 %v2934_v62  ;;  %v1205_v47 = vpop.f32.mrf.mxu3  ;;  %v2939_v57 = vld [vmem:[%s3490_s30 + $0x1b0] sm:$0xff] }
 0x1d6   : > { %v1093_v14 = vadd.f32 %v1092_v36, %v980_v54 }
 0x1d8   : > { %v1206_v4 = vadd.f32 %v1205_v47, %v1093_v14  ;;  %v2940_v14 = vld [vmem:[%s3490_s30 + $0x1b8] sm:$0xff] }
 0x1da   : > { %1498 = vmatmul.f32.gmra.mxu2 %v2935_v8  ;;  %v869_v5 = vpop.f32.mrf.mxu0  ;;  %v982_v13 = vpop.f32.mrf.mxu1  ;;  %1611 = vmatmul.f32.gmra.mxu3 %v2936_v24  ;;  %1790 = vst [vmem:[#allocation2 + $0x68] sm:$0xff] %v1206_v4 }
 0x1db   : > { %v983_v37 = vadd.f32 %v982_v13, %v869_v5  ;;  %v2941_v5 = vld [vmem:[%s3490_s30 + $0x1a0] sm:$0xff]  ;;  %v2942_v13 = vld [vmem:[%s3490_s30 + $0x1a8] sm:$0xff] }
 0x1dd   : > { %v1095_v21 = vpop.f32.mrf.mxu2  ;;  %1272 = vmatmul.f32.gmra.mxu0 %v2937_v63  ;;  %1385 = vmatmul.f32.gmra.mxu1 %v2938_v38  ;;  %v1208_v28 = vpop.f32.mrf.mxu3  ;;  %v2943_v63 = vld [vmem:[%s3490_s30 + $0x1d0] sm:$0xff] }
 0x1de   : > { %v1096_v54 = vadd.f32 %v1095_v21, %v983_v37 }
 0x1e0   : > { %v1209_v36 = vadd.f32 %v1208_v28, %v1096_v54  ;;  %v2944_v54 = vld [vmem:[%s3490_s30 + $0x1d8] sm:$0xff] }
 0x1e2   : > { %1501 = vmatmul.f32.gmra.mxu2 %v2939_v57  ;;  %v872_v62 = vpop.f32.mrf.mxu0  ;;  %v985_v47 = vpop.f32.mrf.mxu1  ;;  %1614 = vmatmul.f32.gmra.mxu3 %v2940_v14  ;;  %1792 = vst [vmem:[#allocation2 + $0x198] sm:$0xff] %v1209_v36 }
 0x1e3   : > { %v986_v8 = vadd.f32 %v985_v47, %v872_v62  ;;  %v2945_v62 = vld [vmem:[%s3490_s30 + $0x1c0] sm:$0xff]  ;;  %v2946_v47 = vld [vmem:[%s3490_s30 + $0x1c8] sm:$0xff] }
 0x1e5   : > { %v1098_v4 = vpop.f32.mrf.mxu2  ;;  %1275 = vmatmul.f32.gmra.mxu0 %v2941_v5  ;;  %1388 = vmatmul.f32.gmra.mxu1 %v2942_v13  ;;  %v1211_v24 = vpop.f32.mrf.mxu3  ;;  %v2947_v5 = vld [vmem:[%s3490_s30 + $0x1f0] sm:$0xff] }
 0x1e6   : > { %v1099_v37 = vadd.f32 %v1098_v4, %v986_v8 }
 0x1e8   : > { %v1212_v21 = vadd.f32 %v1211_v24, %v1099_v37  ;;  %v2948_v37 = vld [vmem:[%s3490_s30 + $0x1f8] sm:$0xff] }
 0x1ea   : > { %1504 = vmatmul.f32.gmra.mxu2 %v2943_v63  ;;  %v875_v38 = vpop.f32.mrf.mxu0  ;;  %v988_v28 = vpop.f32.mrf.mxu1  ;;  %1617 = vmatmul.f32.gmra.mxu3 %v2944_v54  ;;  %1794 = vst [vmem:[#allocation2 + $0xc0] sm:$0xff] %v1212_v21 }
 0x1eb   : > { %v989_v57 = vadd.f32 %v988_v28, %v875_v38  ;;  %v2949_v38 = vld [vmem:[%s3490_s30 + $0x1e0] sm:$0xff]  ;;  %v2950_v28 = vld [vmem:[%s3490_s30 + $0x1e8] sm:$0xff] }
 0x1ed   : > { %v1101_v36 = vpop.f32.mrf.mxu2  ;;  %1278 = vmatmul.f32.gmra.mxu0 %v2945_v62  ;;  %1391 = vmatmul.f32.gmra.mxu1 %v2946_v47  ;;  %v1214_v14 = vpop.f32.mrf.mxu3  ;;  %v2951_v62 = vld [vmem:[%s3490_s30 + $0x210] sm:$0xff] }
 0x1ee   : > { %v1102_v8 = vadd.f32 %v1101_v36, %v989_v57 }
 0x1f0   : > { %v1215_v4 = vadd.f32 %v1214_v14, %v1102_v8  ;;  %v2952_v8 = vld [vmem:[%s3490_s30 + $0x218] sm:$0xff] }
 0x1f2   : > { %1507 = vmatmul.f32.gmra.mxu2 %v2947_v5  ;;  %v878_v13 = vpop.f32.mrf.mxu0  ;;  %v991_v24 = vpop.f32.mrf.mxu1  ;;  %1620 = vmatmul.f32.gmra.mxu3 %v2948_v37  ;;  %1796 = vst [vmem:[#allocation2 + $0x158] sm:$0xff] %v1215_v4 }
 0x1f3   : > { %v992_v63 = vadd.f32 %v991_v24, %v878_v13  ;;  %v2953_v13 = vld [vmem:[%s3490_s30 + $0x200] sm:$0xff]  ;;  %v2954_v24 = vld [vmem:[%s3490_s30 + $0x208] sm:$0xff] }
 0x1f5   : > { %v1104_v21 = vpop.f32.mrf.mxu2  ;;  %1281 = vmatmul.f32.gmra.mxu0 %v2949_v38  ;;  %1394 = vmatmul.f32.gmra.mxu1 %v2950_v28  ;;  %v1217_v54 = vpop.f32.mrf.mxu3  ;;  %v2955_v38 = vld [vmem:[%s3490_s30 + $0x230] sm:$0xff] }
 0x1f6   : > { %v1105_v57 = vadd.f32 %v1104_v21, %v992_v63 }
 0x1f8   : > { %v1218_v36 = vadd.f32 %v1217_v54, %v1105_v57  ;;  %v2956_v57 = vld [vmem:[%s3490_s30 + $0x238] sm:$0xff] }
 0x1fa   : > { %1510 = vmatmul.f32.gmra.mxu2 %v2951_v62  ;;  %v1237_v47 = vpop.f32.mrf.mxu0  ;;  %v1350_v14 = vpop.f32.mrf.mxu1  ;;  %1623 = vmatmul.f32.gmra.mxu3 %v2952_v8  ;;  %1798 = vst [vmem:[#allocation2 + $0x58] sm:$0xff] %v1218_v36 }
 0x1fb   : > { %v1351_v5 = vadd.f32 %v1350_v14, %v1237_v47  ;;  %v2957_v47 = vld [vmem:[%s3490_s30 + $0x220] sm:$0xff]  ;;  %v2958_v14 = vld [vmem:[%s3490_s30 + $0x228] sm:$0xff] }
 0x1fd   : > { %v1463_v4 = vpop.f32.mrf.mxu2  ;;  %1284 = vmatmul.f32.gmra.mxu0 %v2953_v13  ;;  %1397 = vmatmul.f32.gmra.mxu1 %v2954_v24  ;;  %v1576_v37 = vpop.f32.mrf.mxu3  ;;  %v2959_v13 = vld [vmem:[%s3490_s30 + $0x250] sm:$0xff] }
 0x1fe   : > { %v1464_v63 = vadd.f32 %v1463_v4, %v1351_v5 }
 0x200   : > { %v1577_v21 = vadd.f32 %v1576_v37, %v1464_v63  ;;  %v2960_v63 = vld [vmem:[%s3490_s30 + $0x258] sm:$0xff] }
 0x202   : > { %1513 = vmatmul.f32.gmra.mxu2 %v2955_v38  ;;  %v1240_v28 = vpop.f32.mrf.mxu0  ;;  %v1353_v54 = vpop.f32.mrf.mxu1  ;;  %1626 = vmatmul.f32.gmra.mxu3 %v2956_v57  ;;  %1737 = vst [vmem:[#allocation2 + $0x1b0] sm:$0xff] %v1577_v21  ;;  %v2961_v21 = vld [vmem:[%s3490_s30 + $0x240] sm:$0xff] }
 0x203   : > { %v1354_v62 = vadd.f32 %v1353_v54, %v1240_v28  ;;  %v2962_v54 = vld [vmem:[%s3490_s30 + $0x248] sm:$0xff] }
 0x205   : > { %v1466_v36 = vpop.f32.mrf.mxu2  ;;  %1287 = vmatmul.f32.gmra.mxu0 %v2957_v47  ;;  %1400 = vmatmul.f32.gmra.mxu1 %v2958_v14  ;;  %v1579_v8 = vpop.f32.mrf.mxu3 }
 0x206   : > { %v1467_v5 = vadd.f32 %v1466_v36, %v1354_v62 }
 0x208   : > { %v1580_v4 = vadd.f32 %v1579_v8, %v1467_v5 }
 0x20a   : > { %1516 = vmatmul.f32.gmra.mxu2 %v2959_v13  ;;  %v1243_v24 = vpop.f32.mrf.mxu0  ;;  %v1356_v37 = vpop.f32.mrf.mxu1  ;;  %1629 = vmatmul.f32.gmra.mxu3 %v2960_v63  ;;  %1739 = vst [vmem:[#allocation2 + $0x18] sm:$0xff] %v1580_v4 }
 0x20b   : > { %v1357_v38 = vadd.f32 %v1356_v37, %v1243_v24 }
 0x20d   : > { %v1469_v28 = vpop.f32.mrf.mxu2  ;;  %1290 = vmatmul.f32.gmra.mxu0 %v2961_v21  ;;  %1403 = vmatmul.f32.gmra.mxu1 %v2962_v54  ;;  %v1582_v57 = vpop.f32.mrf.mxu3 }
 0x20e   : > { %v1470_v47 = vadd.f32 %v1469_v28, %v1357_v38 }
 0x210   : > { %v1583_v46 = vadd.f32 %v1582_v57, %v1470_v47 }
 0x212   : > { %1519 = vmatmul.f32.gmra.mxu2 %v3713_v17  ;;  %v1246_v62 = vpop.f32.mrf.mxu0  ;;  %v1359_v36 = vpop.f32.mrf.mxu1  ;;  %1632 = vmatmul.f32.gmra.mxu3 %v3716_v18  ;;  %1741 = vst [vmem:[#allocation2 + $0x168] sm:$0xff] %v1583_v46 }
 0x213   : > { %v1360_v14 = vadd.f32 %v1359_v36, %v1246_v62 }
 0x215   : > { %v1472_v8 = vpop.f32.mrf.mxu2  ;;  %1293 = vmatmul.f32.gmra.mxu0 %v3721_v22  ;;  %1406 = vmatmul.f32.gmra.mxu1 %v3724_v23  ;;  %v1585_v5 = vpop.f32.mrf.mxu3 }
 0x216   : > { %v1473_v4 = vadd.f32 %v1472_v8, %v1360_v14 }
 0x218   : > { %v1586_v13 = vadd.f32 %v1585_v5, %v1473_v4 }
 0x21a   : > { %1522 = vmatmul.f32.gmra.mxu2 %v3729_v29  ;;  %v1249_v24 = vpop.f32.mrf.mxu0  ;;  %v1362_v37 = vpop.f32.mrf.mxu1  ;;  %1635 = vmatmul.f32.gmra.mxu3 %v3732_v30  ;;  %1743 = vst [vmem:[#allocation2 + $0x48] sm:$0xff] %v1586_v13 }
 0x21b   : > { %v1363_v17 = vadd.f32 %v1362_v37, %v1249_v24 }
 0x21d   : > { %v1475_v63 = vpop.f32.mrf.mxu2  ;;  %1296 = vmatmul.f32.gmra.mxu0 %v3737_v34  ;;  %1409 = vmatmul.f32.gmra.mxu1 %v3740_v35  ;;  %v1588_v18 = vpop.f32.mrf.mxu3 }
 0x21e   : > { %v1476_v22 = vadd.f32 %v1475_v63, %v1363_v17 }
 0x220   : > { %v1589_v46 = vadd.f32 %v1588_v18, %v1476_v22 }
 0x222   : > { %1525 = vmatmul.f32.gmra.mxu2 %v3749_v44  ;;  %v1252_v23 = vpop.f32.mrf.mxu0  ;;  %v1365_v38 = vpop.f32.mrf.mxu1  ;;  %1638 = vmatmul.f32.gmra.mxu3 %v3752_v45  ;;  %1745 = vst [vmem:[#allocation2 + $0x110] sm:$0xff] %v1589_v46 }
 0x223   : > { %v1366_v29 = vadd.f32 %v1365_v38, %v1252_v23 }
 0x225   : > { %v1478_v28 = vpop.f32.mrf.mxu2  ;;  %1299 = vmatmul.f32.gmra.mxu0 %v3757_v49  ;;  %1412 = vmatmul.f32.gmra.mxu1 %v3760_v50  ;;  %v1591_v30 = vpop.f32.mrf.mxu3 }
 0x226   : > { %v1479_v34 = vadd.f32 %v1478_v28, %v1366_v29 }
 0x228   : > { %v1592_v21 = vadd.f32 %v1591_v30, %v1479_v34 }
 0x22a   : > { %1528 = vmatmul.f32.gmra.mxu2 %v3765_v55  ;;  %v1255_v35 = vpop.f32.mrf.mxu0  ;;  %v1368_v54 = vpop.f32.mrf.mxu1  ;;  %1641 = vmatmul.f32.gmra.mxu3 %v3768_v56  ;;  %1747 = vst [vmem:[#allocation2 + $0x98] sm:$0xff] %v1592_v21 }
 0x22b   : > { %v1369_v44 = vadd.f32 %v1368_v54, %v1255_v35 }
 0x22d   : > { %v1481_v57 = vpop.f32.mrf.mxu2  ;;  %1302 = vmatmul.f32.gmra.mxu0 %v3773_v60  ;;  %1415 = vmatmul.f32.gmra.mxu1 %v3776_v61  ;;  %v1594_v45 = vpop.f32.mrf.mxu3 }
 0x22e   : > { %v1482_v49 = vadd.f32 %v1481_v57, %v1369_v44 }
 0x230   : > { %v1595_v47 = vadd.f32 %v1594_v45, %v1482_v49 }
 0x232   : > { %1531 = vmatmul.f32.gmra.mxu2 %v3785_v6  ;;  %v1258_v50 = vpop.f32.mrf.mxu0  ;;  %v1371_v62 = vpop.f32.mrf.mxu1  ;;  %1644 = vmatmul.f32.gmra.mxu3 %v3788_v7  ;;  %1749 = vst [vmem:[#allocation2 + $0x150] sm:$0xff] %v1595_v47 }
 0x233   : > { %v1372_v55 = vadd.f32 %v1371_v62, %v1258_v50  ;;  %v4955_v50 = vld [vmem:[#allocation34_spill] sm:$0xff]  ;;  %v4956_v62 = vld [vmem:[#allocation35_spill] sm:$0xff] }
 0x235   : > { %v1484_v36 = vpop.f32.mrf.mxu2  ;;  %1305 = vmatmul.f32.gmra.mxu0 %v3793_v11  ;;  %1418 = vmatmul.f32.gmra.mxu1 %v3796_v12  ;;  %v1597_v56 = vpop.f32.mrf.mxu3 }
 0x236   : > { %v1485_v60 = vadd.f32 %v1484_v36, %v1372_v55 }
 0x238   : > { %v1598_v14 = vadd.f32 %v1597_v56, %v1485_v60 }
 0x23a   : > { %1534 = vmatmul.f32.gmra.mxu2 %v3801_v19  ;;  %v1261_v61 = vpop.f32.mrf.mxu0  ;;  %v1374_v8 = vpop.f32.mrf.mxu1  ;;  %1647 = vmatmul.f32.gmra.mxu3 %v3804_v20  ;;  %1751 = vst [vmem:[#allocation2 + $0x60] sm:$0xff] %v1598_v14 }
 0x23b   : > { %v1375_v6 = vadd.f32 %v1374_v8, %v1261_v61 }
 0x23d   : > { %v1487_v5 = vpop.f32.mrf.mxu2  ;;  %1308 = vmatmul.f32.gmra.mxu0 %v3809_v26  ;;  %1421 = vmatmul.f32.gmra.mxu1 %v3812_v27  ;;  %v1600_v7 = vpop.f32.mrf.mxu3 }
 0x23e   : > { %v1488_v11 = vadd.f32 %v1487_v5, %v1375_v6 }
 0x240   : > { %v1601_v4 = vadd.f32 %v1600_v7, %v1488_v11 }
 0x242   : > { %1537 = vmatmul.f32.gmra.mxu2 %v3821_v41  ;;  %v1264_v12 = vpop.f32.mrf.mxu0  ;;  %v1377_v13 = vpop.f32.mrf.mxu1  ;;  %1650 = vmatmul.f32.gmra.mxu3 %v3824_v42  ;;  %1753 = vst [vmem:[#allocation2 + $0x188] sm:$0xff] %v1601_v4 }
 0x243   : > { %v1378_v19 = vadd.f32 %v1377_v13, %v1264_v12 }
 0x245   : > { %v1490_v24 = vpop.f32.mrf.mxu2  ;;  %1311 = vmatmul.f32.gmra.mxu0 %v3829_v48  ;;  %1424 = vmatmul.f32.gmra.mxu1 %v3832_v51  ;;  %v1603_v20 = vpop.f32.mrf.mxu3 }
 0x246   : > { %v1491_v26 = vadd.f32 %v1490_v24, %v1378_v19 }
 0x248   : > { %v1604_v37 = vadd.f32 %v1603_v20, %v1491_v26 }
 0x24a   : > { %1540 = vmatmul.f32.gmra.mxu2 %v3837_v58  ;;  %v1267_v27 = vpop.f32.mrf.mxu0  ;;  %v1380_v17 = vpop.f32.mrf.mxu1  ;;  %1653 = vmatmul.f32.gmra.mxu3 %v3840_v59  ;;  %1755 = vst [vmem:[#allocation2 + $0x140] sm:$0xff] %v1604_v37 }
 0x24b   : > { %v1381_v41 = vadd.f32 %v1380_v17, %v1267_v27 }
 0x24d   : > { %v1493_v63 = vpop.f32.mrf.mxu2  ;;  %1314 = vmatmul.f32.gmra.mxu0 %v3845_v1  ;;  %1427 = vmatmul.f32.gmra.mxu1 %v3848_v2  ;;  %v1606_v42 = vpop.f32.mrf.mxu3 }
 0x24e   : > { %v1494_v48 = vadd.f32 %v1493_v63, %v1381_v41 }
 0x250   : > { %v1607_v18 = vadd.f32 %v1606_v42, %v1494_v48 }
 0x252   : > { %1543 = vmatmul.f32.gmra.mxu2 %v3857_v15  ;;  %v1270_v51 = vpop.f32.mrf.mxu0  ;;  %v1383_v22 = vpop.f32.mrf.mxu1  ;;  %1656 = vmatmul.f32.gmra.mxu3 %v3860_v16  ;;  %1757 = vst [vmem:[#allocation2 + $0x1a8] sm:$0xff] %v1607_v18 }
 0x253   : > { %v1384_v58 = vadd.f32 %v1383_v22, %v1270_v51 }
 0x255   : > { %v1496_v46 = vpop.f32.mrf.mxu2  ;;  %1317 = vmatmul.f32.gmra.mxu0 %v3865_v31  ;;  %1430 = vmatmul.f32.gmra.mxu1 %v3868_v32  ;;  %v1609_v59 = vpop.f32.mrf.mxu3 }
 0x256   : > { %v1497_v1 = vadd.f32 %v1496_v46, %v1384_v58 }
 0x258   : > { %v1610_v23 = vadd.f32 %v1609_v59, %v1497_v1 }
 0x25a   : > { %1546 = vmatmul.f32.gmra.mxu2 %v3873_v39  ;;  %v1273_v2 = vpop.f32.mrf.mxu0  ;;  %v1386_v38 = vpop.f32.mrf.mxu1  ;;  %1659 = vmatmul.f32.gmra.mxu3 %v3876_v40  ;;  %1759 = vst [vmem:[#allocation2 + $0x28] sm:$0xff] %v1610_v23 }
 0x25b   : > { %v1387_v15 = vadd.f32 %v1386_v38, %v1273_v2 }
 0x25d   : > { %v1499_v29 = vpop.f32.mrf.mxu2  ;;  %1320 = vmatmul.f32.gmra.mxu0 %v3881_v52  ;;  %1433 = vmatmul.f32.gmra.mxu1 %v3884_v53  ;;  %v1612_v16 = vpop.f32.mrf.mxu3 }
 0x25e   : > { %v1500_v31 = vadd.f32 %v1499_v29, %v1387_v15 }
 0x260   : > { %v1613_v28 = vadd.f32 %v1612_v16, %v1500_v31 }
 0x262   : > { %1549 = vmatmul.f32.gmra.mxu2 %v3889_v0  ;;  %v1276_v32 = vpop.f32.mrf.mxu0  ;;  %v1389_v30 = vpop.f32.mrf.mxu1  ;;  %1662 = vmatmul.f32.gmra.mxu3 %v3892_v3  ;;  %1761 = vst [vmem:[#allocation2 + $0xf8] sm:$0xff] %v1613_v28  ;;  %v4951_v3 = vld [vmem:[#allocation31_spill] sm:$0xff] }
 0x263   : > { %v1390_v39 = vadd.f32 %v1389_v30, %v1276_v32 }
 0x265   : > { %v1502_v34 = vpop.f32.mrf.mxu2  ;;  %1323 = vmatmul.f32.gmra.mxu0 %v3897_v9  ;;  %1436 = vmatmul.f32.gmra.mxu1 %v3900_v10  ;;  %v1615_v40 = vpop.f32.mrf.mxu3  ;;  %v4952_v10 = vld [vmem:[#allocation32_spill] sm:$0xff] }
 0x266   : > { %v1503_v52 = vadd.f32 %v1502_v34, %v1390_v39 }
 0x268   : > { %v1616_v21 = vadd.f32 %v1615_v40, %v1503_v52 }
 0x26a   : > { %1552 = vmatmul.f32.gmra.mxu2 %v3905_v25  ;;  %v1279_v53 = vpop.f32.mrf.mxu0  ;;  %v1392_v35 = vpop.f32.mrf.mxu1  ;;  %1665 = vmatmul.f32.gmra.mxu3 %v3908_v33  ;;  %1763 = vst [vmem:[#allocation2 + $0x30] sm:$0xff] %v1616_v21  ;;  %v4954_v25 = vld [vmem:[#allocation33_spill] sm:$0xff] }
 0x26b   : > { %v1393_v0 = vadd.f32 %v1392_v35, %v1279_v53 }
 0x26d   : > { %v1505_v54 = vpop.f32.mrf.mxu2  ;;  %1326 = vmatmul.f32.gmra.mxu0 %v3913_v43  ;;  %1439 = vmatmul.f32.gmra.mxu1 %v4951_v3  ;;  %v1618_v44 = vpop.f32.mrf.mxu3 }
 0x26e   : > { %v1506_v9 = vadd.f32 %v1505_v54, %v1393_v0 }
 0x270   : > { %v1619_v57 = vadd.f32 %v1618_v44, %v1506_v9 }
 0x272   : > { %1555 = vmatmul.f32.gmra.mxu2 %v4952_v10  ;;  %v1282_v45 = vpop.f32.mrf.mxu0  ;;  %v1395_v49 = vpop.f32.mrf.mxu1  ;;  %1668 = vmatmul.f32.gmra.mxu3 %v4954_v25  ;;  %1765 = vst [vmem:[#allocation2] sm:$0xff] %v1619_v57 }
 0x273   : > { %v1396_v47 = vadd.f32 %v1395_v49, %v1282_v45 }
 0x275   : > { %v1508_v33 = vpop.f32.mrf.mxu2  ;;  %1329 = vmatmul.f32.gmra.mxu0 %v4955_v50  ;;  %1442 = vmatmul.f32.gmra.mxu1 %v4956_v62  ;;  %v1621_v43 = vpop.f32.mrf.mxu3 }
 0x276   : > { %v1509_v55 = vadd.f32 %v1508_v33, %v1396_v47 }
 0x278   : > { %v1622_v36 = vadd.f32 %v1621_v43, %v1509_v55 }
 0x27a   : > { %v1285_v56 = vpop.f32.mrf.mxu0  ;;  %v1398_v60 = vpop.f32.mrf.mxu1  ;;  %1767 = vst [vmem:[#allocation2 + $0x8] sm:$0xff] %v1622_v36 }
 0x27b   : > { %v1399_v14 = vadd.f32 %v1398_v60, %v1285_v56 }
 0x27d   : > { %v1511_v61 = vpop.f32.mrf.mxu2  ;;  %v1624_v8 = vpop.f32.mrf.mxu3 }
 0x27e   : > { %v1512_v6 = vadd.f32 %v1511_v61, %v1399_v14 }
 0x280   : > { %v1625_v5 = vadd.f32 %v1624_v8, %v1512_v6 }
 0x282   : > { %v1288_v7 = vpop.f32.mrf.mxu0  ;;  %v1401_v11 = vpop.f32.mrf.mxu1  ;;  %1769 = vst [vmem:[#allocation2 + $0x1d0] sm:$0xff] %v1625_v5 }
 0x283   : > { %v1402_v4 = vadd.f32 %v1401_v11, %v1288_v7 }
 0x285   : > { %v1514_v12 = vpop.f32.mrf.mxu2  ;;  %v1627_v13 = vpop.f32.mrf.mxu3 }
 0x286   : > { %v1515_v19 = vadd.f32 %v1514_v12, %v1402_v4 }
 0x288   : > { %v1628_v24 = vadd.f32 %v1627_v13, %v1515_v19 }
 0x28a   : > { %v1291_v20 = vpop.f32.mrf.mxu0  ;;  %v1404_v26 = vpop.f32.mrf.mxu1  ;;  %1771 = vst [vmem:[#allocation2 + $0xc8] sm:$0xff] %v1628_v24 }
 0x28b   : > { %v1405_v37 = vadd.f32 %v1404_v26, %v1291_v20 }
 0x28d   : > { %v1517_v27 = vpop.f32.mrf.mxu2  ;;  %v1630_v17 = vpop.f32.mrf.mxu3 }
 0x28e   : > { %v1518_v41 = vadd.f32 %v1517_v27, %v1405_v37 }
 0x290   : > { %v1631_v63 = vadd.f32 %v1630_v17, %v1518_v41 }
 0x292   : > { %v1294_v42 = vpop.f32.mrf.mxu0  ;;  %v1407_v48 = vpop.f32.mrf.mxu1  ;;  %1773 = vst [vmem:[#allocation2 + $0x1f8] sm:$0xff] %v1631_v63 }
 0x293   : > { %v1408_v18 = vadd.f32 %v1407_v48, %v1294_v42 }
 0x295   : > { %v1520_v51 = vpop.f32.mrf.mxu2  ;;  %v1633_v22 = vpop.f32.mrf.mxu3 }
 0x296   : > { %v1521_v58 = vadd.f32 %v1520_v51, %v1408_v18 }
 0x298   : > { %v1634_v46 = vadd.f32 %v1633_v22, %v1521_v58 }
 0x29a   : > { %v1297_v59 = vpop.f32.mrf.mxu0  ;;  %v1410_v1 = vpop.f32.mrf.mxu1  ;;  %1775 = vst [vmem:[#allocation2 + $0x128] sm:$0xff] %v1634_v46 }
 0x29b   : > { %v1411_v23 = vadd.f32 %v1410_v1, %v1297_v59 }
 0x29d   : > { %v1523_v2 = vpop.f32.mrf.mxu2  ;;  %v1636_v38 = vpop.f32.mrf.mxu3 }
 0x29e   : > { %v1524_v15 = vadd.f32 %v1523_v2, %v1411_v23 }
 0x2a0   : > { %v1637_v29 = vadd.f32 %v1636_v38, %v1524_v15 }
 0x2a2   : > { %v1300_v16 = vpop.f32.mrf.mxu0  ;;  %v1413_v31 = vpop.f32.mrf.mxu1  ;;  %1777 = vst [vmem:[#allocation2 + $0x1f0] sm:$0xff] %v1637_v29 }
 0x2a3   : > { %v1414_v28 = vadd.f32 %v1413_v31, %v1300_v16 }
 0x2a5   : > { %v1526_v32 = vpop.f32.mrf.mxu2  ;;  %v1639_v30 = vpop.f32.mrf.mxu3 }
 0x2a6   : > { %v1527_v39 = vadd.f32 %v1526_v32, %v1414_v28 }
 0x2a8   : > { %v1640_v34 = vadd.f32 %v1639_v30, %v1527_v39 }
 0x2aa   : > { %v1303_v40 = vpop.f32.mrf.mxu0  ;;  %v1416_v52 = vpop.f32.mrf.mxu1  ;;  %1779 = vst [vmem:[#allocation2 + $0x78] sm:$0xff] %v1640_v34 }
 0x2ab   : > { %v1417_v21 = vadd.f32 %v1416_v52, %v1303_v40 }
 0x2ad   : > { %v1529_v53 = vpop.f32.mrf.mxu2  ;;  %v1642_v35 = vpop.f32.mrf.mxu3 }
 0x2ae   : > { %v1530_v0 = vadd.f32 %v1529_v53, %v1417_v21 }
 0x2b0   : > { %v1643_v54 = vadd.f32 %v1642_v35, %v1530_v0 }
 0x2b2   : > { %v1306_v3 = vpop.f32.mrf.mxu0  ;;  %v1419_v44 = vpop.f32.mrf.mxu1  ;;  %1781 = vst [vmem:[#allocation2 + $0x90] sm:$0xff] %v1643_v54 }
 0x2b3   : > { %v1420_v9 = vadd.f32 %v1419_v44, %v1306_v3 }
 0x2b5   : > { %v1532_v57 = vpop.f32.mrf.mxu2  ;;  %v1645_v10 = vpop.f32.mrf.mxu3 }
 0x2b6   : > { %v1533_v45 = vadd.f32 %v1532_v57, %v1420_v9 }
 0x2b8   : > { %v1646_v49 = vadd.f32 %v1645_v10, %v1533_v45 }
 0x2ba   : > { %v1309_v25 = vpop.f32.mrf.mxu0  ;;  %v1422_v47 = vpop.f32.mrf.mxu1  ;;  %1783 = vst [vmem:[#allocation2 + $0xd0] sm:$0xff] %v1646_v49 }
 0x2bb   : > { %v1423_v33 = vadd.f32 %v1422_v47, %v1309_v25 }
 0x2bd   : > { %v1535_v50 = vpop.f32.mrf.mxu2  ;;  %v1648_v62 = vpop.f32.mrf.mxu3 }
 0x2be   : > { %v1536_v43 = vadd.f32 %v1535_v50, %v1423_v33 }
 0x2c0   : > { %v1649_v55 = vadd.f32 %v1648_v62, %v1536_v43 }
 0x2c2   : > { %v1312_v36 = vpop.f32.mrf.mxu0  ;;  %v1425_v56 = vpop.f32.mrf.mxu1  ;;  %1785 = vst [vmem:[#allocation2 + $0x88] sm:$0xff] %v1649_v55 }
 0x2c3   : > { %v1426_v60 = vadd.f32 %v1425_v56, %v1312_v36 }
 0x2c5   : > { %v1538_v14 = vpop.f32.mrf.mxu2  ;;  %v1651_v61 = vpop.f32.mrf.mxu3 }
 0x2c6   : > { %v1539_v8 = vadd.f32 %v1538_v14, %v1426_v60 }
 0x2c8   : > { %v1652_v6 = vadd.f32 %v1651_v61, %v1539_v8 }
 0x2ca   : > { %v1315_v5 = vpop.f32.mrf.mxu0  ;;  %v1428_v7 = vpop.f32.mrf.mxu1  ;;  %1787 = vst [vmem:[#allocation2 + $0x1c8] sm:$0xff] %v1652_v6 }
 0x2cb   : > { %v1429_v11 = vadd.f32 %v1428_v7, %v1315_v5 }
 0x2cd   : > { %v1541_v4 = vpop.f32.mrf.mxu2  ;;  %v1654_v12 = vpop.f32.mrf.mxu3 }
 0x2ce   : > { %v1542_v13 = vadd.f32 %v1541_v4, %v1429_v11 }
 0x2d0   : > { %v1655_v19 = vadd.f32 %v1654_v12, %v1542_v13 }
 0x2d2   : > { %v1318_v24 = vpop.f32.mrf.mxu0  ;;  %v1431_v20 = vpop.f32.mrf.mxu1  ;;  %1789 = vst [vmem:[#allocation2 + $0x178] sm:$0xff] %v1655_v19 }
 0x2d3   : > { %v1432_v26 = vadd.f32 %v1431_v20, %v1318_v24 }
 0x2d5   : > { %v1544_v37 = vpop.f32.mrf.mxu2  ;;  %v1657_v27 = vpop.f32.mrf.mxu3 }
 0x2d6   : > { %v1545_v17 = vadd.f32 %v1544_v37, %v1432_v26 }
 0x2d8   : > { %v1658_v41 = vadd.f32 %v1657_v27, %v1545_v17 }
 0x2da   : > { %v1321_v63 = vpop.f32.mrf.mxu0  ;;  %v1434_v42 = vpop.f32.mrf.mxu1  ;;  %1791 = vst [vmem:[#allocation2 + $0x190] sm:$0xff] %v1658_v41 }
 0x2db   : > { %v1435_v48 = vadd.f32 %v1434_v42, %v1321_v63 }
 0x2dd   : > { %v1547_v18 = vpop.f32.mrf.mxu2  ;;  %v1660_v51 = vpop.f32.mrf.mxu3 }
 0x2de   : > { %v1548_v22 = vadd.f32 %v1547_v18, %v1435_v48 }
 0x2e0   : > { %v1661_v58 = vadd.f32 %v1660_v51, %v1548_v22 }
 0x2e2   : > { %v1324_v46 = vpop.f32.mrf.mxu0  ;;  %v1437_v59 = vpop.f32.mrf.mxu1  ;;  %1793 = vst [vmem:[#allocation2 + $0x38] sm:$0xff] %v1661_v58 }
 0x2e3   : > { %v1438_v1 = vadd.f32 %v1437_v59, %v1324_v46 }
 0x2e5   : > { %v1550_v23 = vpop.f32.mrf.mxu2  ;;  %v1663_v2 = vpop.f32.mrf.mxu3 }
 0x2e6   : > { %v1551_v38 = vadd.f32 %v1550_v23, %v1438_v1 }
 0x2e8   : > { %v1664_v15 = vadd.f32 %v1663_v2, %v1551_v38 }
 0x2ea   : > { %v1327_v29 = vpop.f32.mrf.mxu0  ;;  %v1440_v16 = vpop.f32.mrf.mxu1  ;;  %1795 = vst [vmem:[#allocation2 + $0x1c0] sm:$0xff] %v1664_v15 }
 0x2eb   : > { %v1441_v31 = vadd.f32 %v1440_v16, %v1327_v29 }
 0x2ed   : > { %v1553_v28 = vpop.f32.mrf.mxu2  ;;  %v1666_v32 = vpop.f32.mrf.mxu3 }
 0x2ee   : > { %v1554_v30 = vadd.f32 %v1553_v28, %v1441_v31 }
 0x2f0   : > { %v1667_v39 = vadd.f32 %v1666_v32, %v1554_v30 }
 0x2f2   : > { %v1330_v34 = vpop.f32.mrf.mxu0  ;;  %v1443_v40 = vpop.f32.mrf.mxu1  ;;  %1797 = vst [vmem:[#allocation2 + $0x10] sm:$0xff] %v1667_v39 }
 0x2f3   : > { %v1444_v52 = vadd.f32 %v1443_v40, %v1330_v34 }
 0x2f5   : > { %v1556_v21 = vpop.f32.mrf.mxu2  ;;  %v1669_v53 = vpop.f32.mrf.mxu3 }
 0x2f6   : > { %v1557_v35 = vadd.f32 %v1556_v21, %v1444_v52  ;;  %1804 = sbr.rel (!%p1800_p8) target bundleno = 1054 (0x41e), region = 60 }
 0x2f8   : > { %v1670_v0 = vadd.f32 %v1669_v53, %v1557_v35 }
 0x2fa   : > { %1799 = vst [vmem:[#allocation2 + $0xa0] sm:$0xff] %v1670_v0 }
 0x2fb   : > { %v4070_v54 = vld [vmem:[#allocation2 + $0xb0] sm:$0xff]  ;;  %s3250_s23 = smov 64   ;;  %v4078_v44 = vld [vmem:[#allocation2 + $0x180] sm:$0xff]  ;;  %v4082_v9 = vld [vmem:[#allocation2 + $0xd8] sm:$0xff] }
 0x2fc   : > { %v4072_v3 = vld [vmem:[#allocation2 + $0x50] sm:$0xff]  ;;  %1933 = vrot.lane.b32.xlu0 %v4070_v54, %s3250_s23  ;;  %1941 = vrot.lane.b32.xlu2 %v4078_v44, %s3250_s23  ;;  %v4090_v10 = vld [vmem:[#allocation2 + $0x118] sm:$0xff]  ;;  %v4094_v45 = vld [vmem:[#allocation2 + $0x120] sm:$0xff] }
 0x2fd   : > { %1937 = vrot.lane.b32.xlu1 %v4072_v3, %s3250_s23  ;;  %v4084_v57 = vld [vmem:[#allocation2 + $0x130] sm:$0xff]  ;;  %v4096_v49 = vld [vmem:[#allocation2 + $0x108] sm:$0xff]  ;;  %v4102_v25 = vld [vmem:[#allocation2 + $0xe0] sm:$0xff] }
 0x2fe   : > { %v4106_v47 = vld [vmem:[#allocation2 + $0x138] sm:$0xff]  ;;  %v4108_v33 = vld [vmem:[#allocation2 + $0x80] sm:$0xff]  ;;  %v4118_v62 = vld [vmem:[#allocation2 + $0x1e8] sm:$0xff] }
 0x2ff   : > { %v4114_v50 = vld [vmem:[#allocation2 + $0x1b8] sm:$0xff]  ;;  %v4120_v43 = vld [vmem:[#allocation2 + $0x160] sm:$0xff]  ;;  %v4130_v36 = vld [vmem:[#allocation2 + $0xf0] sm:$0xff] }
 0x300   : > { %v4126_v55 = vld [vmem:[#allocation2 + $0x1e0] sm:$0xff]  ;;  %v4132_v56 = vld [vmem:[#allocation2 + $0x148] sm:$0xff]  ;;  %v1808_v5 = vld [vmem:[#allocation2 + $0x18] sm:$0xff] }
 0x301   : > { %v4138_v60 = vld [vmem:[#allocation2 + $0x100] sm:$0xff]  ;;  %v4151_v8 = vld [vmem:[%s3504_s21 + $0x8] sm:$0xff]  ;;  %v4162_v4 = vld [vmem:[#allocation2 + $0x70] sm:$0xff] }
 0x302   : > { %v4142_v14 = vld [vmem:[#allocation2 + $0x40] sm:$0xff]  ;;  %v4156_v7 = vmul.f32 %v4151_v8, %v1808_v5  ;;  %v4160_v11 = vld [vmem:[#allocation2 + $0xe8] sm:$0xff]  ;;  %v4165_v12 = vld [vmem:[%s3504_s21 + $0x10] sm:$0xff] }
 0x303   : > { %v4144_v61 = vld [vmem:[#allocation2 + $0x20] sm:$0xff]  ;;  %v1810_v13 = vld [vmem:[#allocation2 + $0x168] sm:$0xff]  ;;  %v4172_v24 = vld [vmem:[#allocation2 + $0x1d8] sm:$0xff] }
 0x304   : > { %1935 = vrot.lane.b32.xlu0 %v4082_v9, %s3250_s23  ;;  %1943 = vrot.lane.b32.xlu2 %v4090_v10, %s3250_s23  ;;  %v4153_v6 = vld [vmem:[#allocation2 + $0x1a0] sm:$0xff]  ;;  %v4175_v20 = vmul.f32 %v4165_v12, %v1810_v13  ;;  %v1814_v26 = vld [vmem:[#allocation2 + $0x110] sm:$0xff]  ;;  %v4181_v27 = vld [vmem:[#allocation2 + $0xb8] sm:$0xff] }
 0x305   : > { %1939 = vrot.lane.b32.xlu1 %v4084_v57, %s3250_s23  ;;  %v1873_v19 = vld [vmem:[%s3504_s21 + $0x20] sm:$0xff]  ;;  %v4183_v17 = vld [vmem:[#allocation2 + $0xa8] sm:$0xff]  ;;  %v1816_v63 = vld [vmem:[#allocation2 + $0x98] sm:$0xff] }
 0x306   : > { %v4177_v37 = vmul.f32 %v1873_v19, %v1814_v26  ;;  %v1874_v41 = vld [vmem:[%s3504_s21 + $0x28] sm:$0xff]  ;;  %v4191_v42 = vld [vmem:[%s3504_s21 + $0x38] sm:$0xff]  ;;  %v4193_v48 = vld [vmem:[#allocation2 + $0x170] sm:$0xff]  ;;  %v2001_v28 = vmul.f32 %v1873_v19, %v4078_v44 }
 0x307   : > { %v4195_v18 = vmul.f32 %v1874_v41, %v1816_v63  ;;  %v1820_v51 = vld [vmem:[#allocation2 + $0x60] sm:$0xff]  ;;  %v4202_v58 = vld [vmem:[#allocation2 + $0x68] sm:$0xff]  ;;  %v4204_v46 = vld [vmem:[#allocation2 + $0x198] sm:$0xff]  ;;  %v2002_v21 = vmul.f32 %v1874_v41, %v4090_v10 }
 0x308   : > { %v4198_v22 = vmul.f32 %v4191_v42, %v1820_v51  ;;  %v1877_v59 = vld [vmem:[%s3504_s21 + $0x40] sm:$0xff]  ;;  %v1822_v1 = vld [vmem:[#allocation2 + $0x188] sm:$0xff]  ;;  %v4217_v38 = vld [vmem:[#allocation2 + $0x158] sm:$0xff] }
 0x309   : > { %v4211_v23 = vld [vmem:[#allocation2 + $0xc0] sm:$0xff]  ;;  %v4213_v2 = vmul.f32 %v1877_v59, %v1822_v1  ;;  %v4219_v15 = vld [vmem:[#allocation2 + $0x58] sm:$0xff]  ;;  %v4225_v29 = vld [vmem:[#allocation2 + $0x1b0] sm:$0xff]  ;;  %v2005_v10 = vmul.f32 %v1877_v59, %v4102_v25 }
 0x30a   : > { %v4231_v16 = vld [vmem:[#allocation2 + $0x48] sm:$0xff]  ;;  %v4236_v31 = vld [vmem:[%s3510_s26 + $0x20] sm:$0xff]  ;;  %v4242_v34 = vld [vmem:[#allocation2 + $0x150] sm:$0xff] }
 0x30b   : > { %v4247_v52 = vld [vmem:[%s3510_s26 + $0x28] sm:$0xff]  ;;  %v4254_v44 = vld [vmem:[#allocation2 + $0x140] sm:$0xff] }
 0x30c   : > { %1945 = vrot.lane.b32.xlu0 %v4094_v45, %s3250_s23  ;;  %1949 = vrot.lane.b32.xlu2 %v4102_v25, %s3250_s23  ;;  %v4262_v19 = vld [vmem:[#allocation2 + $0x1a8] sm:$0xff]  ;;  %v4268_v41 = vld [vmem:[%s3504_s21] sm:$0xff]  ;;  %v4279_v25 = vld [vmem:[%s3510_s26 + $0x10] sm:$0xff] }
 0x30d   : > { %1947 = vrot.lane.b32.xlu1 %v4096_v49, %s3250_s23  ;;  %4957 = vst [vmem:[#allocation36_spill] sm:$0xff] %v4262_v19  ;;  %v1997_v59 = vmul.f32 %v4268_v41, %v4070_v54  ;;  %v4295_v54 = vld [vmem:[%s3510_s26 + $0x58] sm:$0xff] }
 0x30e   : > { %4960 = vst [vmem:[#allocation39_spill] sm:$0xff] %v4295_v54 }
 0x314   : > { %1951 = vrot.lane.b32.xlu0 %v4106_v47, %s3250_s23  ;;  %1955 = vrot.lane.b32.xlu2 %v4114_v50, %s3250_s23 }
 0x315   : > { %1953 = vrot.lane.b32.xlu1 %v4108_v33, %s3250_s23 }
 0x31c   : > { %1957 = vrot.lane.b32.xlu0 %v4118_v62, %s3250_s23  ;;  %1961 = vrot.lane.b32.xlu2 %v4126_v55, %s3250_s23 }
 0x31d   : > { %1959 = vrot.lane.b32.xlu1 %v4120_v43, %s3250_s23 }
 0x324   : > { %1963 = vrot.lane.b32.xlu0 %v4130_v36, %s3250_s23  ;;  %1967 = vrot.lane.b32.xlu2 %v4138_v60, %s3250_s23 }
 0x325   : > { %1965 = vrot.lane.b32.xlu1 %v4132_v56, %s3250_s23 }
 0x32c   : > { %1969 = vrot.lane.b32.xlu0 %v4142_v14, %s3250_s23  ;;  %1973 = vrot.lane.b32.xlu2 %v4153_v6, %s3250_s23 }
 0x32d   : > { %1971 = vrot.lane.b32.xlu1 %v4144_v61, %s3250_s23 }
 0x334   : > { %1975 = vrot.lane.b32.xlu0 %v4160_v11, %s3250_s23  ;;  %1979 = vrot.lane.b32.xlu2 %v4172_v24, %s3250_s23 }
 0x335   : > { %1977 = vrot.lane.b32.xlu1 %v4162_v4, %s3250_s23 }
 0x33c   : > { %1981 = vrot.lane.b32.xlu0 %v4181_v27, %s3250_s23  ;;  %1985 = vrot.lane.b32.xlu2 %v4193_v48, %s3250_s23 }
 0x33d   : > { %1983 = vrot.lane.b32.xlu1 %v4183_v17, %s3250_s23 }
 0x344   : > { %1987 = vrot.lane.b32.xlu0 %v4202_v58, %s3250_s23  ;;  %1991 = vrot.lane.b32.xlu2 %v4211_v23, %s3250_s23 }
 0x345   : > { %1989 = vrot.lane.b32.xlu1 %v4204_v46, %s3250_s23 }
 0x34c   : > { %1993 = vrot.lane.b32.xlu0 %v4217_v38, %s3250_s23  ;;  %2157 = vrot.lane.b32.xlu2 %v4225_v29, %s3250_s23 }
 0x34d   : > { %1995 = vrot.lane.b32.xlu1 %v4219_v15, %s3250_s23 }
 0x354   : > { %2159 = vrot.lane.b32.xlu0 %v1808_v5, %s3250_s23  ;;  %2163 = vrot.lane.b32.xlu2 %v4231_v16, %s3250_s23 }
 0x355   : > { %2161 = vrot.lane.b32.xlu1 %v1810_v13, %s3250_s23  ;;  %v4259_v13 = vld [vmem:[%s3510_s26 + $0x40] sm:$0xff] }
 0x356   : > { %v1942_v32 = vpop.permute.xlu2 %1941 }
 0x357   : > { %v2033_v30 = vmul.f32 %v1942_v32, %v4236_v31 }
 0x359   : > { %v2065_v39 = vadd.f32 %v2033_v30, %v2001_v28  ;;  %v1999_v28 = vmul.f32 %v4165_v12, %v4072_v3  ;;  %v4285_v30 = vld [vmem:[#allocation2 + $0xf8] sm:$0xff] }
 0x35b   : > { %v2097_v40 = vpack.c.bf16 %v2065_v39, %v2065_v39  ;;  %v4288_v39 = vld [vmem:[%s3504_s21 + $0x58] sm:$0xff] }
 0x35c   : > { %2165 = vrot.lane.b32.xlu0 %v1814_v26, %s3250_s23  ;;  %2169 = vrot.lane.b32.xlu2 %v4242_v34, %s3250_s23  ;;  %v4264_v26 = vld [vmem:[#allocation2 + $0x28] sm:$0xff]  ;;  %4959 = vst [vmem:[#allocation38_spill] sm:$0xff] %v4288_v39  ;;  %v2008_v3 = vmul.f32 %v4288_v39, %v4114_v50 }
 0x35d   : > { %2167 = vrot.lane.b32.xlu1 %v1816_v63, %s3250_s23  ;;  %2129 = vst [vmem:[%s4066_s9 + $0x20] sm:$0xf] %v2097_v40  ;;  %v4311_v50 = vld [vmem:[%s3510_s26 + $0x8] sm:$0xff] }
 0x35e   : > { %v1944_v53 = vpop.permute.xlu2 %1943  ;;  %4958 = vst [vmem:[#allocation37_spill] sm:$0xff] %v4264_v26 }
 0x35f   : > { %v2034_v35 = vmul.f32 %v1944_v53, %v4247_v52 }
 0x361   : > { %v2066_v0 = vadd.f32 %v2034_v35, %v2002_v21 }
 0x363   : > { %v2098_v5 = vpack.c.bf16 %v2066_v0, %v2066_v0 }
 0x364   : > { %2171 = vrot.lane.b32.xlu0 %v1820_v51, %s3250_s23  ;;  %2175 = vrot.lane.b32.xlu2 %v4254_v44, %s3250_s23 }
 0x365   : > { %2173 = vrot.lane.b32.xlu1 %v1822_v1, %s3250_s23  ;;  %2130 = vst [vmem:[%s4066_s9 + $0x28] sm:$0xf] %v2098_v5  ;;  %v4274_v1 = vld [vmem:[%s3510_s26] sm:$0xff]  ;;  %v4299_v5 = vld [vmem:[#allocation2 + $0x30] sm:$0xff] }
 0x366   : > { %v1950_v63 = vpop.permute.xlu2 %1949  ;;  %4961 = vst [vmem:[#allocation40_spill] sm:$0xff] %v4299_v5 }
 0x367   : > { %v2037_v51 = vmul.f32 %v1950_v63, %v4259_v13  ;;  %v4301_v63 = vld [vmem:[#allocation2] sm:$0xff] }
 0x368   : > { %4962 = vst [vmem:[#allocation41_spill] sm:$0xff] %v4301_v63 }
 0x369   : > { %v2069_v32 = vadd.f32 %v2037_v51, %v2005_v10  ;;  %v4305_v51 = vld [vmem:[%s3504_s21 + $0x18] sm:$0xff] }
 0x36b   : > { %v2101_v0 = vpack.c.bf16 %v2069_v32, %v2069_v32 }
 0x36c   : > { %2177 = vrot.lane.b32.xlu0 %v4262_v19, %s3250_s23  ;;  %2181 = vrot.lane.b32.xlu2 %v4285_v30, %s3250_s23 }
 0x36d   : > { %2179 = vrot.lane.b32.xlu1 %v4264_v26, %s3250_s23  ;;  %2133 = vst [vmem:[%s4066_s9 + $0x40] sm:$0xf] %v2101_v0  ;;  %v4323_v0 = vld [vmem:[#allocation2 + $0x8] sm:$0xff] }
 0x36e   : > { %v1934_v40 = vpop.permute.xlu0 %1933  ;;  %v1956_v32 = vpop.permute.xlu2 %1955 }
 0x36f   : > { %v1938_v21 = vpop.permute.xlu1 %1937  ;;  %v2029_v53 = vmul.f32 %v1934_v40, %v4274_v1  ;;  %v2040_v26 = vmul.f32 %v1956_v32, %v4295_v54 }
 0x370   : > { %v2031_v35 = vmul.f32 %v1938_v21, %v4279_v25 }
 0x371   : > { %v2061_v12 = vadd.f32 %v2029_v53, %v1997_v59  ;;  %v4316_v59 = vld [vmem:[%s3510_s26 + $0x18] sm:$0xff]  ;;  %v2000_v53 = vmul.f32 %v4305_v51, %v4084_v57  ;;  %v4334_v57 = vld [vmem:[%s3510_s26 + $0x70] sm:$0xff] }
 0x372   : > { %v2063_v10 = vadd.f32 %v2031_v35, %v1999_v28  ;;  %v1998_v28 = vmul.f32 %v4151_v8, %v4082_v9  ;;  %v2072_v35 = vadd.f32 %v2040_v26, %v2008_v3  ;;  %4964 = vst [vmem:[#allocation43_spill] sm:$0xff] %v4334_v57  ;;  %v4338_v3 = vld [vmem:[#allocation2 + $0x1d0] sm:$0xff] }
 0x373   : > { %v2093_v40 = vpack.c.bf16 %v2061_v12, %v2061_v12  ;;  %v4326_v12 = vld [vmem:[%s3504_s21 + $0x70] sm:$0xff]  ;;  %4965 = vst [vmem:[#allocation44_spill] sm:$0xff] %v4338_v3 }
 0x374   : > { %v2095_v21 = vpack.c.bf16 %v2063_v10, %v2063_v10  ;;  %2183 = vrot.lane.b32.xlu0 %v4299_v5, %s3250_s23  ;;  %4963 = vst [vmem:[#allocation42_spill] sm:$0xff] %v4326_v12  ;;  %v2104_v9 = vpack.c.bf16 %v2072_v35, %v2072_v35  ;;  %2187 = vrot.lane.b32.xlu2 %v4323_v0, %s3250_s23  ;;  %v4344_v35 = vld [vmem:[%s3504_s21 + $0x30] sm:$0xff] }
 0x375   : > { %2185 = vrot.lane.b32.xlu1 %v4301_v63, %s3250_s23  ;;  %2125 = vst [vmem:[%s4066_s9] sm:$0xf] %v2093_v40  ;;  %v2011_v8 = vmul.f32 %v4326_v12, %v4126_v55  ;;  %v4350_v55 = vld [vmem:[%s3510_s26 + $0x30] sm:$0xff] }
 0x376   : > { %2127 = vst [vmem:[%s4066_s9 + $0x10] sm:$0xf] %v2095_v21  ;;  %v1936_v10 = vpop.permute.xlu0 %1935  ;;  %v4340_v21 = vld [vmem:[#allocation2 + $0xc8] sm:$0xff] }
 0x377   : > { %v1940_v32 = vpop.permute.xlu1 %1939  ;;  %v2030_v63 = vmul.f32 %v1936_v10, %v4311_v50  ;;  %4966 = vst [vmem:[#allocation45_spill] sm:$0xff] %v4340_v21  ;;  %v1962_v10 = vpop.permute.xlu2 %1961 }
 0x378   : > { %v2032_v5 = vmul.f32 %v1940_v32, %v4316_v59  ;;  %2136 = vst [vmem:[%s4066_s9 + $0x58] sm:$0xf] %v2104_v9  ;;  %v2043_v39 = vmul.f32 %v1962_v10, %v4334_v57  ;;  %v4362_v9 = vld [vmem:[#allocation2 + $0x1f8] sm:$0xff] }
 0x379   : > { %v2062_v26 = vadd.f32 %v2030_v63, %v1998_v28  ;;  %v2003_v63 = vmul.f32 %v4344_v35, %v4094_v45  ;;  %v2004_v28 = vmul.f32 %v4191_v42, %v4096_v49  ;;  %v4373_v49 = vld [vmem:[%s3510_s26 + $0x88] sm:$0xff] }
 0x37a   : > { %v2064_v40 = vadd.f32 %v2032_v5, %v2000_v53  ;;  %v4355_v5 = vld [vmem:[%s3510_s26 + $0x38] sm:$0xff]  ;;  %v2075_v53 = vadd.f32 %v2043_v39, %v2011_v8  ;;  %4968 = vst [vmem:[#allocation47_spill] sm:$0xff] %v4373_v49  ;;  %v4377_v8 = vld [vmem:[#allocation2 + $0x128] sm:$0xff] }
 0x37b   : > { %v2094_v32 = vpack.c.bf16 %v2062_v26, %v2062_v26  ;;  %v4365_v26 = vld [vmem:[%s3504_s21 + $0x88] sm:$0xff]  ;;  %4969 = vst [vmem:[#allocation48_spill] sm:$0xff] %v4377_v8 }
 0x37c   : > { %v2096_v54 = vpack.c.bf16 %v2064_v40, %v2064_v40  ;;  %2189 = vrot.lane.b32.xlu0 %v4338_v3, %s3250_s23  ;;  %4967 = vst [vmem:[#allocation46_spill] sm:$0xff] %v4365_v26  ;;  %v2107_v45 = vpack.c.bf16 %v2075_v53, %v2075_v53  ;;  %2193 = vrot.lane.b32.xlu2 %v4362_v9, %s3250_s23  ;;  %v4383_v53 = vld [vmem:[%s3504_s21 + $0x48] sm:$0xff] }
 0x37d   : > { %2191 = vrot.lane.b32.xlu1 %v4340_v21, %s3250_s23  ;;  %2126 = vst [vmem:[%s4066_s9 + $0x8] sm:$0xf] %v2094_v32  ;;  %v2014_v42 = vmul.f32 %v4365_v26, %v4138_v60  ;;  %v4379_v32 = vld [vmem:[#allocation2 + $0x1f0] sm:$0xff]  ;;  %v4392_v60 = vld [vmem:[%s3510_s26 + $0x48] sm:$0xff] }
 0x37e   : > { %2128 = vst [vmem:[%s4066_s9 + $0x18] sm:$0xf] %v2096_v54  ;;  %v1946_v40 = vpop.permute.xlu0 %1945 }
 0x37f   : > { %v1948_v10 = vpop.permute.xlu1 %1947  ;;  %v2035_v21 = vmul.f32 %v1946_v40, %v4350_v55  ;;  %4970 = vst [vmem:[#allocation49_spill] sm:$0xff] %v4379_v32  ;;  %v4386_v40 = vld [vmem:[%s3504_s21 + $0x50] sm:$0xff] }
 0x380   : > { %v2036_v3 = vmul.f32 %v1948_v10, %v4355_v5  ;;  %2139 = vst [vmem:[%s4066_s9 + $0x70] sm:$0xf] %v2107_v45  ;;  %v1968_v10 = vpop.permute.xlu2 %1967  ;;  %v4404_v45 = vld [vmem:[#allocation2 + $0x78] sm:$0xff] }
 0x381   : > { %v2067_v39 = vadd.f32 %v2035_v21, %v2003_v63  ;;  %v2046_v19 = vmul.f32 %v1968_v10, %v4373_v49  ;;  %v2006_v21 = vmul.f32 %v4383_v53, %v4106_v47  ;;  %v2007_v63 = vmul.f32 %v4386_v40, %v4108_v33  ;;  %4972 = vst [vmem:[#allocation51_spill] sm:$0xff] %v4404_v45  ;;  %v4415_v33 = vld [vmem:[%s3510_s26 + $0xa0] sm:$0xff]  ;;  %v4421_v49 = vld [vmem:[#allocation2 + $0xd0] sm:$0xff] }
 0x382   : > { %v2068_v54 = vadd.f32 %v2036_v3, %v2004_v28  ;;  %v4397_v3 = vld [vmem:[%s3510_s26 + $0x50] sm:$0xff]  ;;  %4974 = vst [vmem:[#allocation53_spill] sm:$0xff] %v4415_v33 }
 0x383   : > { %v2099_v57 = vpack.c.bf16 %v2067_v39, %v2067_v39  ;;  %4971 = vst [vmem:[#allocation50_spill] sm:$0xff] %v4397_v3  ;;  %v2078_v28 = vadd.f32 %v2046_v19, %v2014_v42  ;;  %v4407_v39 = vld [vmem:[%s3504_s21 + $0xa0] sm:$0xff]  ;;  %v4419_v42 = vld [vmem:[#allocation2 + $0x90] sm:$0xff] }
 0x384   : > { %v2100_v12 = vpack.c.bf16 %v2068_v54, %v2068_v54  ;;  %2195 = vrot.lane.b32.xlu0 %v4377_v8, %s3250_s23  ;;  %4973 = vst [vmem:[#allocation52_spill] sm:$0xff] %v4407_v39  ;;  %2199 = vrot.lane.b32.xlu2 %v4404_v45, %s3250_s23  ;;  %v2017_v19 = vmul.f32 %v4407_v39, %v4153_v6  ;;  %v4434_v6 = vld [vmem:[%s3510_s26 + $0x60] sm:$0xff] }
 0x385   : > { %2197 = vrot.lane.b32.xlu1 %v4379_v32, %s3250_s23  ;;  %2131 = vst [vmem:[%s4066_s9 + $0x30] sm:$0xf] %v2099_v57  ;;  %v2110_v47 = vpack.c.bf16 %v2078_v28, %v2078_v28  ;;  %v4425_v28 = vld [vmem:[%s3504_s21 + $0x60] sm:$0xff] }
 0x386   : > { %2132 = vst [vmem:[%s4066_s9 + $0x38] sm:$0xf] %v2100_v12  ;;  %v1952_v54 = vpop.permute.xlu0 %1951 }
 0x387   : > { %v1954_v10 = vpop.permute.xlu1 %1953  ;;  %v2038_v32 = vmul.f32 %v1952_v54, %v4392_v60  ;;  %4975 = vst [vmem:[#allocation54_spill] sm:$0xff] %v4419_v42  ;;  %v4428_v54 = vld [vmem:[%s3504_s21 + $0x68] sm:$0xff] }
 0x388   : > { %v2039_v8 = vmul.f32 %v1954_v10, %v4397_v3  ;;  %4976 = vst [vmem:[#allocation55_spill] sm:$0xff] %v4421_v49  ;;  %v1974_v10 = vpop.permute.xlu2 %1973 }
 0x389   : > { %v2070_v57 = vadd.f32 %v2038_v32, %v2006_v21  ;;  %2142 = vst [vmem:[%s4066_s9 + $0x88] sm:$0xf] %v2110_v47  ;;  %v2049_v3 = vmul.f32 %v1974_v10, %v4415_v33  ;;  %v2009_v32 = vmul.f32 %v4425_v28, %v4118_v62  ;;  %v2010_v21 = vmul.f32 %v4428_v54, %v4120_v43  ;;  %v4446_v47 = vld [vmem:[#allocation2 + $0x88] sm:$0xff]  ;;  %v4457_v43 = vld [vmem:[%s3510_s26 + $0xb8] sm:$0xff] }
 0x38a   : > { %v2071_v12 = vadd.f32 %v2039_v8, %v2007_v63  ;;  %v4439_v8 = vld [vmem:[%s3510_s26 + $0x68] sm:$0xff]  ;;  %4978 = vst [vmem:[#allocation57_spill] sm:$0xff] %v4446_v47  ;;  %v4463_v33 = vld [vmem:[#allocation2 + $0x178] sm:$0xff] }
 0x38b   : > { %v2102_v26 = vpack.c.bf16 %v2070_v57, %v2070_v57  ;;  %4977 = vst [vmem:[#allocation56_spill] sm:$0xff] %v4439_v8  ;;  %v2081_v63 = vadd.f32 %v2049_v3, %v2017_v19  ;;  %v4449_v57 = vld [vmem:[%s3504_s21 + $0xb8] sm:$0xff]  ;;  %v4461_v19 = vld [vmem:[#allocation2 + $0x1c8] sm:$0xff] }
 0x38c   : > { %v2103_v45 = vpack.c.bf16 %v2071_v12, %v2071_v12  ;;  %2201 = vrot.lane.b32.xlu0 %v4419_v42, %s3250_s23  ;;  %4979 = vst [vmem:[#allocation58_spill] sm:$0xff] %v4449_v57  ;;  %2205 = vrot.lane.b32.xlu2 %v4446_v47, %s3250_s23 }
 0x38d   : > { %2203 = vrot.lane.b32.xlu1 %v4421_v49, %s3250_s23  ;;  %2134 = vst [vmem:[%s4066_s9 + $0x48] sm:$0xf] %v2102_v26  ;;  %v2113_v62 = vpack.c.bf16 %v2081_v63, %v2081_v63  ;;  %v2020_v26 = vmul.f32 %v4449_v57, %v4172_v24  ;;  %v4467_v63 = vld [vmem:[%s3504_s21 + $0x78] sm:$0xff] }
 0x38e   : > { %2135 = vst [vmem:[%s4066_s9 + $0x50] sm:$0xf] %v2103_v45  ;;  %v1958_v12 = vpop.permute.xlu0 %1957  ;;  %v4476_v24 = vld [vmem:[%s3510_s26 + $0x78] sm:$0xff] }
 0x38f   : > { %v1960_v10 = vpop.permute.xlu1 %1959  ;;  %v2041_v49 = vmul.f32 %v1958_v12, %v4434_v6  ;;  %4980 = vst [vmem:[#allocation59_spill] sm:$0xff] %v4457_v43  ;;  %v4470_v12 = vld [vmem:[%s3504_s21 + $0x80] sm:$0xff] }
 0x390   : > { %v2042_v42 = vmul.f32 %v1960_v10, %v4439_v8  ;;  %4981 = vst [vmem:[#allocation60_spill] sm:$0xff] %v4461_v19  ;;  %v1980_v10 = vpop.permute.xlu2 %1979 }
 0x391   : > { %v2073_v3 = vadd.f32 %v2041_v49, %v2009_v32  ;;  %4982 = vst [vmem:[#allocation61_spill] sm:$0xff] %v4463_v33  ;;  %v2052_v8 = vmul.f32 %v1980_v10, %v4457_v43  ;;  %v4481_v49 = vld [vmem:[%s3510_s26 + $0x80] sm:$0xff]  ;;  %v2013_v32 = vmul.f32 %v4470_v12, %v4132_v56  ;;  %v4499_v56 = vld [vmem:[%s3510_s26 + $0xd0] sm:$0xff] }
 0x392   : > { %v2074_v45 = vadd.f32 %v2042_v42, %v2010_v21  ;;  %2145 = vst [vmem:[%s4066_s9 + $0xa0] sm:$0xf] %v2113_v62  ;;  %v2012_v42 = vmul.f32 %v4467_v63, %v4130_v36  ;;  %v4488_v62 = vld [vmem:[#allocation2 + $0x190] sm:$0xff]  ;;  %v4505_v43 = vld [vmem:[#allocation2 + $0x1c0] sm:$0xff] }
 0x393   : > { %v2105_v39 = vpack.c.bf16 %v2073_v3, %v2073_v3  ;;  %4983 = vst [vmem:[#allocation62_spill] sm:$0xff] %v4481_v49  ;;  %v2084_v21 = vadd.f32 %v2052_v8, %v2020_v26  ;;  %v4491_v3 = vld [vmem:[%s3504_s21 + $0xd0] sm:$0xff]  ;;  %v4503_v26 = vld [vmem:[#allocation2 + $0x38] sm:$0xff] }
 0x394   : > { %v2106_v47 = vpack.c.bf16 %v2074_v45, %v2074_v45  ;;  %2207 = vrot.lane.b32.xlu0 %v4461_v19, %s3250_s23  ;;  %4984 = vst [vmem:[#allocation63_spill] sm:$0xff] %v4488_v62  ;;  %2211 = vrot.lane.b32.xlu2 %v4488_v62, %s3250_s23 }
 0x395   : > { %2209 = vrot.lane.b32.xlu1 %v4463_v33, %s3250_s23  ;;  %2137 = vst [vmem:[%s4066_s9 + $0x60] sm:$0xf] %v2105_v39  ;;  %v2116_v36 = vpack.c.bf16 %v2084_v21, %v2084_v21  ;;  %v2023_v39 = vmul.f32 %v4491_v3, %v4193_v48  ;;  %v4509_v21 = vld [vmem:[%s3504_s21 + $0x90] sm:$0xff] }
 0x396   : > { %4985 = vst [vmem:[#allocation64_spill] sm:$0xff] %v4491_v3  ;;  %v1964_v45 = vpop.permute.xlu0 %1963  ;;  %v4518_v48 = vld [vmem:[%s3510_s26 + $0x90] sm:$0xff] }
 0x397   : > { %2138 = vst [vmem:[%s4066_s9 + $0x68] sm:$0xf] %v2106_v47  ;;  %v1966_v10 = vpop.permute.xlu1 %1965  ;;  %v2044_v33 = vmul.f32 %v1964_v45, %v4476_v24  ;;  %v4512_v45 = vld [vmem:[%s3504_s21 + $0x98] sm:$0xff] }
 0x398   : > { %v2045_v19 = vmul.f32 %v1966_v10, %v4481_v49  ;;  %4986 = vst [vmem:[#allocation65_spill] sm:$0xff] %v4499_v56  ;;  %v1986_v10 = vpop.permute.xlu2 %1985 }
 0x399   : > { %v2076_v8 = vadd.f32 %v2044_v33, %v2012_v42  ;;  %4987 = vst [vmem:[#allocation66_spill] sm:$0xff] %v4503_v26  ;;  %v2055_v49 = vmul.f32 %v1986_v10, %v4499_v56  ;;  %v4523_v33 = vld [vmem:[%s3510_s26 + $0x98] sm:$0xff]  ;;  %v2016_v42 = vmul.f32 %v4512_v45, %v4144_v61  ;;  %v4541_v61 = vld [vmem:[%s3510_s26 + $0xe8] sm:$0xff] }
 0x39a   : > { %v2077_v47 = vadd.f32 %v2045_v19, %v2013_v32  ;;  %4988 = vst [vmem:[#allocation67_spill] sm:$0xff] %v4505_v43  ;;  %v2015_v19 = vmul.f32 %v4509_v21, %v4142_v14 }
 0x39b   : > { %2148 = vst [vmem:[%s4066_s9 + $0xb8] sm:$0xf] %v2116_v36  ;;  %v2108_v57 = vpack.c.bf16 %v2076_v8, %v2076_v8  ;;  %v2087_v32 = vadd.f32 %v2055_v49, %v2023_v39  ;;  %v4530_v36 = vld [vmem:[#allocation2 + $0x10] sm:$0xff]  ;;  %v4533_v8 = vld [vmem:[%s3504_s21 + $0xe8] sm:$0xff] }
 0x39c   : > { %v2109_v62 = vpack.c.bf16 %v2077_v47, %v2077_v47  ;;  %2213 = vrot.lane.b32.xlu0 %v4503_v26, %s3250_s23  ;;  %4989 = vst [vmem:[#allocation68_spill] sm:$0xff] %v4530_v36  ;;  %2217 = vrot.lane.b32.xlu2 %v4530_v36, %s3250_s23 }
 0x39d   : > { %2215 = vrot.lane.b32.xlu1 %v4505_v43, %s3250_s23  ;;  %2140 = vst [vmem:[%s4066_s9 + $0x78] sm:$0xf] %v2108_v57  ;;  %v2119_v14 = vpack.c.bf16 %v2087_v32, %v2087_v32  ;;  %v2026_v57 = vmul.f32 %v4533_v8, %v4211_v23  ;;  %v4558_v23 = vld [vmem:[%s3510_s26 + $0xa8] sm:$0xff] }
 0x39e   : > { %4990 = vst [vmem:[#allocation69_spill] sm:$0xff] %v4533_v8  ;;  %v1970_v47 = vpop.permute.xlu0 %1969 }
 0x39f   : > { %2141 = vst [vmem:[%s4066_s9 + $0x80] sm:$0xf] %v2109_v62  ;;  %v1972_v10 = vpop.permute.xlu1 %1971  ;;  %v2047_v43 = vmul.f32 %v1970_v47, %v4518_v48  ;;  %v4545_v62 = vld [vmem:[#allocation2 + $0xa0] sm:$0xff]  ;;  %v4549_v47 = vld [vmem:[%s3504_s21 + $0xa8] sm:$0xff] }
 0x3a0   : > { %v2048_v26 = vmul.f32 %v1972_v10, %v4523_v33  ;;  %4991 = vst [vmem:[#allocation70_spill] sm:$0xff] %v4541_v61  ;;  %v4552_v10 = vld [vmem:[%s3504_s21 + $0xb0] sm:$0xff]  ;;  %v1992_v32 = vpop.permute.xlu2 %1991 }
 0x3a1   : > { %v2079_v49 = vadd.f32 %v2047_v43, %v2015_v19  ;;  %4992 = vst [vmem:[#allocation71_spill] sm:$0xff] %v4545_v62  ;;  %v2058_v36 = vmul.f32 %v1992_v32, %v4541_v61  ;;  %v4561_v43 = vld [vmem:[%s3510_s26 + $0xb0] sm:$0xff]  ;;  %v2019_v19 = vmul.f32 %v4552_v10, %v4162_v4  ;;  %v2221_v61 = vmul.f32 %v4268_v41, %v4225_v29  ;;  %v4575_v4 = vld [vmem:[%s3504_s21 + $0xc0] sm:$0xff] }
 0x3a2   : > { %v2080_v39 = vadd.f32 %v2048_v26, %v2016_v42  ;;  %2151 = vst [vmem:[%s4066_s9 + $0xd0] sm:$0xf] %v2119_v14  ;;  %v2018_v26 = vmul.f32 %v4549_v47, %v4160_v11  ;;  %v2021_v29 = vmul.f32 %v4575_v4, %v4181_v27 }
 0x3a3   : > { %v2111_v56 = vpack.c.bf16 %v2079_v49, %v2079_v49  ;;  %v2090_v42 = vadd.f32 %v2058_v36, %v2026_v57 }
 0x3a4   : > { %v2112_v3 = vpack.c.bf16 %v2080_v39, %v2080_v39  ;;  %2219 = vrot.lane.b32.xlu0 %v4545_v62, %s3250_s23 }
 0x3a5   : > { %2143 = vst [vmem:[%s4066_s9 + $0x90] sm:$0xf] %v2111_v56  ;;  %v2122_v62 = vpack.c.bf16 %v2090_v42, %v2090_v42  ;;  %v4585_v42 = vld [vmem:[%s3510_s26 + $0xc8] sm:$0xff] }
 0x3a6   : > { %2144 = vst [vmem:[%s4066_s9 + $0x98] sm:$0xf] %v2112_v3  ;;  %v1976_v14 = vpop.permute.xlu0 %1975  ;;  %v4578_v3 = vld [vmem:[%s3504_s21 + $0xc8] sm:$0xff] }
 0x3a7   : > { %v1978_v49 = vpop.permute.xlu1 %1977  ;;  %v2050_v39 = vmul.f32 %v1976_v14, %v4558_v23  ;;  %2154 = vst [vmem:[%s4066_s9 + $0xe8] sm:$0xf] %v2122_v62  ;;  %v2022_v41 = vmul.f32 %v4578_v3, %v4183_v17  ;;  %v4599_v17 = vld [vmem:[%s3504_s21 + $0xd8] sm:$0xff] }
 0x3a8   : > { %v2051_v32 = vmul.f32 %v1978_v49, %v4561_v43  ;;  %v2158_v56 = vpop.permute.xlu2 %2157  ;;  %v4582_v49 = vld [vmem:[%s3510_s26 + $0xc0] sm:$0xff] }
 0x3a9   : > { %v2082_v11 = vadd.f32 %v2050_v39, %v2018_v26  ;;  %v2253_v14 = vmul.f32 %v2158_v56, %v4274_v1 }
 0x3aa   : > { %v2083_v8 = vadd.f32 %v2051_v32, %v2019_v19  ;;  %v2224_v32 = vmul.f32 %v4305_v51, %v4231_v16  ;;  %v2024_v16 = vmul.f32 %v4599_v17, %v4202_v58 }
 0x3ab   : > { %v2114_v36 = vpack.c.bf16 %v2082_v11, %v2082_v11  ;;  %v2285_v62 = vadd.f32 %v2253_v14, %v2221_v61  ;;  %v4602_v61 = vld [vmem:[%s3504_s21 + $0xe0] sm:$0xff] }
 0x3ac   : > { %v2115_v57 = vpack.c.bf16 %v2083_v8, %v2083_v8  ;;  %v2025_v51 = vmul.f32 %v4602_v61, %v4204_v46  ;;  %v4623_v46 = vld [vmem:[%s3504_s21 + $0xf0] sm:$0xff] }
 0x3ad   : > { %2146 = vst [vmem:[%s4066_s9 + $0xa8] sm:$0xf] %v2114_v36  ;;  %v2317_v39 = vpack.c.bf16 %v2285_v62, %v2285_v62  ;;  %v4609_v62 = vld [vmem:[%s3510_s26 + $0xe0] sm:$0xff] }
 0x3ae   : > { %2147 = vst [vmem:[%s4066_s9 + $0xb0] sm:$0xf] %v2115_v57  ;;  %v1982_v8 = vpop.permute.xlu0 %1981 }
 0x3af   : > { %v1984_v1 = vpop.permute.xlu1 %1983  ;;  %v2053_v26 = vmul.f32 %v1982_v8, %v4582_v49  ;;  %2349 = vst [vmem:[%s4066_s9 + $0x4] sm:$0xf] %v2317_v39  ;;  %v4606_v8 = vld [vmem:[%s3510_s26 + $0xd8] sm:$0xff]  ;;  %v2227_v39 = vmul.f32 %v4344_v35, %v4242_v34  ;;  %v2027_v34 = vmul.f32 %v4623_v46, %v4217_v38 }
 0x3b0   : > { %v2054_v19 = vmul.f32 %v1984_v1, %v4585_v42  ;;  %v2164_v56 = vpop.permute.xlu2 %2163 }
 0x3b1   : > { %v2085_v27 = vadd.f32 %v2053_v26, %v2021_v29  ;;  %v2256_v14 = vmul.f32 %v2164_v56, %v4316_v59 }
 0x3b2   : > { %v2086_v11 = vadd.f32 %v2054_v19, %v2022_v41 }
 0x3b3   : > { %v2117_v36 = vpack.c.bf16 %v2085_v27, %v2085_v27  ;;  %v2288_v29 = vadd.f32 %v2256_v14, %v2224_v32  ;;  %v4626_v32 = vld [vmem:[%s3504_s21 + $0xf8] sm:$0xff]  ;;  %v4630_v14 = vld [vmem:[%s3510_s26 + $0xf0] sm:$0xff] }
 0x3b4   : > { %v2118_v57 = vpack.c.bf16 %v2086_v11, %v2086_v11  ;;  %v2028_v35 = vmul.f32 %v4626_v32, %v4219_v15 }
 0x3b5   : > { %2149 = vst [vmem:[%s4066_s9 + $0xc0] sm:$0xf] %v2117_v36  ;;  %v2320_v19 = vpack.c.bf16 %v2288_v29, %v2288_v29  ;;  %v4633_v29 = vld [vmem:[%s3510_s26 + $0xf8] sm:$0xff] }
 0x3b6   : > { %2150 = vst [vmem:[%s4066_s9 + $0xc8] sm:$0xf] %v2118_v57  ;;  %v1988_v41 = vpop.permute.xlu0 %1987 }
 0x3b7   : > { %v1990_v59 = vpop.permute.xlu1 %1989  ;;  %v2056_v1 = vmul.f32 %v1988_v41, %v4606_v8  ;;  %2352 = vst [vmem:[%s4066_s9 + $0x1c] sm:$0xf] %v2320_v19 }
 0x3b8   : > { %v2057_v26 = vmul.f32 %v1990_v59, %v4609_v62  ;;  %v2170_v11 = vpop.permute.xlu2 %2169 }
 0x3b9   : > { %v2088_v58 = vadd.f32 %v2056_v1, %v2024_v16  ;;  %v2259_v57 = vmul.f32 %v2170_v11, %v4350_v55 }
 0x3ba   : > { %v2089_v27 = vadd.f32 %v2057_v26, %v2025_v51  ;;  %v2230_v26 = vmul.f32 %v4383_v53, %v4254_v44 }
 0x3bb   : > { %v2120_v56 = vpack.c.bf16 %v2088_v58, %v2088_v58  ;;  %v2291_v16 = vadd.f32 %v2259_v57, %v2227_v39 }
 0x3bc   : > { %v2121_v36 = vpack.c.bf16 %v2089_v27, %v2089_v27 }
 0x3bd   : > { %2152 = vst [vmem:[%s4066_s9 + $0xd8] sm:$0xf] %v2120_v56  ;;  %v2323_v1 = vpack.c.bf16 %v2291_v16, %v2291_v16 }
 0x3be   : > { %2153 = vst [vmem:[%s4066_s9 + $0xe0] sm:$0xf] %v2121_v36  ;;  %v1994_v51 = vpop.permute.xlu0 %1993 }
 0x3bf   : > { %v1996_v41 = vpop.permute.xlu1 %1995  ;;  %v2059_v55 = vmul.f32 %v1994_v51, %v4630_v14  ;;  %2355 = vst [vmem:[%s4066_s9 + $0x34] sm:$0xf] %v2323_v1 }
 0x3c0   : > { %v2060_v59 = vmul.f32 %v1996_v41, %v4633_v29  ;;  %v2176_v15 = vpop.permute.xlu2 %2175 }
 0x3c1   : > { %v2091_v19 = vadd.f32 %v2059_v55, %v2027_v34  ;;  %v2262_v39 = vmul.f32 %v2176_v15, %v4392_v60  ;;  %v2233_v34 = vmul.f32 %v4425_v28, %v4285_v30 }
 0x3c2   : > { %v2092_v38 = vadd.f32 %v2060_v59, %v2028_v35 }
 0x3c3   : > { %v2123_v58 = vpack.c.bf16 %v2091_v19, %v2091_v19  ;;  %v2294_v11 = vadd.f32 %v2262_v39, %v2230_v26 }
 0x3c4   : > { %v2124_v27 = vpack.c.bf16 %v2092_v38, %v2092_v38 }
 0x3c5   : > { %2155 = vst [vmem:[%s4066_s9 + $0xf0] sm:$0xf] %v2123_v58  ;;  %v2326_v53 = vpack.c.bf16 %v2294_v11, %v2294_v11 }
 0x3c6   : > { %2156 = vst [vmem:[%s4066_s9 + $0xf8] sm:$0xf] %v2124_v27  ;;  %v2160_v56 = vpop.permute.xlu0 %2159 }
 0x3c7   : > { %v2162_v36 = vpop.permute.xlu1 %2161  ;;  %v2254_v57 = vmul.f32 %v2160_v56, %v4311_v50  ;;  %2358 = vst [vmem:[%s4066_s9 + $0x4c] sm:$0xf] %v2326_v53 }
 0x3c8   : > { %v2255_v44 = vmul.f32 %v2162_v36, %v4279_v25  ;;  %v2182_v60 = vpop.permute.xlu2 %2181 }
 0x3c9   : > { %v2286_v35 = vadd.f32 %v2254_v57, %v4156_v7  ;;  %v2265_v55 = vmul.f32 %v2182_v60, %v4434_v6  ;;  %v4993_v57 = vld [vmem:[#allocation36_spill] sm:$0xff] }
 0x3ca   : > { %v2287_v16 = vadd.f32 %v2255_v44, %v4175_v20  ;;  %v2236_v20 = vmul.f32 %v4467_v63, %v4323_v0  ;;  %v4994_v44 = vld [vmem:[#allocation37_spill] sm:$0xff] }
 0x3cb   : > { %v2318_v51 = vpack.c.bf16 %v2286_v35, %v2286_v35  ;;  %v2297_v50 = vadd.f32 %v2265_v55, %v2233_v34  ;;  %v4997_v35 = vld [vmem:[#allocation39_spill] sm:$0xff] }
 0x3cc   : > { %v2319_v41 = vpack.c.bf16 %v2287_v16, %v2287_v16 }
 0x3cd   : > { %2350 = vst [vmem:[%s4066_s9 + $0xc] sm:$0xf] %v2318_v51  ;;  %v2329_v28 = vpack.c.bf16 %v2297_v50, %v2297_v50  ;;  %v4998_v51 = vld [vmem:[#allocation51_spill] sm:$0xff] }
 0x3ce   : > { %2351 = vst [vmem:[%s4066_s9 + $0x14] sm:$0xf] %v2319_v41  ;;  %v2166_v25 = vpop.permute.xlu0 %2165 }
 0x3cf   : > { %v2168_v59 = vpop.permute.xlu1 %2167  ;;  %v2257_v30 = vmul.f32 %v2166_v25, %v4236_v31  ;;  %2361 = vst [vmem:[%s4066_s9 + $0x64] sm:$0xf] %v2329_v28  ;;  %v5000_v28 = vld [vmem:[#allocation41_spill] sm:$0xff] }
 0x3d0   : > { %v2258_v7 = vmul.f32 %v2168_v59, %v4247_v52  ;;  %v2188_v6 = vpop.permute.xlu2 %2187 }
 0x3d1   : > { %v2289_v1 = vadd.f32 %v2257_v30, %v4177_v37  ;;  %v2268_v15 = vmul.f32 %v2188_v6, %v4476_v24  ;;  %v4999_v30 = vld [vmem:[#allocation40_spill] sm:$0xff] }
 0x3d2   : > { %v2290_v26 = vadd.f32 %v2258_v7, %v4195_v18  ;;  %v2239_v18 = vmul.f32 %v4509_v21, %v4362_v9  ;;  %v2234_v7 = vmul.f32 %v4428_v54, %v4999_v30  ;;  %v5014_v30 = vld [vmem:[#allocation53_spill] sm:$0xff] }
 0x3d3   : > { %v2321_v19 = vpack.c.bf16 %v2289_v1, %v2289_v1  ;;  %v2300_v58 = vadd.f32 %v2268_v15, %v2236_v20  ;;  %v5001_v20 = vld [vmem:[#allocation42_spill] sm:$0xff]  ;;  %v5003_v15 = vld [vmem:[#allocation43_spill] sm:$0xff] }
 0x3d4   : > { %v2322_v38 = vpack.c.bf16 %v2290_v26, %v2290_v26  ;;  %v2235_v1 = vmul.f32 %v5001_v20, %v5000_v28  ;;  %v5015_v20 = vld [vmem:[#allocation68_spill] sm:$0xff] }
 0x3d5   : > { %2353 = vst [vmem:[%s4066_s9 + $0x24] sm:$0xf] %v2321_v19  ;;  %v2332_v63 = vpack.c.bf16 %v2300_v58, %v2300_v58  ;;  %v5002_v19 = vld [vmem:[#allocation56_spill] sm:$0xff] }
 0x3d6   : > { %2354 = vst [vmem:[%s4066_s9 + $0x2c] sm:$0xf] %v2322_v38  ;;  %v2172_v31 = vpop.permute.xlu0 %2171 }
 0x3d7   : > { %v2174_v52 = vpop.permute.xlu1 %2173  ;;  %v2260_v0 = vmul.f32 %v2172_v31, %v4355_v5  ;;  %2364 = vst [vmem:[%s4066_s9 + $0x7c] sm:$0xf] %v2332_v63  ;;  %v2231_v5 = vmul.f32 %v4386_v40, %v4993_v57 }
 0x3d8   : > { %v2261_v37 = vmul.f32 %v2174_v52, %v4259_v13  ;;  %v2194_v24 = vpop.permute.xlu2 %2193  ;;  %v4995_v13 = vld [vmem:[#allocation38_spill] sm:$0xff]  ;;  %v5004_v52 = vld [vmem:[#allocation57_spill] sm:$0xff] }
 0x3d9   : > { %v2292_v27 = vadd.f32 %v2260_v0, %v4198_v22  ;;  %v2271_v36 = vmul.f32 %v2194_v24, %v4518_v48  ;;  %v2232_v53 = vmul.f32 %v4995_v13, %v4994_v44  ;;  %v2242_v48 = vmul.f32 %v4549_v47, %v4998_v51  ;;  %v5008_v44 = vld [vmem:[#allocation62_spill] sm:$0xff]  ;;  %v5011_v51 = vld [vmem:[#allocation48_spill] sm:$0xff] }
 0x3da   : > { %v2293_v39 = vadd.f32 %v2261_v37, %v4213_v2  ;;  %v4996_v2 = vld [vmem:[#allocation50_spill] sm:$0xff] }
 0x3db   : > { %v2324_v11 = vpack.c.bf16 %v2292_v27, %v2292_v27  ;;  %v2303_v34 = vadd.f32 %v2271_v36, %v2239_v18 }
 0x3dc   : > { %v2325_v56 = vpack.c.bf16 %v2293_v39, %v2293_v39  ;;  %v5005_v39 = vld [vmem:[#allocation44_spill] sm:$0xff] }
 0x3dd   : > { %2356 = vst [vmem:[%s4066_s9 + $0x3c] sm:$0xf] %v2324_v11  ;;  %v2335_v60 = vpack.c.bf16 %v2303_v34, %v2303_v34  ;;  %v2237_v24 = vmul.f32 %v4470_v12, %v5005_v39  ;;  %v5006_v11 = vld [vmem:[#allocation45_spill] sm:$0xff]  ;;  %v5020_v39 = vld [vmem:[#allocation60_spill] sm:$0xff] }
 0x3de   : > { %2357 = vst [vmem:[%s4066_s9 + $0x44] sm:$0xf] %v2325_v56  ;;  %v2178_v22 = vpop.permute.xlu0 %2177  ;;  %v5007_v56 = vld [vmem:[#allocation46_spill] sm:$0xff] }
 0x3df   : > { %v2180_v9 = vpop.permute.xlu1 %2179  ;;  %v2263_v21 = vmul.f32 %v2178_v22, %v4996_v2  ;;  %2367 = vst [vmem:[%s4066_s9 + $0x94] sm:$0xf] %v2335_v60  ;;  %v2238_v36 = vmul.f32 %v5007_v56, %v5006_v11  ;;  %v5021_v11 = vld [vmem:[#allocation61_spill] sm:$0xff]  ;;  %v5022_v56 = vld [vmem:[#allocation64_spill] sm:$0xff] }
 0x3e0   : > { %v2264_v16 = vmul.f32 %v2180_v9, %v4997_v35  ;;  %v2200_v55 = vpop.permute.xlu2 %2199  ;;  %v5010_v9 = vld [vmem:[#allocation63_spill] sm:$0xff] }
 0x3e1   : > { %v2295_v41 = vadd.f32 %v2263_v21, %v2231_v5  ;;  %v2274_v59 = vmul.f32 %v2200_v55, %v4558_v23  ;;  %v2245_v23 = vmul.f32 %v4575_v4, %v5004_v52 }
 0x3e2   : > { %v2296_v40 = vadd.f32 %v2264_v16, %v2232_v53  ;;  %v5009_v53 = vld [vmem:[#allocation47_spill] sm:$0xff] }
 0x3e3   : > { %v2327_v50 = vpack.c.bf16 %v2295_v41, %v2295_v41  ;;  %v2306_v26 = vadd.f32 %v2274_v59, %v2242_v48  ;;  %v2240_v48 = vmul.f32 %v4512_v45, %v5011_v51  ;;  %v5012_v41 = vld [vmem:[#allocation49_spill] sm:$0xff] }
 0x3e4   : > { %v2328_v25 = vpack.c.bf16 %v2296_v40, %v2296_v40  ;;  %v5013_v40 = vld [vmem:[#allocation52_spill] sm:$0xff] }
 0x3e5   : > { %2359 = vst [vmem:[%s4066_s9 + $0x54] sm:$0xf] %v2327_v50  ;;  %v2338_v31 = vpack.c.bf16 %v2306_v26, %v2306_v26  ;;  %v2241_v55 = vmul.f32 %v5013_v40, %v5012_v41 }
 0x3e6   : > { %2360 = vst [vmem:[%s4066_s9 + $0x5c] sm:$0xf] %v2328_v25  ;;  %v2184_v47 = vpop.permute.xlu0 %2183 }
 0x3e7   : > { %v2186_v6 = vpop.permute.xlu1 %2185  ;;  %v2266_v38 = vmul.f32 %v2184_v47, %v5002_v19  ;;  %2370 = vst [vmem:[%s4066_s9 + $0xac] sm:$0xf] %v2338_v31 }
 0x3e8   : > { %v2267_v58 = vmul.f32 %v2186_v6, %v5003_v15  ;;  %v2206_v37 = vpop.permute.xlu2 %2205 }
 0x3e9   : > { %v2298_v0 = vadd.f32 %v2266_v38, %v2234_v7  ;;  %v2277_v27 = vmul.f32 %v2206_v37, %v4582_v49  ;;  %v2248_v49 = vmul.f32 %v4599_v17, %v5010_v9  ;;  %v5016_v38 = vld [vmem:[#allocation54_spill] sm:$0xff] }
 0x3ea   : > { %v2299_v54 = vadd.f32 %v2267_v58, %v2235_v1  ;;  %v2243_v15 = vmul.f32 %v4552_v10, %v5016_v38  ;;  %v5017_v58 = vld [vmem:[#allocation55_spill] sm:$0xff]  ;;  %v5024_v9 = vld [vmem:[#allocation66_spill] sm:$0xff] }
 0x3eb   : > { %v2330_v63 = vpack.c.bf16 %v2298_v0, %v2298_v0  ;;  %v2309_v57 = vadd.f32 %v2277_v27, %v2245_v23 }
 0x3ec   : > { %v2331_v18 = vpack.c.bf16 %v2299_v54, %v2299_v54  ;;  %v5019_v54 = vld [vmem:[#allocation59_spill] sm:$0xff] }
 0x3ed   : > { %2362 = vst [vmem:[%s4066_s9 + $0x6c] sm:$0xf] %v2330_v63  ;;  %v2341_v22 = vpack.c.bf16 %v2309_v57, %v2309_v57 }
 0x3ee   : > { %2363 = vst [vmem:[%s4066_s9 + $0x74] sm:$0xf] %v2331_v18  ;;  %v2190_v4 = vpop.permute.xlu0 %2189 }
 0x3ef   : > { %v2192_v5 = vpop.permute.xlu1 %2191  ;;  %v2269_v13 = vmul.f32 %v2190_v4, %v5008_v44  ;;  %2373 = vst [vmem:[%s4066_s9 + $0xc4] sm:$0xf] %v2341_v22 }
 0x3f0   : > { %v2270_v34 = vmul.f32 %v2192_v5, %v5009_v53  ;;  %v2212_v21 = vpop.permute.xlu2 %2211  ;;  %v5023_v5 = vld [vmem:[#allocation65_spill] sm:$0xff] }
 0x3f1   : > { %v2301_v2 = vadd.f32 %v2269_v13, %v2237_v24  ;;  %v2280_v60 = vmul.f32 %v2212_v21, %v4606_v8  ;;  %v2251_v8 = vmul.f32 %v4623_v46, %v5015_v20  ;;  %v2246_v24 = vmul.f32 %v4578_v3, %v5020_v39 }
 0x3f2   : > { %v2302_v12 = vadd.f32 %v2270_v34, %v2238_v36  ;;  %v2247_v36 = vmul.f32 %v5022_v56, %v5021_v11  ;;  %v2249_v3 = vmul.f32 %v4602_v61, %v5024_v9 }
 0x3f3   : > { %v2333_v35 = vpack.c.bf16 %v2301_v2, %v2301_v2  ;;  %v2312_v50 = vadd.f32 %v2280_v60, %v2248_v49  ;;  %v5025_v49 = vld [vmem:[#allocation67_spill] sm:$0xff]  ;;  %v5026_v2 = vld [vmem:[#allocation69_spill] sm:$0xff] }
 0x3f4   : > { %v2334_v16 = vpack.c.bf16 %v2302_v12, %v2302_v12  ;;  %v2250_v12 = vmul.f32 %v5026_v2, %v5025_v49 }
 0x3f5   : > { %2365 = vst [vmem:[%s4066_s9 + $0x84] sm:$0xf] %v2333_v35  ;;  %v2344_v28 = vpack.c.bf16 %v2312_v50, %v2312_v50 }
 0x3f6   : > { %2366 = vst [vmem:[%s4066_s9 + $0x8c] sm:$0xf] %v2334_v16  ;;  %v2196_v17 = vpop.permute.xlu0 %2195  ;;  %v5027_v16 = vld [vmem:[#allocation70_spill] sm:$0xff] }
 0x3f7   : > { %v2198_v25 = vpop.permute.xlu1 %2197  ;;  %v2272_v59 = vmul.f32 %v2196_v17, %v4523_v33  ;;  %2376 = vst [vmem:[%s4066_s9 + $0xdc] sm:$0xf] %v2344_v28  ;;  %v5018_v33 = vld [vmem:[#allocation58_spill] sm:$0xff] }
 0x3f8   : > { %v2273_v7 = vmul.f32 %v2198_v25, %v5014_v30  ;;  %v2218_v26 = vpop.permute.xlu2 %2217  ;;  %v2244_v31 = vmul.f32 %v5018_v33, %v5017_v58 }
 0x3f9   : > { %v2304_v1 = vadd.f32 %v2272_v59, %v2240_v48  ;;  %v2283_v19 = vmul.f32 %v2218_v26, %v4630_v14 }
 0x3fa   : > { %v2305_v45 = vadd.f32 %v2273_v7, %v2241_v55  ;;  %v5028_v55 = vld [vmem:[#allocation71_spill] sm:$0xff] }
 0x3fb   : > { %v2336_v47 = vpack.c.bf16 %v2304_v1, %v2304_v1  ;;  %v2315_v52 = vadd.f32 %v2283_v19, %v2251_v8  ;;  %v2252_v50 = vmul.f32 %v4626_v32, %v5028_v55 }
 0x3fc   : > { %v2337_v6 = vpack.c.bf16 %v2305_v45, %v2305_v45 }
 0x3fd   : > { %2368 = vst [vmem:[%s4066_s9 + $0x9c] sm:$0xf] %v2336_v47  ;;  %v2347_v63 = vpack.c.bf16 %v2315_v52, %v2315_v52 }
 0x3fe   : > { %2369 = vst [vmem:[%s4066_s9 + $0xa4] sm:$0xf] %v2337_v6  ;;  %v2202_v46 = vpop.permute.xlu0 %2201 }
 0x3ff   : > { %v2204_v23 = vpop.permute.xlu1 %2203  ;;  %v2275_v0 = vmul.f32 %v2202_v46, %v4561_v43  ;;  %2379 = vst [vmem:[%s4066_s9 + $0xf4] sm:$0xf] %v2347_v63 }
 0x400   : > { %v2276_v37 = vmul.f32 %v2204_v23, %v5019_v54 }
 0x401   : > { %v2307_v18 = vadd.f32 %v2275_v0, %v2243_v15 }
 0x402   : > { %v2308_v14 = vadd.f32 %v2276_v37, %v2244_v31 }
 0x403   : > { %v2339_v27 = vpack.c.bf16 %v2307_v18, %v2307_v18 }
 0x404   : > { %v2340_v10 = vpack.c.bf16 %v2308_v14, %v2308_v14 }
 0x405   : > { %2371 = vst [vmem:[%s4066_s9 + $0xb4] sm:$0xf] %v2339_v27 }
 0x406   : > { %2372 = vst [vmem:[%s4066_s9 + $0xbc] sm:$0xf] %v2340_v10  ;;  %v2208_v57 = vpop.permute.xlu0 %2207 }
 0x407   : > { %v2210_v43 = vpop.permute.xlu1 %2209  ;;  %v2278_v4 = vmul.f32 %v2208_v57, %v4585_v42 }
 0x408   : > { %v2279_v44 = vmul.f32 %v2210_v43, %v5023_v5 }
 0x409   : > { %v2310_v13 = vadd.f32 %v2278_v4, %v2246_v24 }
 0x40a   : > { %v2311_v53 = vadd.f32 %v2279_v44, %v2247_v36 }
 0x40b   : > { %v2342_v34 = vpack.c.bf16 %v2310_v13, %v2310_v13 }
 0x40c   : > { %v2343_v22 = vpack.c.bf16 %v2311_v53, %v2311_v53 }
 0x40d   : > { %2374 = vst [vmem:[%s4066_s9 + $0xcc] sm:$0xf] %v2342_v34 }
 0x40e   : > { %2375 = vst [vmem:[%s4066_s9 + $0xd4] sm:$0xf] %v2343_v22  ;;  %v2214_v21 = vpop.permute.xlu0 %2213 }
 0x40f   : > { %v2216_v35 = vpop.permute.xlu1 %2215  ;;  %v2281_v42 = vmul.f32 %v2214_v21, %v4609_v62 }
 0x410   : > { %v2282_v60 = vmul.f32 %v2216_v35, %v5027_v16 }
 0x411   : > { %v2313_v51 = vadd.f32 %v2281_v42, %v2249_v3 }
 0x412   : > { %v2314_v48 = vadd.f32 %v2282_v60, %v2250_v12 }
 0x413   : > { %v2345_v41 = vpack.c.bf16 %v2313_v51, %v2313_v51 }
 0x414   : > { %v2346_v40 = vpack.c.bf16 %v2314_v48, %v2314_v48 }
 0x415   : > { %2377 = vst [vmem:[%s4066_s9 + $0xe4] sm:$0xf] %v2345_v41 }
 0x416   : > { %2378 = vst [vmem:[%s4066_s9 + $0xec] sm:$0xf] %v2346_v40  ;;  %v2220_v61 = vpop.permute.xlu0 %2219 }
 0x417   : > { %v2284_v17 = vmul.f32 %v2220_v61, %v4633_v29 }
 0x419   : > { %v2316_v25 = vadd.f32 %v2284_v17, %v2252_v50 }
 0x41b   : > { %v2348_v59 = vpack.c.bf16 %v2316_v25, %v2316_v25 }
 0x41d   : > { %2380 = vst [vmem:[%s4066_s9 + $0xfc] sm:$0xf] %v2348_v59 }
 0x41e PF: > { %s5029_s10 = sld [smem:[#allocation21_spill]] }
 0x424   : > { %p2381_p9 = scmp.ge.s32.totalorder %s5029_s10, 3 }
 0x425   : > { %v2386_v62 = vld [vmem:[#allocation2 + $0xb0] sm:$0xff] (%p2381_p9)  ;;  %v2388_v7 = vld [vmem:[#allocation2 + $0xd8] sm:$0xff] (%p2381_p9)  ;;  %v2391_v8 = vld [vmem:[#allocation2 + $0x168] sm:$0xff] (%p2381_p9) }
 0x426   : > { %2385 = sbr.rel (!%p2381_p9) target bundleno = 1097 (0x449), region = 64  ;;  %v2387_v30 = vld [vmem:[#allocation2 + $0x1b0] sm:$0xff] (%p2381_p9)  ;;  %v2389_v20 = vld [vmem:[#allocation2 + $0x18] sm:$0xff] (%p2381_p9)  ;;  %v2393_v26 = vld [vmem:[#allocation2 + $0x48] sm:$0xff] (%p2381_p9) }
 0x427   : > { %v2450_v28 = vpack.c.bf16 (%p2381_p9), %v2387_v30, %v2386_v62  ;;  %v2390_v32 = vld [vmem:[#allocation2 + $0x50] sm:$0xff] (%p2381_p9)  ;;  %v2451_v1 = vpack.c.bf16 (%p2381_p9), %v2389_v20, %v2388_v7  ;;  %v2394_v47 = vld [vmem:[#allocation2 + $0x180] sm:$0xff] (%p2381_p9)  ;;  %v2396_v38 = vld [vmem:[#allocation2 + $0x118] sm:$0xff] (%p2381_p9) }
 0x428   : > { %v2452_v45 = vpack.c.bf16 (%p2381_p9), %v2391_v8, %v2390_v32  ;;  %v2392_v29 = vld [vmem:[#allocation2 + $0x130] sm:$0xff] (%p2381_p9)  ;;  %v2397_v15 = vld [vmem:[#allocation2 + $0x98] sm:$0xff] (%p2381_p9)  ;;  %v2398_v31 = vld [vmem:[#allocation2 + $0x120] sm:$0xff] (%p2381_p9) }
 0x429   : > { %2482 = vst [vmem:[%s4066_s9] sm:$0xff] (%p2381_p9), %v2450_v28  ;;  %v2453_v6 = vpack.c.bf16 (%p2381_p9), %v2393_v26, %v2392_v29  ;;  %v2395_v19 = vld [vmem:[#allocation2 + $0x110] sm:$0xff] (%p2381_p9)  ;;  %v2455_v33 = vpack.c.bf16 (%p2381_p9), %v2397_v15, %v2396_v38  ;;  %v2400_v46 = vld [vmem:[#allocation2 + $0x108] sm:$0xff] (%p2381_p9)  ;;  %v2401_v0 = vld [vmem:[#allocation2 + $0x60] sm:$0xff] (%p2381_p9) }
 0x42a   : > { %2483 = vst [vmem:[%s4066_s9 + $0x8] sm:$0xff] (%p2381_p9), %v2451_v1  ;;  %v2454_v58 = vpack.c.bf16 (%p2381_p9), %v2395_v19, %v2394_v47  ;;  %v2399_v52 = vld [vmem:[#allocation2 + $0x150] sm:$0xff] (%p2381_p9)  ;;  %v2402_v54 = vld [vmem:[#allocation2 + $0xe0] sm:$0xff] (%p2381_p9)  ;;  %v2403_v37 = vld [vmem:[#allocation2 + $0x188] sm:$0xff] (%p2381_p9)  ;;  %v2457_v63 = vpack.c.bf16 (%p2381_p9), %v2401_v0, %v2400_v46 }
 0x42b   : > { %2484 = vst [vmem:[%s4066_s9 + $0x10] sm:$0xff] %v2452_v45  ;;  %v2456_v23 = vpack.c.bf16 %v2399_v52, %v2398_v31  ;;  %v2404_v18 = vld [vmem:[#allocation2 + $0x138] sm:$0xff]  ;;  %v2405_v14 = vld [vmem:[#allocation2 + $0x140] sm:$0xff]  ;;  %v2458_v10 = vpack.c.bf16 %v2403_v37, %v2402_v54  ;;  %v2407_v39 = vld [vmem:[#allocation2 + $0x1a8] sm:$0xff] }
 0x42c   : > { %2485 = vst [vmem:[%s4066_s9 + $0x18] sm:$0xff] %v2453_v6  ;;  %v2406_v27 = vld [vmem:[#allocation2 + $0x80] sm:$0xff]  ;;  %v2408_v24 = vld [vmem:[#allocation2 + $0x1b8] sm:$0xff]  ;;  %v2409_v11 = vld [vmem:[#allocation2 + $0x28] sm:$0xff]  ;;  %v2459_v56 = vpack.c.bf16 %v2405_v14, %v2404_v18 }
 0x42d   : > { %2486 = vst [vmem:[%s4066_s9 + $0x20] sm:$0xff] %v2454_v58  ;;  %v2410_v36 = vld [vmem:[#allocation2 + $0x1e8] sm:$0xff]  ;;  %v2411_v57 = vld [vmem:[#allocation2 + $0xf8] sm:$0xff]  ;;  %v2460_v43 = vpack.c.bf16 %v2407_v39, %v2406_v27  ;;  %v2412_v4 = vld [vmem:[#allocation2 + $0x160] sm:$0xff]  ;;  %v2461_v44 = vpack.c.bf16 %v2409_v11, %v2408_v24 }
 0x42e   : > { %2487 = vst [vmem:[%s4066_s9 + $0x28] sm:$0xff] %v2455_v33  ;;  %v2413_v5 = vld [vmem:[#allocation2 + $0x30] sm:$0xff]  ;;  %v2414_v13 = vld [vmem:[#allocation2 + $0x1e0] sm:$0xff]  ;;  %v2462_v34 = vpack.c.bf16 %v2411_v57, %v2410_v36  ;;  %v2417_v9 = vld [vmem:[#allocation2 + $0x8] sm:$0xff] }
 0x42f   : > { %2488 = vst [vmem:[%s4066_s9 + $0x30] sm:$0xff] %v2456_v23  ;;  %v2415_v53 = vld [vmem:[#allocation2] sm:$0xff]  ;;  %v2416_v22 = vld [vmem:[#allocation2 + $0xf0] sm:$0xff]  ;;  %v2463_v3 = vpack.c.bf16 %v2413_v5, %v2412_v4  ;;  %v2418_v49 = vld [vmem:[#allocation2 + $0x148] sm:$0xff] }
 0x430   : > { %2489 = vst [vmem:[%s4066_s9 + $0x38] sm:$0xff] %v2457_v63  ;;  %v2419_v2 = vld [vmem:[#allocation2 + $0x1d0] sm:$0xff]  ;;  %v2464_v12 = vpack.c.bf16 %v2415_v53, %v2414_v13  ;;  %v2420_v21 = vld [vmem:[#allocation2 + $0x100] sm:$0xff]  ;;  %v2421_v35 = vld [vmem:[#allocation2 + $0xc8] sm:$0xff]  ;;  %v2465_v42 = vpack.c.bf16 %v2417_v9, %v2416_v22 }
 0x431   : > { %2490 = vst [vmem:[%s4066_s9 + $0x40] sm:$0xff] %v2458_v10  ;;  %v2422_v16 = vld [vmem:[#allocation2 + $0x40] sm:$0xff]  ;;  %v2423_v60 = vld [vmem:[#allocation2 + $0x1f8] sm:$0xff]  ;;  %v2466_v51 = vpack.c.bf16 %v2419_v2, %v2418_v49  ;;  %v2425_v41 = vld [vmem:[#allocation2 + $0x128] sm:$0xff]  ;;  %v2467_v40 = vpack.c.bf16 %v2421_v35, %v2420_v21 }
 0x432   : > { %2491 = vst [vmem:[%s4066_s9 + $0x48] sm:$0xff] %v2459_v56  ;;  %v2424_v48 = vld [vmem:[#allocation2 + $0x20] sm:$0xff]  ;;  %v2427_v50 = vld [vmem:[#allocation2 + $0x1f0] sm:$0xff]  ;;  %v2468_v61 = vpack.c.bf16 %v2423_v60, %v2422_v16  ;;  %v2428_v17 = vld [vmem:[#allocation2 + $0xe8] sm:$0xff] }
 0x433   : > { %2492 = vst [vmem:[%s4066_s9 + $0x50] sm:$0xff] %v2460_v43  ;;  %v2426_v55 = vld [vmem:[#allocation2 + $0x1a0] sm:$0xff]  ;;  %v2429_v25 = vld [vmem:[#allocation2 + $0x78] sm:$0xff]  ;;  %v2469_v59 = vpack.c.bf16 %v2425_v41, %v2424_v48  ;;  %v2430_v62 = vld [vmem:[#allocation2 + $0x70] sm:$0xff] }
 0x434   : > { %2493 = vst [vmem:[%s4066_s9 + $0x58] sm:$0xff] %v2461_v44  ;;  %v2431_v30 = vld [vmem:[#allocation2 + $0x90] sm:$0xff]  ;;  %v2470_v7 = vpack.c.bf16 %v2427_v50, %v2426_v55  ;;  %v2432_v28 = vld [vmem:[#allocation2 + $0x1d8] sm:$0xff]  ;;  %v2471_v32 = vpack.c.bf16 %v2429_v25, %v2428_v17  ;;  %v2435_v1 = vld [vmem:[#allocation2 + $0x88] sm:$0xff] }
 0x435   : > { %2494 = vst [vmem:[%s4066_s9 + $0x60] sm:$0xff] %v2462_v34  ;;  %v2433_v20 = vld [vmem:[#allocation2 + $0xd0] sm:$0xff]  ;;  %v2434_v8 = vld [vmem:[#allocation2 + $0xb8] sm:$0xff]  ;;  %v2472_v45 = vpack.c.bf16 %v2431_v30, %v2430_v62  ;;  %v2436_v29 = vld [vmem:[#allocation2 + $0xa8] sm:$0xff] }
 0x436   : > { %2495 = vst [vmem:[%s4066_s9 + $0x68] sm:$0xff] %v2463_v3  ;;  %v2437_v26 = vld [vmem:[#allocation2 + $0x1c8] sm:$0xff]  ;;  %v2473_v47 = vpack.c.bf16 %v2433_v20, %v2432_v28  ;;  %v2438_v6 = vld [vmem:[#allocation2 + $0x170] sm:$0xff]  ;;  %v2439_v19 = vld [vmem:[#allocation2 + $0x178] sm:$0xff]  ;;  %v2474_v38 = vpack.c.bf16 %v2435_v1, %v2434_v8 }
 0x437   : > { %2496 = vst [vmem:[%s4066_s9 + $0x70] sm:$0xff] %v2464_v12  ;;  %v2440_v15 = vld [vmem:[#allocation2 + $0x68] sm:$0xff]  ;;  %v2441_v58 = vld [vmem:[#allocation2 + $0x190] sm:$0xff]  ;;  %v2475_v33 = vpack.c.bf16 %v2437_v26, %v2436_v29  ;;  %v2442_v31 = vld [vmem:[#allocation2 + $0x198] sm:$0xff]  ;;  %v2476_v46 = vpack.c.bf16 %v2439_v19, %v2438_v6 }
 0x438   : > { %2497 = vst [vmem:[%s4066_s9 + $0x78] sm:$0xff] %v2465_v42  ;;  %v2443_v52 = vld [vmem:[#allocation2 + $0x38] sm:$0xff]  ;;  %v2444_v23 = vld [vmem:[#allocation2 + $0xc0] sm:$0xff]  ;;  %v2477_v54 = vpack.c.bf16 %v2441_v58, %v2440_v15  ;;  %v2447_v63 = vld [vmem:[#allocation2 + $0x10] sm:$0xff] }
 0x439   : > { %2498 = vst [vmem:[%s4066_s9 + $0x80] sm:$0xff] %v2466_v51  ;;  %v2445_v0 = vld [vmem:[#allocation2 + $0x1c0] sm:$0xff]  ;;  %v2446_v37 = vld [vmem:[#allocation2 + $0x158] sm:$0xff]  ;;  %v2478_v18 = vpack.c.bf16 %v2443_v52, %v2442_v31 }
 0x43a   : > { %2499 = vst [vmem:[%s4066_s9 + $0x88] sm:$0xff] %v2467_v40  ;;  %v2448_v14 = vld [vmem:[#allocation2 + $0x58] sm:$0xff]  ;;  %v2449_v27 = vld [vmem:[#allocation2 + $0xa0] sm:$0xff]  ;;  %v2479_v10 = vpack.c.bf16 %v2445_v0, %v2444_v23  ;;  %v2480_v39 = vpack.c.bf16 %v2447_v63, %v2446_v37 }
 0x43b   : > { %2500 = vst [vmem:[%s4066_s9 + $0x90] sm:$0xff] %v2468_v61  ;;  %v2481_v24 = vpack.c.bf16 %v2449_v27, %v2448_v14 }
 0x43c   : > { %2501 = vst [vmem:[%s4066_s9 + $0x98] sm:$0xff] %v2469_v59 }
 0x43d   : > { %2502 = vst [vmem:[%s4066_s9 + $0xa0] sm:$0xff] %v2470_v7 }
 0x43e   : > { %2503 = vst [vmem:[%s4066_s9 + $0xa8] sm:$0xff] %v2471_v32 }
 0x43f   : > { %2504 = vst [vmem:[%s4066_s9 + $0xb0] sm:$0xff] %v2472_v45 }
 0x440   : > { %2505 = vst [vmem:[%s4066_s9 + $0xb8] sm:$0xff] %v2473_v47 }
 0x441   : > { %2506 = vst [vmem:[%s4066_s9 + $0xc0] sm:$0xff] %v2474_v38 }
 0x442   : > { %2507 = vst [vmem:[%s4066_s9 + $0xc8] sm:$0xff] %v2475_v33 }
 0x443   : > { %2508 = vst [vmem:[%s4066_s9 + $0xd0] sm:$0xff] %v2476_v46 }
 0x444   : > { %2509 = vst [vmem:[%s4066_s9 + $0xd8] sm:$0xff] %v2477_v54 }
 0x445   : > { %2510 = vst [vmem:[%s4066_s9 + $0xe0] sm:$0xff] %v2478_v18 }
 0x446   : > { %2511 = vst [vmem:[%s4066_s9 + $0xe8] sm:$0xff] %v2479_v10 }
 0x447   : > { %2512 = vst [vmem:[%s4066_s9 + $0xf0] sm:$0xff] %v2480_v39 }
 0x448   : > { %2513 = vst [vmem:[%s4066_s9 + $0xf8] sm:$0xff] %v2481_v24 }
 0x449 PF: > { %s5030_s11 = sld [smem:[#allocation21_spill]]  ;;  %s2530_s14 = sshll.u32 %s4066_s9, 4  ;;  %s2531_s14 = int_to_ptr.vmem [resolvable:$true] %s2530_s14 }
 0x44a   : > { %s5031_s12 = sld [smem:[#allocation22_spill]]  ;;  %s2515_s7 = scalar_lea.sflag [#allocation5], %s369_s13 }
 0x44b   : > { %s5032_s17 = sld [smem:[#allocation74_spill]] }
 0x44f   : > { %s2722_s1 = sshll.u32 %s5030_s11, 1 }
 0x450   : > { %s2734_s0 = sshll.u32 %s5031_s12, 8 }
 0x451   : > { %s2527_s20 = sadd.s32 %s2734_s0, %s2722_s1  ;;  %s5033_s6 = smov %s5032_s17 }
 0x452   : > { %s2724_s30 = sshll.u32 %s2527_s20, 2  ;;  %s3103_s5 = scalar_lea.hbm %s5033_s6, 2048 }
 0x453   : > { %s2529_s8 = scalar_lea.hbm %s5032_s17, %s2724_s30 }
 0x454   : > { %s2532_s24 = sshll.u32 %s2529_s8, 4  ;;  %s2533_s24 = int_to_ptr.hbm [resolvable:$true] %s2532_s24 }
 0x455   : > { %s3097_s21 = sshra.s32 %s2533_s24, 4  ;;  %s3098_s21 = int_to_ptr.hbm [resolvable:$true] %s3097_s21 }
 0x456   : > { %s3099_s29 = scalar_lea.hbm %s3098_s21, 256  ;;  %p3104_p10 = scmp.lt.s32.totalorder %s3098_s21, %s5033_s6 }
 0x457   : > { %p3100_p13 = scmp.ne.s32.totalorder %s3098_s21, %s3099_s29  ;;  %p3105_p0 = scmp.lt.s32.totalorder %s3103_s5, %s3099_s29 }
 0x459   : > { %p3101_p6 = pnand %p3100_p13, %p3440_p3  ;;  %p3106_p11 = por %p3105_p0, %p3104_p10 }
 0x45b   : > { %p3102_p7 = pneg %p3101_p6 }
 0x45d   : > { %p3107_p12 = pnand %p3106_p11, %p3102_p7 }
 0x45f   : > { %3110 = shalt.err (!%p3107_p12)
}
 0x460   : > { %s3251_s13 = smov 128   ;;  %s3252_s10 = smov 512  }
 0x461   : > { %s3253_s11 = smov 8  }
 0x462   : > { %2743 = dma.vmem_to_hbm [thread:$0]  (%p3440_p3), %s2531_s14, 4096, %s2533_s24, %s2515_s7, %s3251_s13, %s3252_s10, %s3253_s11  }
 0x463 PF: > { %s5034_s12 = sld [smem:[#allocation17_spill]]  ;;  %p2763_p1 = scmp.ge.s32.totalorder %s3241_s28, 2 }
 0x465   : > { %p2759_p2 = pnand %p2763_p1, %p3454_p4 }
 0x467   : > { %p2760_p5 = pneg %p2759_p2 }
 0x469   : > { %s2547_s0 = sand.u32 1, %s5034_s12  }
 0x46a   : > { %s2548_s20 = scalar_lea.sflag [#allocation5], %s2547_s0 }
 0x46b   : > { %3184 = dma.done.wait (%p2760_p5), %s2548_s20, 4096  }
 0x46c   : > { %3186 = vsyncadd (%p2760_p5), %s2548_s20, 4294963200  ;;  %s26_s28 = sadd.s32 1, %s3241_s28   ;;  %s5037_s18 = sld [smem:[#allocation18_spill]] }
 0x46d   : > { %p4812_p8 = scmp.ge.s32.totalorder %s26_s28, 10   ;;  %s5038_s17 = sld [smem:[#allocation29_spill]] }
 0x46e   : > { %s5039_s14 = sld [smem:[#allocation19_spill]]  ;;  %s5046_s15 = smov %s3193_s16 }
 0x46f   : > { %s5040_s20 = sld [smem:[#allocation26_spill]]  ;;  %s5050_s21 = smov %s3217_s22 }
 0x470   : > { %s5041_s4 = sld [smem:[#allocation20_spill]]  ;;  %s5052_s25 = smov %s3237_s27 }
 0x471   : > { %s5042_s23 = sld [smem:[#allocation28_spill]] }
 0x472   : > { %s5043_s24 = sld [smem:[#allocation23_spill]]  ;;  %s5047_s16 = smov %s5037_s18 }
 0x473   : > { %s5044_s26 = sld [smem:[#allocation24_spill]]  ;;  %s5048_s18 = smov %s3205_s19 }
 0x474   : > { %s5045_s8 = sld [smem:[#allocation27_spill]]  ;;  %s5049_s19 = smov %s5039_s14 }
 0x476   : > { %s5051_s22 = smov %s5041_s4  ;;  %25 = sbr.rel (!%p4812_p8) target bundleno = 18 (0x12), region = 130 }
 0x47a   : > { %s5053_s27 = smov %s5045_s8 }
 0x47b   :  { %2554 = vsyncpa [#allocation4], 1 }
 0x47c   :  { %2556 = vsyncpa [#allocation4 + $0x1], 1 }
 0x47d   :  { %2557 = vsyncpa [#allocation7], 1 }
 0x47e   :  { %2559 = vsyncpa [#allocation7 + $0x1], 1 }
 0x47f   :  { %2560 = vsyncpa [#allocation10], 1 }
 0x480   :  { %2562 = vsyncpa [#allocation10 + $0x1], 1 }
 0x481   :  { %2563 = vsyncpa [#allocation5], 1 }
 0x482   :  { %2565 = vsyncpa [#allocation5 + $0x1], 1 }

</bundles_post_ra>
